<compile_context>
chip_gen: v5e
topology: v5e:2x2
jax: 0.10.0
libtpu: 0.0.40
codegen_flags: <defaults>
</compile_context>

<pallas_src>
import functools

import jax
import jax.numpy as jnp
from jax.experimental import pallas as pl
from jax.experimental.pallas import tpu as pltpu


# --------------------------------------------------------------------------- #
# In-kernel GATConv layer (traced helper on VMEM-resident values)
# --------------------------------------------------------------------------- #
def _gat_layer(x_parts, adj, w_parts, wres_parts, al_rows, ar_cols, bias, *,
               num_heads, out_feats, negative_slope, activation, mean_heads, n):
    """x_parts     : list of (N, d_i) blocks whose concatenation is the input
       w_parts     : matching (d_i, H*F) row-blocks of the fc weight
       wres_parts  : matching row-blocks of the residual projection
       al_rows     : (H, H*F) attn_l laid out as per-head row blocks
       ar_cols     : (H*F, H) attn_r laid out as per-head column blocks
       bias        : (1, H*F)
    """
    hf = num_heads * out_feats

    # feat / res for all heads at once; the input concat is folded into the
    # row-split weights -> no in-kernel concatenate.
    feat = jnp.dot(x_parts[0], w_parts[0], preferred_element_type=jnp.float32)
    res = jnp.dot(x_parts[0], wres_parts[0], preferred_element_type=jnp.float32)
    for xp, wp, wrp in zip(x_parts[1:], w_parts[1:], wres_parts[1:]):
        feat = feat + jnp.dot(xp, wp, preferred_element_type=jnp.float32)
        res = res + jnp.dot(xp, wrp, preferred_element_type=jnp.float32)

    # attention logits for all heads from the already-materialized projection
    er = jnp.dot(feat, ar_cols, preferred_element_type=jnp.float32)        # (N, H)
    # elT[h, j] = <feat_j (head h block), attn_l[h]>  via trans-B dot_general
    elT = jax.lax.dot_general(al_rows, feat, (((1,), (1,)), ((), ())),
                              preferred_element_type=jnp.float32)          # (H, N)

    col = jax.lax.broadcasted_iota(jnp.int32, (n, hf), 1)
    agg = jnp.zeros((n, hf), jnp.float32)
    for h in range(num_heads):
        # e[i, j] = leaky_relu(er_i + el_j)   (dst i on sublanes, src j on lanes)
        e = er[:, h:h + 1] + elT[h:h + 1, :]                               # (N, N)
        e = jnp.where(e >= 0.0, e, negative_slope * e)
        e = jnp.where(adj > 0.0, e, -1e30)                                 # mask non-edges
        m = jnp.max(e, axis=1, keepdims=True)
        p = jnp.exp(e - m)                    # masked entries underflow to exactly 0
        alpha = p / jnp.sum(p, axis=1, keepdims=True)                      # edge softmax
        oh = jnp.dot(alpha, feat, preferred_element_type=jnp.float32)      # (N, H*F)
        in_head = jnp.logical_and(col >= h * out_feats, col < (h + 1) * out_feats)
        agg = agg + jnp.where(in_head, oh, 0.0)      # keep only head-h columns

    out = agg + res + bias
    if activation == "elu":
        out = jnp.where(out > 0.0, out, jnp.exp(out) - 1.0)
    else:  # tanh
        out = jnp.tanh(out)

    if mean_heads:                      # .mean(1) over heads, after the activation
        acc = out[:, 0:out_feats]
        for h in range(1, num_heads):
            acc = acc + out[:, h * out_feats:(h + 1) * out_feats]
        out = acc * (1.0 / num_heads)
    return out


# --------------------------------------------------------------------------- #
# Fused forward-pass kernel (single pallas_call for the whole network)
# --------------------------------------------------------------------------- #
def _fused_forward_kernel(*refs, num_layers, gat_cfg, pgnn_cfg, neg_slope, n):
    pos = [0]

    def take(k):
        r = refs[pos[0]:pos[0] + k]
        pos[0] += k
        return r

    (fvs_ref,), (pos_ref,), (adj_ref,) = take(1), take(1), take(1)
    gat_params = [take(7) for _ in range(num_layers + 1)]
    pgnn_params = [take(5) for _ in range(num_layers)]
    (wout_ref,), (bout_ref,) = take(1), take(1)
    (nout_ref,), (nembed_ref,), (npembed_ref,) = take(1), take(1), take(1)

    adj = adj_ref[...]
    h_s = fvs_ref[...]
    h_p = pos_ref[...]

    for l in range(num_layers):
        ws, wp, wrs, wrp, al, ar, b = gat_params[l]
        H, F = gat_cfg[l]
        h_s_new = _gat_layer([h_s, h_p], adj, [ws[...], wp[...]],
                             [wrs[...], wrp[...]], al[...], ar[...], b[...],
                             num_heads=H, out_feats=F, negative_slope=neg_slope,
                             activation="elu", mean_heads=False, n=n)
        w, wr, alp, arp, bp = pgnn_params[l]
        Hp, Fp = pgnn_cfg[l]
        h_p = _gat_layer([h_p], adj, [w[...]], [wr[...]], alp[...], arp[...],
                         bp[...], num_heads=Hp, out_feats=Fp,
                         negative_slope=neg_slope, activation="tanh",
                         mean_heads=False, n=n)
        h_s = h_s_new

    ws, wp, wrs, wrp, al, ar, b = gat_params[num_layers]
    Ho, Fo = gat_cfg[num_layers]
    n_embed = _gat_layer([h_s, h_p], adj, [ws[...], wp[...]],
                         [wrs[...], wrp[...]], al[...], ar[...], b[...],
                         num_heads=Ho, out_feats=Fo, negative_slope=neg_slope,
                         activation="elu", mean_heads=True, n=n)

    n_out = jnp.dot(n_embed, wout_ref[...],
                    preferred_element_type=jnp.float32) + bout_ref[...]

    # single lane-dense store per output
    nout_ref[...] = n_out
    nembed_ref[...] = n_embed
    npembed_ref[...] = h_p


# --------------------------------------------------------------------------- #
# Host-side helpers and wrapper
# --------------------------------------------------------------------------- #
def _attn_rows(attn):            # (H, F) -> (H, H*F) per-head row blocks
    h, f = attn.shape
    rows = jnp.zeros((h, h * f), jnp.float32)
    for i in range(h):
        rows = rows.at[i, i * f:(i + 1) * f].set(attn[i])
    return rows


def _attn_cols(attn):            # (H, F) -> (H*F, H) per-head column blocks
    h, f = attn.shape
    cols = jnp.zeros((h * f, h), jnp.float32)
    for i in range(h):
        cols = cols.at[i * f:(i + 1) * f, i].set(attn[i])
    return cols


def _full_spec(shape):
    nd = len(shape)
    return pl.BlockSpec(shape, lambda i: (0,) * nd)


def gat_position_spgnn_forward(fvs, pos_enc, adj, gat_p, pgnn_p, w_out, b_out, *,
                               num_hiddens, pos_hiddens, heads, pos_heads,
                               out_heads, node_embed_dim, neg_slope):
    n = fvs.shape[0]
    num_layers = len(num_hiddens)
    out_ch = w_out.shape[1]
    gat_cfg = tuple((heads, num_hiddens[l]) for l in range(num_layers)) + \
        ((out_heads, node_embed_dim),)
    pgnn_cfg = tuple((pos_heads, pos_hiddens[l]) for l in range(num_layers))

    # Pack per-layer params; GAT-layer weights are row-split so the in-kernel
    # [h_s | h_p] concatenation becomes two matmuls (no lane concatenate).
    gat_args, pgnn_args = [], []
    d_s, d_p = fvs.shape[1], pos_enc.shape[1]
    for l in range(num_layers + 1):
        p = gat_p[l]
        gat_args += [p["w"][:d_s], p["w"][d_s:],
                     p["w_res"][:d_s], p["w_res"][d_s:],
                     _attn_rows(p["attn_l"]), _attn_cols(p["attn_r"]),
                     p["bias"]]
        if l < num_layers:
            q = pgnn_p[l]
            pgnn_args += [q["w"], q["w_res"],
                          _attn_rows(q["attn_l"]), _attn_cols(q["attn_r"]),
                          q["bias"]]
            d_s = gat_cfg[l][0] * gat_cfg[l][1]
            d_p = pgnn_cfg[l][0] * pgnn_cfg[l][1]

    args = [fvs, pos_enc, adj] + gat_args + pgnn_args + [w_out, b_out]

    out_shapes = (jax.ShapeDtypeStruct((n, out_ch), jnp.float32),
                  jax.ShapeDtypeStruct((n, node_embed_dim), jnp.float32),
                  jax.ShapeDtypeStruct((n, d_p), jnp.float32))

    kernel = functools.partial(_fused_forward_kernel, num_layers=num_layers,
                               gat_cfg=gat_cfg, pgnn_cfg=pgnn_cfg,
                               neg_slope=neg_slope, n=n)
    return pl.pallas_call(
        kernel,
        grid=(1,),
        in_specs=[_full_spec(a.shape) for a in args],
        out_specs=tuple(_full_spec(s.shape) for s in out_shapes),
        out_shape=out_shapes,
        compiler_params=pltpu.CompilerParams(
            dimension_semantics=("arbitrary",)),
    )(*args)


# --------------------------------------------------------------------------- #
# Parameter init (deterministic, synthetic)
# --------------------------------------------------------------------------- #
def init_gatconv(key, din, out_feats, heads):
    k = jax.random.split(key, 4)
    scale = jnp.sqrt(2.0 / (din + heads * out_feats)).astype(jnp.float32)
    return dict(
        w=scale * jax.random.normal(k[0], (din, heads * out_feats), jnp.float32),
        attn_l=0.1 * jax.random.normal(k[1], (heads, out_feats), jnp.float32),
        attn_r=0.1 * jax.random.normal(k[2], (heads, out_feats), jnp.float32),
        # residual projection (in_feats != heads*out_feats for all chosen layers)
        w_res=scale * jax.random.normal(k[3], (din, heads * out_feats), jnp.float32),
        bias=jnp.zeros((1, heads * out_feats), jnp.float32),   # DGL bias (init 0)
    )


# --------------------------------------------------------------------------- #
# Main
# --------------------------------------------------------------------------- #
if __name__ == "__main__":
    key = jax.random.PRNGKey(0)
    keys = jax.random.split(key, 10)

    # small, consistent configuration
    N = 16                    # nodes in the graph
    fv_dim = 8                # in_dim of the feature GAT stack
    pos_enc_dim = 6           # positional-encoding dim
    num_gat_layers = 2
    num_hiddens = [8, 8]
    pos_hiddens = [4, 6]
    heads = 2                 # num_heads
    out_heads = 2             # num_out_heads
    pos_heads = 2             # num_pos_heads
    node_embed_dim = 8
    out_ch = 3
    neg_slope = 0.2

    # deterministic graph: ring + self-loops, adj[i, j] = 1 iff edge j -> i
    idx = jnp.arange(N)
    adj = ((idx[:, None] == idx[None, :]) |
           (idx[:, None] == (idx[None, :] + 1) % N) |
           (idx[:, None] == (idx[None, :] - 1) % N)).astype(jnp.float32)

    # g.ndata['fvs'] and g.ndata['pos_enc']
    fvs = jax.random.normal(keys[0], (N, fv_dim), jnp.float32)
    pos_enc = jax.random.normal(keys[1], (N, pos_enc_dim), jnp.float32)

    # GATPSPGNN parameters
    gat_p = [
        init_gatconv(keys[2], fv_dim + pos_enc_dim, num_hiddens[0], heads),
        init_gatconv(keys[3],
                     num_hiddens[0] * heads + pos_hiddens[0] * pos_heads,
                     num_hiddens[1], heads),
        init_gatconv(keys[4],
                     num_hiddens[1] * heads + pos_hiddens[1] * pos_heads,
                     node_embed_dim, out_heads),
    ]
    pgnn_p = [
        init_gatconv(keys[5], pos_enc_dim, pos_hiddens[0], pos_heads),
        init_gatconv(keys[6], pos_hiddens[0] * pos_heads, pos_hiddens[1],
                     pos_heads),
    ]

    # gnn_out = nn.Linear(node_embed_dim, out_ch)  (weight stored pre-transposed)
    w_out = (jnp.sqrt(2.0 / (node_embed_dim + out_ch)) *
             jax.random.normal(keys[7], (node_embed_dim, out_ch), jnp.float32))
    b_out = jnp.zeros((1, out_ch), jnp.float32)

    n_out, n_embed, n_p_embed = gat_position_spgnn_forward(
        fvs, pos_enc, adj, gat_p, pgnn_p, w_out, b_out,
        num_hiddens=num_hiddens, pos_hiddens=pos_hiddens, heads=heads,
        pos_heads=pos_heads, out_heads=out_heads,
        node_embed_dim=node_embed_dim, neg_slope=neg_slope)

    jax.block_until_ready((n_out, n_embed, n_p_embed))
    assert n_out.shape == (N, out_ch)
    assert n_embed.shape == (N, node_embed_dim)
    assert n_p_embed.shape == (N, pos_hiddens[-1] * pos_heads)
    assert bool(jnp.all(jnp.isfinite(n_out)))
    assert bool(jnp.all(jnp.isfinite(n_embed)))
    assert bool(jnp.all(jnp.isfinite(n_p_embed)))
    print("KERNEL_OK")
</pallas_src>

<mosaic_0001>
module attributes {stable_mosaic.version = 11 : i64} {
  func.func @_fused_forward_kernel(%arg0: i32, %arg1: memref<16x8xf32, #tpu.memory_space<vmem>>, %arg2: memref<16x6xf32, #tpu.memory_space<vmem>>, %arg3: memref<16x16xf32, #tpu.memory_space<vmem>>, %arg4: memref<8x16xf32, #tpu.memory_space<vmem>>, %arg5: memref<6x16xf32, #tpu.memory_space<vmem>>, %arg6: memref<8x16xf32, #tpu.memory_space<vmem>>, %arg7: memref<6x16xf32, #tpu.memory_space<vmem>>, %arg8: memref<2x16xf32, #tpu.memory_space<vmem>>, %arg9: memref<16x2xf32, #tpu.memory_space<vmem>>, %arg10: memref<1x16xf32, #tpu.memory_space<vmem>>, %arg11: memref<16x16xf32, #tpu.memory_space<vmem>>, %arg12: memref<8x16xf32, #tpu.memory_space<vmem>>, %arg13: memref<16x16xf32, #tpu.memory_space<vmem>>, %arg14: memref<8x16xf32, #tpu.memory_space<vmem>>, %arg15: memref<2x16xf32, #tpu.memory_space<vmem>>, %arg16: memref<16x2xf32, #tpu.memory_space<vmem>>, %arg17: memref<1x16xf32, #tpu.memory_space<vmem>>, %arg18: memref<16x16xf32, #tpu.memory_space<vmem>>, %arg19: memref<12x16xf32, #tpu.memory_space<vmem>>, %arg20: memref<16x16xf32, #tpu.memory_space<vmem>>, %arg21: memref<12x16xf32, #tpu.memory_space<vmem>>, %arg22: memref<2x16xf32, #tpu.memory_space<vmem>>, %arg23: memref<16x2xf32, #tpu.memory_space<vmem>>, %arg24: memref<1x16xf32, #tpu.memory_space<vmem>>, %arg25: memref<6x8xf32, #tpu.memory_space<vmem>>, %arg26: memref<6x8xf32, #tpu.memory_space<vmem>>, %arg27: memref<2x8xf32, #tpu.memory_space<vmem>>, %arg28: memref<8x2xf32, #tpu.memory_space<vmem>>, %arg29: memref<1x8xf32, #tpu.memory_space<vmem>>, %arg30: memref<8x12xf32, #tpu.memory_space<vmem>>, %arg31: memref<8x12xf32, #tpu.memory_space<vmem>>, %arg32: memref<2x12xf32, #tpu.memory_space<vmem>>, %arg33: memref<12x2xf32, #tpu.memory_space<vmem>>, %arg34: memref<1x12xf32, #tpu.memory_space<vmem>>, %arg35: memref<8x3xf32, #tpu.memory_space<vmem>>, %arg36: memref<1x3xf32, #tpu.memory_space<vmem>>, %arg37: memref<16x3xf32, #tpu.memory_space<vmem>>, %arg38: memref<16x8xf32, #tpu.memory_space<vmem>>, %arg39: memref<16x12xf32, #tpu.memory_space<vmem>>) attributes {dimension_semantics = [#tpu.dimension_semantics<arbitrary>], iteration_bounds = array<i64: 1>, scalar_prefetch = 0 : i64, scratch_operands = 0 : i64, tpu.core_type = #tpu.core_type<tc>, window_params = [{pipeline_mode = #tpu.pipeline_mode<synchronous>, transform_indices = @transform_0, window_bounds = array<i64: 16, 8>}, {pipeline_mode = #tpu.pipeline_mode<synchronous>, transform_indices = @transform_1, window_bounds = array<i64: 16, 6>}, {pipeline_mode = #tpu.pipeline_mode<synchronous>, transform_indices = @transform_2, window_bounds = array<i64: 16, 16>}, {pipeline_mode = #tpu.pipeline_mode<synchronous>, transform_indices = @transform_3, window_bounds = array<i64: 8, 16>}, {pipeline_mode = #tpu.pipeline_mode<synchronous>, transform_indices = @transform_4, window_bounds = array<i64: 6, 16>}, {pipeline_mode = #tpu.pipeline_mode<synchronous>, transform_indices = @transform_5, window_bounds = array<i64: 8, 16>}, {pipeline_mode = #tpu.pipeline_mode<synchronous>, transform_indices = @transform_6, window_bounds = array<i64: 6, 16>}, {pipeline_mode = #tpu.pipeline_mode<synchronous>, transform_indices = @transform_7, window_bounds = array<i64: 2, 16>}, {pipeline_mode = #tpu.pipeline_mode<synchronous>, transform_indices = @transform_8, window_bounds = array<i64: 16, 2>}, {pipeline_mode = #tpu.pipeline_mode<synchronous>, transform_indices = @transform_9, window_bounds = array<i64: 1, 16>}, {pipeline_mode = #tpu.pipeline_mode<synchronous>, transform_indices = @transform_10, window_bounds = array<i64: 16, 16>}, {pipeline_mode = #tpu.pipeline_mode<synchronous>, transform_indices = @transform_11, window_bounds = array<i64: 8, 16>}, {pipeline_mode = #tpu.pipeline_mode<synchronous>, transform_indices = @transform_12, window_bounds = array<i64: 16, 16>}, {pipeline_mode = #tpu.pipeline_mode<synchronous>, transform_indices = @transform_13, window_bounds = array<i64: 8, 16>}, {pipeline_mode = #tpu.pipeline_mode<synchronous>, transform_indices = @transform_14, window_bounds = array<i64: 2, 16>}, {pipeline_mode = #tpu.pipeline_mode<synchronous>, transform_indices = @transform_15, window_bounds = array<i64: 16, 2>}, {pipeline_mode = #tpu.pipeline_mode<synchronous>, transform_indices = @transform_16, window_bounds = array<i64: 1, 16>}, {pipeline_mode = #tpu.pipeline_mode<synchronous>, transform_indices = @transform_17, window_bounds = array<i64: 16, 16>}, {pipeline_mode = #tpu.pipeline_mode<synchronous>, transform_indices = @transform_18, window_bounds = array<i64: 12, 16>}, {pipeline_mode = #tpu.pipeline_mode<synchronous>, transform_indices = @transform_19, window_bounds = array<i64: 16, 16>}, {pipeline_mode = #tpu.pipeline_mode<synchronous>, transform_indices = @transform_20, window_bounds = array<i64: 12, 16>}, {pipeline_mode = #tpu.pipeline_mode<synchronous>, transform_indices = @transform_21, window_bounds = array<i64: 2, 16>}, {pipeline_mode = #tpu.pipeline_mode<synchronous>, transform_indices = @transform_22, window_bounds = array<i64: 16, 2>}, {pipeline_mode = #tpu.pipeline_mode<synchronous>, transform_indices = @transform_23, window_bounds = array<i64: 1, 16>}, {pipeline_mode = #tpu.pipeline_mode<synchronous>, transform_indices = @transform_24, window_bounds = array<i64: 6, 8>}, {pipeline_mode = #tpu.pipeline_mode<synchronous>, transform_indices = @transform_25, window_bounds = array<i64: 6, 8>}, {pipeline_mode = #tpu.pipeline_mode<synchronous>, transform_indices = @transform_26, window_bounds = array<i64: 2, 8>}, {pipeline_mode = #tpu.pipeline_mode<synchronous>, transform_indices = @transform_27, window_bounds = array<i64: 8, 2>}, {pipeline_mode = #tpu.pipeline_mode<synchronous>, transform_indices = @transform_28, window_bounds = array<i64: 1, 8>}, {pipeline_mode = #tpu.pipeline_mode<synchronous>, transform_indices = @transform_29, window_bounds = array<i64: 8, 12>}, {pipeline_mode = #tpu.pipeline_mode<synchronous>, transform_indices = @transform_30, window_bounds = array<i64: 8, 12>}, {pipeline_mode = #tpu.pipeline_mode<synchronous>, transform_indices = @transform_31, window_bounds = array<i64: 2, 12>}, {pipeline_mode = #tpu.pipeline_mode<synchronous>, transform_indices = @transform_32, window_bounds = array<i64: 12, 2>}, {pipeline_mode = #tpu.pipeline_mode<synchronous>, transform_indices = @transform_33, window_bounds = array<i64: 1, 12>}, {pipeline_mode = #tpu.pipeline_mode<synchronous>, transform_indices = @transform_34, window_bounds = array<i64: 8, 3>}, {pipeline_mode = #tpu.pipeline_mode<synchronous>, transform_indices = @transform_35, window_bounds = array<i64: 1, 3>}, {pipeline_mode = #tpu.pipeline_mode<synchronous>, transform_indices = @transform_36, window_bounds = array<i64: 16, 3>}, {pipeline_mode = #tpu.pipeline_mode<synchronous>, transform_indices = @transform_37, window_bounds = array<i64: 16, 8>}, {pipeline_mode = #tpu.pipeline_mode<synchronous>, transform_indices = @transform_38, window_bounds = array<i64: 16, 12>}]} {
    %c0 = arith.constant 0 : index
    %c0_0 = arith.constant 0 : index
    %0 = vector.load %arg3[%c0, %c0_0] : memref<16x16xf32, #tpu.memory_space<vmem>>, vector<16x16xf32>
    %c0_1 = arith.constant 0 : index
    %c0_2 = arith.constant 0 : index
    %1 = vector.load %arg1[%c0_1, %c0_2] : memref<16x8xf32, #tpu.memory_space<vmem>>, vector<16x8xf32>
    %c0_3 = arith.constant 0 : index
    %c0_4 = arith.constant 0 : index
    %2 = vector.load %arg2[%c0_3, %c0_4] : memref<16x6xf32, #tpu.memory_space<vmem>>, vector<16x6xf32>
    %c0_5 = arith.constant 0 : index
    %c0_6 = arith.constant 0 : index
    %3 = vector.load %arg4[%c0_5, %c0_6] : memref<8x16xf32, #tpu.memory_space<vmem>>, vector<8x16xf32>
    %c0_7 = arith.constant 0 : index
    %c0_8 = arith.constant 0 : index
    %4 = vector.load %arg5[%c0_7, %c0_8] : memref<6x16xf32, #tpu.memory_space<vmem>>, vector<6x16xf32>
    %c0_9 = arith.constant 0 : index
    %c0_10 = arith.constant 0 : index
    %5 = vector.load %arg6[%c0_9, %c0_10] : memref<8x16xf32, #tpu.memory_space<vmem>>, vector<8x16xf32>
    %c0_11 = arith.constant 0 : index
    %c0_12 = arith.constant 0 : index
    %6 = vector.load %arg7[%c0_11, %c0_12] : memref<6x16xf32, #tpu.memory_space<vmem>>, vector<6x16xf32>
    %c0_13 = arith.constant 0 : index
    %c0_14 = arith.constant 0 : index
    %7 = vector.load %arg8[%c0_13, %c0_14] : memref<2x16xf32, #tpu.memory_space<vmem>>, vector<2x16xf32>
    %c0_15 = arith.constant 0 : index
    %c0_16 = arith.constant 0 : index
    %8 = vector.load %arg9[%c0_15, %c0_16] : memref<16x2xf32, #tpu.memory_space<vmem>>, vector<16x2xf32>
    %c0_17 = arith.constant 0 : index
    %c0_18 = arith.constant 0 : index
    %9 = vector.load %arg10[%c0_17, %c0_18] : memref<1x16xf32, #tpu.memory_space<vmem>>, vector<1x16xf32>
    %cst = arith.constant dense<0.000000e+00> : vector<16x16xf32>
    %10 = tpu.matmul %1, %3, %cst {dimension_numbers = #tpu.dot_dimension_numbers<[1], [0], [0], [1], [0, 0, 1, 1], [], []>} : vector<16x8xf32>, vector<8x16xf32>, vector<16x16xf32> -> vector<16x16xf32>
    %cst_19 = arith.constant dense<0.000000e+00> : vector<16x16xf32>
    %11 = tpu.matmul %1, %5, %cst_19 {dimension_numbers = #tpu.dot_dimension_numbers<[1], [0], [0], [1], [0, 0, 1, 1], [], []>} : vector<16x8xf32>, vector<8x16xf32>, vector<16x16xf32> -> vector<16x16xf32>
    %cst_20 = arith.constant dense<0.000000e+00> : vector<16x16xf32>
    %12 = tpu.matmul %2, %4, %cst_20 {dimension_numbers = #tpu.dot_dimension_numbers<[1], [0], [0], [1], [0, 0, 1, 1], [], []>} : vector<16x6xf32>, vector<6x16xf32>, vector<16x16xf32> -> vector<16x16xf32>
    %13 = arith.addf %10, %12 : vector<16x16xf32>
    %cst_21 = arith.constant dense<0.000000e+00> : vector<16x16xf32>
    %14 = tpu.matmul %2, %6, %cst_21 {dimension_numbers = #tpu.dot_dimension_numbers<[1], [0], [0], [1], [0, 0, 1, 1], [], []>} : vector<16x6xf32>, vector<6x16xf32>, vector<16x16xf32> -> vector<16x16xf32>
    %15 = arith.addf %11, %14 : vector<16x16xf32>
    %cst_22 = arith.constant dense<0.000000e+00> : vector<16x2xf32>
    %16 = tpu.matmul %13, %8, %cst_22 {dimension_numbers = #tpu.dot_dimension_numbers<[1], [0], [0], [1], [0, 0, 1, 1], [], []>} : vector<16x16xf32>, vector<16x2xf32>, vector<16x2xf32> -> vector<16x2xf32>
    %cst_23 = arith.constant dense<0.000000e+00> : vector<2x16xf32>
    %17 = tpu.matmul %7, %13, %cst_23 {dimension_numbers = #tpu.dot_dimension_numbers<[1], [1], [0], [0], [0, 0, 1, 0], [], []>} : vector<2x16xf32>, vector<16x16xf32>, vector<2x16xf32> -> vector<2x16xf32>
    %18 = tpu.iota {dimensions = array<i32: 1>} : vector<16x16xi32>
    %cst_24 = arith.constant 0.000000e+00 : f32
    %19 = vector.broadcast %cst_24 : f32 to vector<16x16xf32>
    %20 = vector.extract_strided_slice %16 {offsets = [0, 0], sizes = [16, 1], strides = [1, 1]} : vector<16x2xf32> to vector<16x1xf32>
    %21 = vector.extract_strided_slice %17 {offsets = [0, 0], sizes = [1, 16], strides = [1, 1]} : vector<2x16xf32> to vector<1x16xf32>
    %22 = vector.broadcast %20 : vector<16x1xf32> to vector<16x16xf32>
    %23 = vector.broadcast %21 : vector<1x16xf32> to vector<16x16xf32>
    %24 = arith.addf %22, %23 : vector<16x16xf32>
    %cst_25 = arith.constant 0.000000e+00 : f32
    %25 = vector.broadcast %cst_25 : f32 to vector<16x16xf32>
    %26 = arith.cmpf oge, %24, %25 : vector<16x16xf32>
    %cst_26 = arith.constant 2.000000e-01 : f32
    %27 = vector.broadcast %cst_26 : f32 to vector<16x16xf32>
    %28 = arith.mulf %27, %24 : vector<16x16xf32>
    %29 = arith.select %26, %24, %28 : vector<16x16xi1>, vector<16x16xf32>
    %cst_27 = arith.constant 0.000000e+00 : f32
    %30 = vector.broadcast %cst_27 : f32 to vector<16x16xf32>
    %31 = arith.cmpf ogt, %0, %30 : vector<16x16xf32>
    %cst_28 = arith.constant -1.000000e+30 : f32
    %32 = vector.broadcast %cst_28 : f32 to vector<16x16xf32>
    %33 = arith.select %31, %29, %32 : vector<16x16xi1>, vector<16x16xf32>
    %cst_29 = arith.constant dense<0xFF800000> : vector<16xf32>
    %34 = vector.multi_reduction <maximumf>, %33, %cst_29 [1] : vector<16x16xf32> to vector<16xf32>
    %35 = vector.shape_cast %34 : vector<16xf32> to vector<16x1xf32>
    %36 = vector.broadcast %35 : vector<16x1xf32> to vector<16x16xf32>
    %37 = arith.subf %33, %36 : vector<16x16xf32>
    %38 = math.exp %37 : vector<16x16xf32>
    %cst_30 = arith.constant dense<0.000000e+00> : vector<16xf32>
    %39 = vector.multi_reduction <add>, %38, %cst_30 [1] : vector<16x16xf32> to vector<16xf32>
    %40 = vector.shape_cast %39 : vector<16xf32> to vector<16x1xf32>
    %41 = vector.broadcast %40 : vector<16x1xf32> to vector<16x16xf32>
    %42 = arith.divf %38, %41 : vector<16x16xf32>
    %cst_31 = arith.constant dense<0.000000e+00> : vector<16x16xf32>
    %43 = tpu.matmul %42, %13, %cst_31 {dimension_numbers = #tpu.dot_dimension_numbers<[1], [0], [0], [1], [0, 0, 1, 1], [], []>} : vector<16x16xf32>, vector<16x16xf32>, vector<16x16xf32> -> vector<16x16xf32>
    %c0_i32 = arith.constant 0 : i32
    %44 = vector.broadcast %c0_i32 : i32 to vector<16x16xi32>
    %45 = arith.cmpi sge, %18, %44 : vector<16x16xi32>
    %c8_i32 = arith.constant 8 : i32
    %46 = vector.broadcast %c8_i32 : i32 to vector<16x16xi32>
    %47 = arith.cmpi slt, %18, %46 : vector<16x16xi32>
    %48 = arith.andi %45, %47 : vector<16x16xi1>
    %cst_32 = arith.constant 0.000000e+00 : f32
    %49 = vector.broadcast %cst_32 : f32 to vector<16x16xf32>
    %50 = arith.select %48, %43, %49 : vector<16x16xi1>, vector<16x16xf32>
    %51 = arith.addf %19, %50 : vector<16x16xf32>
    %52 = vector.extract_strided_slice %16 {offsets = [0, 1], sizes = [16, 1], strides = [1, 1]} : vector<16x2xf32> to vector<16x1xf32>
    %53 = vector.extract_strided_slice %17 {offsets = [1, 0], sizes = [1, 16], strides = [1, 1]} : vector<2x16xf32> to vector<1x16xf32>
    %54 = vector.broadcast %52 : vector<16x1xf32> to vector<16x16xf32>
    %55 = vector.broadcast %53 : vector<1x16xf32> to vector<16x16xf32>
    %56 = arith.addf %54, %55 : vector<16x16xf32>
    %cst_33 = arith.constant 0.000000e+00 : f32
    %57 = vector.broadcast %cst_33 : f32 to vector<16x16xf32>
    %58 = arith.cmpf oge, %56, %57 : vector<16x16xf32>
    %cst_34 = arith.constant 2.000000e-01 : f32
    %59 = vector.broadcast %cst_34 : f32 to vector<16x16xf32>
    %60 = arith.mulf %59, %56 : vector<16x16xf32>
    %61 = arith.select %58, %56, %60 : vector<16x16xi1>, vector<16x16xf32>
    %cst_35 = arith.constant 0.000000e+00 : f32
    %62 = vector.broadcast %cst_35 : f32 to vector<16x16xf32>
    %63 = arith.cmpf ogt, %0, %62 : vector<16x16xf32>
    %cst_36 = arith.constant -1.000000e+30 : f32
    %64 = vector.broadcast %cst_36 : f32 to vector<16x16xf32>
    %65 = arith.select %63, %61, %64 : vector<16x16xi1>, vector<16x16xf32>
    %cst_37 = arith.constant dense<0xFF800000> : vector<16xf32>
    %66 = vector.multi_reduction <maximumf>, %65, %cst_37 [1] : vector<16x16xf32> to vector<16xf32>
    %67 = vector.shape_cast %66 : vector<16xf32> to vector<16x1xf32>
    %68 = vector.broadcast %67 : vector<16x1xf32> to vector<16x16xf32>
    %69 = arith.subf %65, %68 : vector<16x16xf32>
    %70 = math.exp %69 : vector<16x16xf32>
    %cst_38 = arith.constant dense<0.000000e+00> : vector<16xf32>
    %71 = vector.multi_reduction <add>, %70, %cst_38 [1] : vector<16x16xf32> to vector<16xf32>
    %72 = vector.shape_cast %71 : vector<16xf32> to vector<16x1xf32>
    %73 = vector.broadcast %72 : vector<16x1xf32> to vector<16x16xf32>
    %74 = arith.divf %70, %73 : vector<16x16xf32>
    %cst_39 = arith.constant dense<0.000000e+00> : vector<16x16xf32>
    %75 = tpu.matmul %74, %13, %cst_39 {dimension_numbers = #tpu.dot_dimension_numbers<[1], [0], [0], [1], [0, 0, 1, 1], [], []>} : vector<16x16xf32>, vector<16x16xf32>, vector<16x16xf32> -> vector<16x16xf32>
    %c8_i32_40 = arith.constant 8 : i32
    %76 = vector.broadcast %c8_i32_40 : i32 to vector<16x16xi32>
    %77 = arith.cmpi sge, %18, %76 : vector<16x16xi32>
    %c16_i32 = arith.constant 16 : i32
    %78 = vector.broadcast %c16_i32 : i32 to vector<16x16xi32>
    %79 = arith.cmpi slt, %18, %78 : vector<16x16xi32>
    %80 = arith.andi %77, %79 : vector<16x16xi1>
    %cst_41 = arith.constant 0.000000e+00 : f32
    %81 = vector.broadcast %cst_41 : f32 to vector<16x16xf32>
    %82 = arith.select %80, %75, %81 : vector<16x16xi1>, vector<16x16xf32>
    %83 = arith.addf %51, %82 : vector<16x16xf32>
    %84 = arith.addf %83, %15 : vector<16x16xf32>
    %85 = vector.broadcast %9 : vector<1x16xf32> to vector<16x16xf32>
    %86 = arith.addf %84, %85 : vector<16x16xf32>
    %cst_42 = arith.constant 0.000000e+00 : f32
    %87 = vector.broadcast %cst_42 : f32 to vector<16x16xf32>
    %88 = arith.cmpf ogt, %86, %87 : vector<16x16xf32>
    %89 = math.exp %86 : vector<16x16xf32>
    %cst_43 = arith.constant 1.000000e+00 : f32
    %90 = vector.broadcast %cst_43 : f32 to vector<16x16xf32>
    %91 = arith.subf %89, %90 : vector<16x16xf32>
    %92 = arith.select %88, %86, %91 : vector<16x16xi1>, vector<16x16xf32>
    %c0_44 = arith.constant 0 : index
    %c0_45 = arith.constant 0 : index
    %93 = vector.load %arg25[%c0_44, %c0_45] : memref<6x8xf32, #tpu.memory_space<vmem>>, vector<6x8xf32>
    %c0_46 = arith.constant 0 : index
    %c0_47 = arith.constant 0 : index
    %94 = vector.load %arg26[%c0_46, %c0_47] : memref<6x8xf32, #tpu.memory_space<vmem>>, vector<6x8xf32>
    %c0_48 = arith.constant 0 : index
    %c0_49 = arith.constant 0 : index
    %95 = vector.load %arg27[%c0_48, %c0_49] : memref<2x8xf32, #tpu.memory_space<vmem>>, vector<2x8xf32>
    %c0_50 = arith.constant 0 : index
    %c0_51 = arith.constant 0 : index
    %96 = vector.load %arg28[%c0_50, %c0_51] : memref<8x2xf32, #tpu.memory_space<vmem>>, vector<8x2xf32>
    %c0_52 = arith.constant 0 : index
    %c0_53 = arith.constant 0 : index
    %97 = vector.load %arg29[%c0_52, %c0_53] : memref<1x8xf32, #tpu.memory_space<vmem>>, vector<1x8xf32>
    %cst_54 = arith.constant dense<0.000000e+00> : vector<16x8xf32>
    %98 = tpu.matmul %2, %93, %cst_54 {dimension_numbers = #tpu.dot_dimension_numbers<[1], [0], [0], [1], [0, 0, 1, 1], [], []>} : vector<16x6xf32>, vector<6x8xf32>, vector<16x8xf32> -> vector<16x8xf32>
    %cst_55 = arith.constant dense<0.000000e+00> : vector<16x8xf32>
    %99 = tpu.matmul %2, %94, %cst_55 {dimension_numbers = #tpu.dot_dimension_numbers<[1], [0], [0], [1], [0, 0, 1, 1], [], []>} : vector<16x6xf32>, vector<6x8xf32>, vector<16x8xf32> -> vector<16x8xf32>
    %cst_56 = arith.constant dense<0.000000e+00> : vector<16x2xf32>
    %100 = tpu.matmul %98, %96, %cst_56 {dimension_numbers = #tpu.dot_dimension_numbers<[1], [0], [0], [1], [0, 0, 1, 1], [], []>} : vector<16x8xf32>, vector<8x2xf32>, vector<16x2xf32> -> vector<16x2xf32>
    %cst_57 = arith.constant dense<0.000000e+00> : vector<2x16xf32>
    %101 = tpu.matmul %95, %98, %cst_57 {dimension_numbers = #tpu.dot_dimension_numbers<[1], [1], [0], [0], [0, 0, 1, 0], [], []>} : vector<2x8xf32>, vector<16x8xf32>, vector<2x16xf32> -> vector<2x16xf32>
    %102 = tpu.iota {dimensions = array<i32: 1>} : vector<16x8xi32>
    %cst_58 = arith.constant 0.000000e+00 : f32
    %103 = vector.broadcast %cst_58 : f32 to vector<16x8xf32>
    %104 = vector.extract_strided_slice %100 {offsets = [0, 0], sizes = [16, 1], strides = [1, 1]} : vector<16x2xf32> to vector<16x1xf32>
    %105 = vector.extract_strided_slice %101 {offsets = [0, 0], sizes = [1, 16], strides = [1, 1]} : vector<2x16xf32> to vector<1x16xf32>
    %106 = vector.broadcast %104 : vector<16x1xf32> to vector<16x16xf32>
    %107 = vector.broadcast %105 : vector<1x16xf32> to vector<16x16xf32>
    %108 = arith.addf %106, %107 : vector<16x16xf32>
    %cst_59 = arith.constant 0.000000e+00 : f32
    %109 = vector.broadcast %cst_59 : f32 to vector<16x16xf32>
    %110 = arith.cmpf oge, %108, %109 : vector<16x16xf32>
    %cst_60 = arith.constant 2.000000e-01 : f32
    %111 = vector.broadcast %cst_60 : f32 to vector<16x16xf32>
    %112 = arith.mulf %111, %108 : vector<16x16xf32>
    %113 = arith.select %110, %108, %112 : vector<16x16xi1>, vector<16x16xf32>
    %cst_61 = arith.constant 0.000000e+00 : f32
    %114 = vector.broadcast %cst_61 : f32 to vector<16x16xf32>
    %115 = arith.cmpf ogt, %0, %114 : vector<16x16xf32>
    %cst_62 = arith.constant -1.000000e+30 : f32
    %116 = vector.broadcast %cst_62 : f32 to vector<16x16xf32>
    %117 = arith.select %115, %113, %116 : vector<16x16xi1>, vector<16x16xf32>
    %cst_63 = arith.constant dense<0xFF800000> : vector<16xf32>
    %118 = vector.multi_reduction <maximumf>, %117, %cst_63 [1] : vector<16x16xf32> to vector<16xf32>
    %119 = vector.shape_cast %118 : vector<16xf32> to vector<16x1xf32>
    %120 = vector.broadcast %119 : vector<16x1xf32> to vector<16x16xf32>
    %121 = arith.subf %117, %120 : vector<16x16xf32>
    %122 = math.exp %121 : vector<16x16xf32>
    %cst_64 = arith.constant dense<0.000000e+00> : vector<16xf32>
    %123 = vector.multi_reduction <add>, %122, %cst_64 [1] : vector<16x16xf32> to vector<16xf32>
    %124 = vector.shape_cast %123 : vector<16xf32> to vector<16x1xf32>
    %125 = vector.broadcast %124 : vector<16x1xf32> to vector<16x16xf32>
    %126 = arith.divf %122, %125 : vector<16x16xf32>
    %cst_65 = arith.constant dense<0.000000e+00> : vector<16x8xf32>
    %127 = tpu.matmul %126, %98, %cst_65 {dimension_numbers = #tpu.dot_dimension_numbers<[1], [0], [0], [1], [0, 0, 1, 1], [], []>} : vector<16x16xf32>, vector<16x8xf32>, vector<16x8xf32> -> vector<16x8xf32>
    %c0_i32_66 = arith.constant 0 : i32
    %128 = vector.broadcast %c0_i32_66 : i32 to vector<16x8xi32>
    %129 = arith.cmpi sge, %102, %128 : vector<16x8xi32>
    %c4_i32 = arith.constant 4 : i32
    %130 = vector.broadcast %c4_i32 : i32 to vector<16x8xi32>
    %131 = arith.cmpi slt, %102, %130 : vector<16x8xi32>
    %132 = arith.andi %129, %131 : vector<16x8xi1>
    %cst_67 = arith.constant 0.000000e+00 : f32
    %133 = vector.broadcast %cst_67 : f32 to vector<16x8xf32>
    %134 = arith.select %132, %127, %133 : vector<16x8xi1>, vector<16x8xf32>
    %135 = arith.addf %103, %134 : vector<16x8xf32>
    %136 = vector.extract_strided_slice %100 {offsets = [0, 1], sizes = [16, 1], strides = [1, 1]} : vector<16x2xf32> to vector<16x1xf32>
    %137 = vector.extract_strided_slice %101 {offsets = [1, 0], sizes = [1, 16], strides = [1, 1]} : vector<2x16xf32> to vector<1x16xf32>
    %138 = vector.broadcast %136 : vector<16x1xf32> to vector<16x16xf32>
    %139 = vector.broadcast %137 : vector<1x16xf32> to vector<16x16xf32>
    %140 = arith.addf %138, %139 : vector<16x16xf32>
    %cst_68 = arith.constant 0.000000e+00 : f32
    %141 = vector.broadcast %cst_68 : f32 to vector<16x16xf32>
    %142 = arith.cmpf oge, %140, %141 : vector<16x16xf32>
    %cst_69 = arith.constant 2.000000e-01 : f32
    %143 = vector.broadcast %cst_69 : f32 to vector<16x16xf32>
    %144 = arith.mulf %143, %140 : vector<16x16xf32>
    %145 = arith.select %142, %140, %144 : vector<16x16xi1>, vector<16x16xf32>
    %cst_70 = arith.constant 0.000000e+00 : f32
    %146 = vector.broadcast %cst_70 : f32 to vector<16x16xf32>
    %147 = arith.cmpf ogt, %0, %146 : vector<16x16xf32>
    %cst_71 = arith.constant -1.000000e+30 : f32
    %148 = vector.broadcast %cst_71 : f32 to vector<16x16xf32>
    %149 = arith.select %147, %145, %148 : vector<16x16xi1>, vector<16x16xf32>
    %cst_72 = arith.constant dense<0xFF800000> : vector<16xf32>
    %150 = vector.multi_reduction <maximumf>, %149, %cst_72 [1] : vector<16x16xf32> to vector<16xf32>
    %151 = vector.shape_cast %150 : vector<16xf32> to vector<16x1xf32>
    %152 = vector.broadcast %151 : vector<16x1xf32> to vector<16x16xf32>
    %153 = arith.subf %149, %152 : vector<16x16xf32>
    %154 = math.exp %153 : vector<16x16xf32>
    %cst_73 = arith.constant dense<0.000000e+00> : vector<16xf32>
    %155 = vector.multi_reduction <add>, %154, %cst_73 [1] : vector<16x16xf32> to vector<16xf32>
    %156 = vector.shape_cast %155 : vector<16xf32> to vector<16x1xf32>
    %157 = vector.broadcast %156 : vector<16x1xf32> to vector<16x16xf32>
    %158 = arith.divf %154, %157 : vector<16x16xf32>
    %cst_74 = arith.constant dense<0.000000e+00> : vector<16x8xf32>
    %159 = tpu.matmul %158, %98, %cst_74 {dimension_numbers = #tpu.dot_dimension_numbers<[1], [0], [0], [1], [0, 0, 1, 1], [], []>} : vector<16x16xf32>, vector<16x8xf32>, vector<16x8xf32> -> vector<16x8xf32>
    %c4_i32_75 = arith.constant 4 : i32
    %160 = vector.broadcast %c4_i32_75 : i32 to vector<16x8xi32>
    %161 = arith.cmpi sge, %102, %160 : vector<16x8xi32>
    %c8_i32_76 = arith.constant 8 : i32
    %162 = vector.broadcast %c8_i32_76 : i32 to vector<16x8xi32>
    %163 = arith.cmpi slt, %102, %162 : vector<16x8xi32>
    %164 = arith.andi %161, %163 : vector<16x8xi1>
    %cst_77 = arith.constant 0.000000e+00 : f32
    %165 = vector.broadcast %cst_77 : f32 to vector<16x8xf32>
    %166 = arith.select %164, %159, %165 : vector<16x8xi1>, vector<16x8xf32>
    %167 = arith.addf %135, %166 : vector<16x8xf32>
    %168 = arith.addf %167, %99 : vector<16x8xf32>
    %169 = vector.broadcast %97 : vector<1x8xf32> to vector<16x8xf32>
    %170 = arith.addf %168, %169 : vector<16x8xf32>
    %171 = math.tanh %170 : vector<16x8xf32>
    %c0_78 = arith.constant 0 : index
    %c0_79 = arith.constant 0 : index
    %172 = vector.load %arg11[%c0_78, %c0_79] : memref<16x16xf32, #tpu.memory_space<vmem>>, vector<16x16xf32>
    %c0_80 = arith.constant 0 : index
    %c0_81 = arith.constant 0 : index
    %173 = vector.load %arg12[%c0_80, %c0_81] : memref<8x16xf32, #tpu.memory_space<vmem>>, vector<8x16xf32>
    %c0_82 = arith.constant 0 : index
    %c0_83 = arith.constant 0 : index
    %174 = vector.load %arg13[%c0_82, %c0_83] : memref<16x16xf32, #tpu.memory_space<vmem>>, vector<16x16xf32>
    %c0_84 = arith.constant 0 : index
    %c0_85 = arith.constant 0 : index
    %175 = vector.load %arg14[%c0_84, %c0_85] : memref<8x16xf32, #tpu.memory_space<vmem>>, vector<8x16xf32>
    %c0_86 = arith.constant 0 : index
    %c0_87 = arith.constant 0 : index
    %176 = vector.load %arg15[%c0_86, %c0_87] : memref<2x16xf32, #tpu.memory_space<vmem>>, vector<2x16xf32>
    %c0_88 = arith.constant 0 : index
    %c0_89 = arith.constant 0 : index
    %177 = vector.load %arg16[%c0_88, %c0_89] : memref<16x2xf32, #tpu.memory_space<vmem>>, vector<16x2xf32>
    %c0_90 = arith.constant 0 : index
    %c0_91 = arith.constant 0 : index
    %178 = vector.load %arg17[%c0_90, %c0_91] : memref<1x16xf32, #tpu.memory_space<vmem>>, vector<1x16xf32>
    %cst_92 = arith.constant dense<0.000000e+00> : vector<16x16xf32>
    %179 = tpu.matmul %92, %172, %cst_92 {dimension_numbers = #tpu.dot_dimension_numbers<[1], [0], [0], [1], [0, 0, 1, 1], [], []>} : vector<16x16xf32>, vector<16x16xf32>, vector<16x16xf32> -> vector<16x16xf32>
    %cst_93 = arith.constant dense<0.000000e+00> : vector<16x16xf32>
    %180 = tpu.matmul %92, %174, %cst_93 {dimension_numbers = #tpu.dot_dimension_numbers<[1], [0], [0], [1], [0, 0, 1, 1], [], []>} : vector<16x16xf32>, vector<16x16xf32>, vector<16x16xf32> -> vector<16x16xf32>
    %cst_94 = arith.constant dense<0.000000e+00> : vector<16x16xf32>
    %181 = tpu.matmul %171, %173, %cst_94 {dimension_numbers = #tpu.dot_dimension_numbers<[1], [0], [0], [1], [0, 0, 1, 1], [], []>} : vector<16x8xf32>, vector<8x16xf32>, vector<16x16xf32> -> vector<16x16xf32>
    %182 = arith.addf %179, %181 : vector<16x16xf32>
    %cst_95 = arith.constant dense<0.000000e+00> : vector<16x16xf32>
    %183 = tpu.matmul %171, %175, %cst_95 {dimension_numbers = #tpu.dot_dimension_numbers<[1], [0], [0], [1], [0, 0, 1, 1], [], []>} : vector<16x8xf32>, vector<8x16xf32>, vector<16x16xf32> -> vector<16x16xf32>
    %184 = arith.addf %180, %183 : vector<16x16xf32>
    %cst_96 = arith.constant dense<0.000000e+00> : vector<16x2xf32>
    %185 = tpu.matmul %182, %177, %cst_96 {dimension_numbers = #tpu.dot_dimension_numbers<[1], [0], [0], [1], [0, 0, 1, 1], [], []>} : vector<16x16xf32>, vector<16x2xf32>, vector<16x2xf32> -> vector<16x2xf32>
    %cst_97 = arith.constant dense<0.000000e+00> : vector<2x16xf32>
    %186 = tpu.matmul %176, %182, %cst_97 {dimension_numbers = #tpu.dot_dimension_numbers<[1], [1], [0], [0], [0, 0, 1, 0], [], []>} : vector<2x16xf32>, vector<16x16xf32>, vector<2x16xf32> -> vector<2x16xf32>
    %187 = tpu.iota {dimensions = array<i32: 1>} : vector<16x16xi32>
    %cst_98 = arith.constant 0.000000e+00 : f32
    %188 = vector.broadcast %cst_98 : f32 to vector<16x16xf32>
    %189 = vector.extract_strided_slice %185 {offsets = [0, 0], sizes = [16, 1], strides = [1, 1]} : vector<16x2xf32> to vector<16x1xf32>
    %190 = vector.extract_strided_slice %186 {offsets = [0, 0], sizes = [1, 16], strides = [1, 1]} : vector<2x16xf32> to vector<1x16xf32>
    %191 = vector.broadcast %189 : vector<16x1xf32> to vector<16x16xf32>
    %192 = vector.broadcast %190 : vector<1x16xf32> to vector<16x16xf32>
    %193 = arith.addf %191, %192 : vector<16x16xf32>
    %cst_99 = arith.constant 0.000000e+00 : f32
    %194 = vector.broadcast %cst_99 : f32 to vector<16x16xf32>
    %195 = arith.cmpf oge, %193, %194 : vector<16x16xf32>
    %cst_100 = arith.constant 2.000000e-01 : f32
    %196 = vector.broadcast %cst_100 : f32 to vector<16x16xf32>
    %197 = arith.mulf %196, %193 : vector<16x16xf32>
    %198 = arith.select %195, %193, %197 : vector<16x16xi1>, vector<16x16xf32>
    %cst_101 = arith.constant 0.000000e+00 : f32
    %199 = vector.broadcast %cst_101 : f32 to vector<16x16xf32>
    %200 = arith.cmpf ogt, %0, %199 : vector<16x16xf32>
    %cst_102 = arith.constant -1.000000e+30 : f32
    %201 = vector.broadcast %cst_102 : f32 to vector<16x16xf32>
    %202 = arith.select %200, %198, %201 : vector<16x16xi1>, vector<16x16xf32>
    %cst_103 = arith.constant dense<0xFF800000> : vector<16xf32>
    %203 = vector.multi_reduction <maximumf>, %202, %cst_103 [1] : vector<16x16xf32> to vector<16xf32>
    %204 = vector.shape_cast %203 : vector<16xf32> to vector<16x1xf32>
    %205 = vector.broadcast %204 : vector<16x1xf32> to vector<16x16xf32>
    %206 = arith.subf %202, %205 : vector<16x16xf32>
    %207 = math.exp %206 : vector<16x16xf32>
    %cst_104 = arith.constant dense<0.000000e+00> : vector<16xf32>
    %208 = vector.multi_reduction <add>, %207, %cst_104 [1] : vector<16x16xf32> to vector<16xf32>
    %209 = vector.shape_cast %208 : vector<16xf32> to vector<16x1xf32>
    %210 = vector.broadcast %209 : vector<16x1xf32> to vector<16x16xf32>
    %211 = arith.divf %207, %210 : vector<16x16xf32>
    %cst_105 = arith.constant dense<0.000000e+00> : vector<16x16xf32>
    %212 = tpu.matmul %211, %182, %cst_105 {dimension_numbers = #tpu.dot_dimension_numbers<[1], [0], [0], [1], [0, 0, 1, 1], [], []>} : vector<16x16xf32>, vector<16x16xf32>, vector<16x16xf32> -> vector<16x16xf32>
    %c0_i32_106 = arith.constant 0 : i32
    %213 = vector.broadcast %c0_i32_106 : i32 to vector<16x16xi32>
    %214 = arith.cmpi sge, %187, %213 : vector<16x16xi32>
    %c8_i32_107 = arith.constant 8 : i32
    %215 = vector.broadcast %c8_i32_107 : i32 to vector<16x16xi32>
    %216 = arith.cmpi slt, %187, %215 : vector<16x16xi32>
    %217 = arith.andi %214, %216 : vector<16x16xi1>
    %cst_108 = arith.constant 0.000000e+00 : f32
    %218 = vector.broadcast %cst_108 : f32 to vector<16x16xf32>
    %219 = arith.select %217, %212, %218 : vector<16x16xi1>, vector<16x16xf32>
    %220 = arith.addf %188, %219 : vector<16x16xf32>
    %221 = vector.extract_strided_slice %185 {offsets = [0, 1], sizes = [16, 1], strides = [1, 1]} : vector<16x2xf32> to vector<16x1xf32>
    %222 = vector.extract_strided_slice %186 {offsets = [1, 0], sizes = [1, 16], strides = [1, 1]} : vector<2x16xf32> to vector<1x16xf32>
    %223 = vector.broadcast %221 : vector<16x1xf32> to vector<16x16xf32>
    %224 = vector.broadcast %222 : vector<1x16xf32> to vector<16x16xf32>
    %225 = arith.addf %223, %224 : vector<16x16xf32>
    %cst_109 = arith.constant 0.000000e+00 : f32
    %226 = vector.broadcast %cst_109 : f32 to vector<16x16xf32>
    %227 = arith.cmpf oge, %225, %226 : vector<16x16xf32>
    %cst_110 = arith.constant 2.000000e-01 : f32
    %228 = vector.broadcast %cst_110 : f32 to vector<16x16xf32>
    %229 = arith.mulf %228, %225 : vector<16x16xf32>
    %230 = arith.select %227, %225, %229 : vector<16x16xi1>, vector<16x16xf32>
    %cst_111 = arith.constant 0.000000e+00 : f32
    %231 = vector.broadcast %cst_111 : f32 to vector<16x16xf32>
    %232 = arith.cmpf ogt, %0, %231 : vector<16x16xf32>
    %cst_112 = arith.constant -1.000000e+30 : f32
    %233 = vector.broadcast %cst_112 : f32 to vector<16x16xf32>
    %234 = arith.select %232, %230, %233 : vector<16x16xi1>, vector<16x16xf32>
    %cst_113 = arith.constant dense<0xFF800000> : vector<16xf32>
    %235 = vector.multi_reduction <maximumf>, %234, %cst_113 [1] : vector<16x16xf32> to vector<16xf32>
    %236 = vector.shape_cast %235 : vector<16xf32> to vector<16x1xf32>
    %237 = vector.broadcast %236 : vector<16x1xf32> to vector<16x16xf32>
    %238 = arith.subf %234, %237 : vector<16x16xf32>
    %239 = math.exp %238 : vector<16x16xf32>
    %cst_114 = arith.constant dense<0.000000e+00> : vector<16xf32>
    %240 = vector.multi_reduction <add>, %239, %cst_114 [1] : vector<16x16xf32> to vector<16xf32>
    %241 = vector.shape_cast %240 : vector<16xf32> to vector<16x1xf32>
    %242 = vector.broadcast %241 : vector<16x1xf32> to vector<16x16xf32>
    %243 = arith.divf %239, %242 : vector<16x16xf32>
    %cst_115 = arith.constant dense<0.000000e+00> : vector<16x16xf32>
    %244 = tpu.matmul %243, %182, %cst_115 {dimension_numbers = #tpu.dot_dimension_numbers<[1], [0], [0], [1], [0, 0, 1, 1], [], []>} : vector<16x16xf32>, vector<16x16xf32>, vector<16x16xf32> -> vector<16x16xf32>
    %c8_i32_116 = arith.constant 8 : i32
    %245 = vector.broadcast %c8_i32_116 : i32 to vector<16x16xi32>
    %246 = arith.cmpi sge, %187, %245 : vector<16x16xi32>
    %c16_i32_117 = arith.constant 16 : i32
    %247 = vector.broadcast %c16_i32_117 : i32 to vector<16x16xi32>
    %248 = arith.cmpi slt, %187, %247 : vector<16x16xi32>
    %249 = arith.andi %246, %248 : vector<16x16xi1>
    %cst_118 = arith.constant 0.000000e+00 : f32
    %250 = vector.broadcast %cst_118 : f32 to vector<16x16xf32>
    %251 = arith.select %249, %244, %250 : vector<16x16xi1>, vector<16x16xf32>
    %252 = arith.addf %220, %251 : vector<16x16xf32>
    %253 = arith.addf %252, %184 : vector<16x16xf32>
    %254 = vector.broadcast %178 : vector<1x16xf32> to vector<16x16xf32>
    %255 = arith.addf %253, %254 : vector<16x16xf32>
    %cst_119 = arith.constant 0.000000e+00 : f32
    %256 = vector.broadcast %cst_119 : f32 to vector<16x16xf32>
    %257 = arith.cmpf ogt, %255, %256 : vector<16x16xf32>
    %258 = math.exp %255 : vector<16x16xf32>
    %cst_120 = arith.constant 1.000000e+00 : f32
    %259 = vector.broadcast %cst_120 : f32 to vector<16x16xf32>
    %260 = arith.subf %258, %259 : vector<16x16xf32>
    %261 = arith.select %257, %255, %260 : vector<16x16xi1>, vector<16x16xf32>
    %c0_121 = arith.constant 0 : index
    %c0_122 = arith.constant 0 : index
    %262 = vector.load %arg30[%c0_121, %c0_122] : memref<8x12xf32, #tpu.memory_space<vmem>>, vector<8x12xf32>
    %c0_123 = arith.constant 0 : index
    %c0_124 = arith.constant 0 : index
    %263 = vector.load %arg31[%c0_123, %c0_124] : memref<8x12xf32, #tpu.memory_space<vmem>>, vector<8x12xf32>
    %c0_125 = arith.constant 0 : index
    %c0_126 = arith.constant 0 : index
    %264 = vector.load %arg32[%c0_125, %c0_126] : memref<2x12xf32, #tpu.memory_space<vmem>>, vector<2x12xf32>
    %c0_127 = arith.constant 0 : index
    %c0_128 = arith.constant 0 : index
    %265 = vector.load %arg33[%c0_127, %c0_128] : memref<12x2xf32, #tpu.memory_space<vmem>>, vector<12x2xf32>
    %c0_129 = arith.constant 0 : index
    %c0_130 = arith.constant 0 : index
    %266 = vector.load %arg34[%c0_129, %c0_130] : memref<1x12xf32, #tpu.memory_space<vmem>>, vector<1x12xf32>
    %cst_131 = arith.constant dense<0.000000e+00> : vector<16x12xf32>
    %267 = tpu.matmul %171, %262, %cst_131 {dimension_numbers = #tpu.dot_dimension_numbers<[1], [0], [0], [1], [0, 0, 1, 1], [], []>} : vector<16x8xf32>, vector<8x12xf32>, vector<16x12xf32> -> vector<16x12xf32>
    %cst_132 = arith.constant dense<0.000000e+00> : vector<16x12xf32>
    %268 = tpu.matmul %171, %263, %cst_132 {dimension_numbers = #tpu.dot_dimension_numbers<[1], [0], [0], [1], [0, 0, 1, 1], [], []>} : vector<16x8xf32>, vector<8x12xf32>, vector<16x12xf32> -> vector<16x12xf32>
    %cst_133 = arith.constant dense<0.000000e+00> : vector<16x2xf32>
    %269 = tpu.matmul %267, %265, %cst_133 {dimension_numbers = #tpu.dot_dimension_numbers<[1], [0], [0], [1], [0, 0, 1, 1], [], []>} : vector<16x12xf32>, vector<12x2xf32>, vector<16x2xf32> -> vector<16x2xf32>
    %cst_134 = arith.constant dense<0.000000e+00> : vector<2x16xf32>
    %270 = tpu.matmul %264, %267, %cst_134 {dimension_numbers = #tpu.dot_dimension_numbers<[1], [1], [0], [0], [0, 0, 1, 0], [], []>} : vector<2x12xf32>, vector<16x12xf32>, vector<2x16xf32> -> vector<2x16xf32>
    %271 = tpu.iota {dimensions = array<i32: 1>} : vector<16x12xi32>
    %cst_135 = arith.constant 0.000000e+00 : f32
    %272 = vector.broadcast %cst_135 : f32 to vector<16x12xf32>
    %273 = vector.extract_strided_slice %269 {offsets = [0, 0], sizes = [16, 1], strides = [1, 1]} : vector<16x2xf32> to vector<16x1xf32>
    %274 = vector.extract_strided_slice %270 {offsets = [0, 0], sizes = [1, 16], strides = [1, 1]} : vector<2x16xf32> to vector<1x16xf32>
    %275 = vector.broadcast %273 : vector<16x1xf32> to vector<16x16xf32>
    %276 = vector.broadcast %274 : vector<1x16xf32> to vector<16x16xf32>
    %277 = arith.addf %275, %276 : vector<16x16xf32>
    %cst_136 = arith.constant 0.000000e+00 : f32
    %278 = vector.broadcast %cst_136 : f32 to vector<16x16xf32>
    %279 = arith.cmpf oge, %277, %278 : vector<16x16xf32>
    %cst_137 = arith.constant 2.000000e-01 : f32
    %280 = vector.broadcast %cst_137 : f32 to vector<16x16xf32>
    %281 = arith.mulf %280, %277 : vector<16x16xf32>
    %282 = arith.select %279, %277, %281 : vector<16x16xi1>, vector<16x16xf32>
    %cst_138 = arith.constant 0.000000e+00 : f32
    %283 = vector.broadcast %cst_138 : f32 to vector<16x16xf32>
    %284 = arith.cmpf ogt, %0, %283 : vector<16x16xf32>
    %cst_139 = arith.constant -1.000000e+30 : f32
    %285 = vector.broadcast %cst_139 : f32 to vector<16x16xf32>
    %286 = arith.select %284, %282, %285 : vector<16x16xi1>, vector<16x16xf32>
    %cst_140 = arith.constant dense<0xFF800000> : vector<16xf32>
    %287 = vector.multi_reduction <maximumf>, %286, %cst_140 [1] : vector<16x16xf32> to vector<16xf32>
    %288 = vector.shape_cast %287 : vector<16xf32> to vector<16x1xf32>
    %289 = vector.broadcast %288 : vector<16x1xf32> to vector<16x16xf32>
    %290 = arith.subf %286, %289 : vector<16x16xf32>
    %291 = math.exp %290 : vector<16x16xf32>
    %cst_141 = arith.constant dense<0.000000e+00> : vector<16xf32>
    %292 = vector.multi_reduction <add>, %291, %cst_141 [1] : vector<16x16xf32> to vector<16xf32>
    %293 = vector.shape_cast %292 : vector<16xf32> to vector<16x1xf32>
    %294 = vector.broadcast %293 : vector<16x1xf32> to vector<16x16xf32>
    %295 = arith.divf %291, %294 : vector<16x16xf32>
    %cst_142 = arith.constant dense<0.000000e+00> : vector<16x12xf32>
    %296 = tpu.matmul %295, %267, %cst_142 {dimension_numbers = #tpu.dot_dimension_numbers<[1], [0], [0], [1], [0, 0, 1, 1], [], []>} : vector<16x16xf32>, vector<16x12xf32>, vector<16x12xf32> -> vector<16x12xf32>
    %c0_i32_143 = arith.constant 0 : i32
    %297 = vector.broadcast %c0_i32_143 : i32 to vector<16x12xi32>
    %298 = arith.cmpi sge, %271, %297 : vector<16x12xi32>
    %c6_i32 = arith.constant 6 : i32
    %299 = vector.broadcast %c6_i32 : i32 to vector<16x12xi32>
    %300 = arith.cmpi slt, %271, %299 : vector<16x12xi32>
    %301 = arith.andi %298, %300 : vector<16x12xi1>
    %cst_144 = arith.constant 0.000000e+00 : f32
    %302 = vector.broadcast %cst_144 : f32 to vector<16x12xf32>
    %303 = arith.select %301, %296, %302 : vector<16x12xi1>, vector<16x12xf32>
    %304 = arith.addf %272, %303 : vector<16x12xf32>
    %305 = vector.extract_strided_slice %269 {offsets = [0, 1], sizes = [16, 1], strides = [1, 1]} : vector<16x2xf32> to vector<16x1xf32>
    %306 = vector.extract_strided_slice %270 {offsets = [1, 0], sizes = [1, 16], strides = [1, 1]} : vector<2x16xf32> to vector<1x16xf32>
    %307 = vector.broadcast %305 : vector<16x1xf32> to vector<16x16xf32>
    %308 = vector.broadcast %306 : vector<1x16xf32> to vector<16x16xf32>
    %309 = arith.addf %307, %308 : vector<16x16xf32>
    %cst_145 = arith.constant 0.000000e+00 : f32
    %310 = vector.broadcast %cst_145 : f32 to vector<16x16xf32>
    %311 = arith.cmpf oge, %309, %310 : vector<16x16xf32>
    %cst_146 = arith.constant 2.000000e-01 : f32
    %312 = vector.broadcast %cst_146 : f32 to vector<16x16xf32>
    %313 = arith.mulf %312, %309 : vector<16x16xf32>
    %314 = arith.select %311, %309, %313 : vector<16x16xi1>, vector<16x16xf32>
    %cst_147 = arith.constant 0.000000e+00 : f32
    %315 = vector.broadcast %cst_147 : f32 to vector<16x16xf32>
    %316 = arith.cmpf ogt, %0, %315 : vector<16x16xf32>
    %cst_148 = arith.constant -1.000000e+30 : f32
    %317 = vector.broadcast %cst_148 : f32 to vector<16x16xf32>
    %318 = arith.select %316, %314, %317 : vector<16x16xi1>, vector<16x16xf32>
    %cst_149 = arith.constant dense<0xFF800000> : vector<16xf32>
    %319 = vector.multi_reduction <maximumf>, %318, %cst_149 [1] : vector<16x16xf32> to vector<16xf32>
    %320 = vector.shape_cast %319 : vector<16xf32> to vector<16x1xf32>
    %321 = vector.broadcast %320 : vector<16x1xf32> to vector<16x16xf32>
    %322 = arith.subf %318, %321 : vector<16x16xf32>
    %323 = math.exp %322 : vector<16x16xf32>
    %cst_150 = arith.constant dense<0.000000e+00> : vector<16xf32>
    %324 = vector.multi_reduction <add>, %323, %cst_150 [1] : vector<16x16xf32> to vector<16xf32>
    %325 = vector.shape_cast %324 : vector<16xf32> to vector<16x1xf32>
    %326 = vector.broadcast %325 : vector<16x1xf32> to vector<16x16xf32>
    %327 = arith.divf %323, %326 : vector<16x16xf32>
    %cst_151 = arith.constant dense<0.000000e+00> : vector<16x12xf32>
    %328 = tpu.matmul %327, %267, %cst_151 {dimension_numbers = #tpu.dot_dimension_numbers<[1], [0], [0], [1], [0, 0, 1, 1], [], []>} : vector<16x16xf32>, vector<16x12xf32>, vector<16x12xf32> -> vector<16x12xf32>
    %c6_i32_152 = arith.constant 6 : i32
    %329 = vector.broadcast %c6_i32_152 : i32 to vector<16x12xi32>
    %330 = arith.cmpi sge, %271, %329 : vector<16x12xi32>
    %c12_i32 = arith.constant 12 : i32
    %331 = vector.broadcast %c12_i32 : i32 to vector<16x12xi32>
    %332 = arith.cmpi slt, %271, %331 : vector<16x12xi32>
    %333 = arith.andi %330, %332 : vector<16x12xi1>
    %cst_153 = arith.constant 0.000000e+00 : f32
    %334 = vector.broadcast %cst_153 : f32 to vector<16x12xf32>
    %335 = arith.select %333, %328, %334 : vector<16x12xi1>, vector<16x12xf32>
    %336 = arith.addf %304, %335 : vector<16x12xf32>
    %337 = arith.addf %336, %268 : vector<16x12xf32>
    %338 = vector.broadcast %266 : vector<1x12xf32> to vector<16x12xf32>
    %339 = arith.addf %337, %338 : vector<16x12xf32>
    %340 = math.tanh %339 : vector<16x12xf32>
    %c0_154 = arith.constant 0 : index
    %c0_155 = arith.constant 0 : index
    %341 = vector.load %arg18[%c0_154, %c0_155] : memref<16x16xf32, #tpu.memory_space<vmem>>, vector<16x16xf32>
    %c0_156 = arith.constant 0 : index
    %c0_157 = arith.constant 0 : index
    %342 = vector.load %arg19[%c0_156, %c0_157] : memref<12x16xf32, #tpu.memory_space<vmem>>, vector<12x16xf32>
    %c0_158 = arith.constant 0 : index
    %c0_159 = arith.constant 0 : index
    %343 = vector.load %arg20[%c0_158, %c0_159] : memref<16x16xf32, #tpu.memory_space<vmem>>, vector<16x16xf32>
    %c0_160 = arith.constant 0 : index
    %c0_161 = arith.constant 0 : index
    %344 = vector.load %arg21[%c0_160, %c0_161] : memref<12x16xf32, #tpu.memory_space<vmem>>, vector<12x16xf32>
    %c0_162 = arith.constant 0 : index
    %c0_163 = arith.constant 0 : index
    %345 = vector.load %arg22[%c0_162, %c0_163] : memref<2x16xf32, #tpu.memory_space<vmem>>, vector<2x16xf32>
    %c0_164 = arith.constant 0 : index
    %c0_165 = arith.constant 0 : index
    %346 = vector.load %arg23[%c0_164, %c0_165] : memref<16x2xf32, #tpu.memory_space<vmem>>, vector<16x2xf32>
    %c0_166 = arith.constant 0 : index
    %c0_167 = arith.constant 0 : index
    %347 = vector.load %arg24[%c0_166, %c0_167] : memref<1x16xf32, #tpu.memory_space<vmem>>, vector<1x16xf32>
    %cst_168 = arith.constant dense<0.000000e+00> : vector<16x16xf32>
    %348 = tpu.matmul %261, %341, %cst_168 {dimension_numbers = #tpu.dot_dimension_numbers<[1], [0], [0], [1], [0, 0, 1, 1], [], []>} : vector<16x16xf32>, vector<16x16xf32>, vector<16x16xf32> -> vector<16x16xf32>
    %cst_169 = arith.constant dense<0.000000e+00> : vector<16x16xf32>
    %349 = tpu.matmul %261, %343, %cst_169 {dimension_numbers = #tpu.dot_dimension_numbers<[1], [0], [0], [1], [0, 0, 1, 1], [], []>} : vector<16x16xf32>, vector<16x16xf32>, vector<16x16xf32> -> vector<16x16xf32>
    %cst_170 = arith.constant dense<0.000000e+00> : vector<16x16xf32>
    %350 = tpu.matmul %340, %342, %cst_170 {dimension_numbers = #tpu.dot_dimension_numbers<[1], [0], [0], [1], [0, 0, 1, 1], [], []>} : vector<16x12xf32>, vector<12x16xf32>, vector<16x16xf32> -> vector<16x16xf32>
    %351 = arith.addf %348, %350 : vector<16x16xf32>
    %cst_171 = arith.constant dense<0.000000e+00> : vector<16x16xf32>
    %352 = tpu.matmul %340, %344, %cst_171 {dimension_numbers = #tpu.dot_dimension_numbers<[1], [0], [0], [1], [0, 0, 1, 1], [], []>} : vector<16x12xf32>, vector<12x16xf32>, vector<16x16xf32> -> vector<16x16xf32>
    %353 = arith.addf %349, %352 : vector<16x16xf32>
    %cst_172 = arith.constant dense<0.000000e+00> : vector<16x2xf32>
    %354 = tpu.matmul %351, %346, %cst_172 {dimension_numbers = #tpu.dot_dimension_numbers<[1], [0], [0], [1], [0, 0, 1, 1], [], []>} : vector<16x16xf32>, vector<16x2xf32>, vector<16x2xf32> -> vector<16x2xf32>
    %cst_173 = arith.constant dense<0.000000e+00> : vector<2x16xf32>
    %355 = tpu.matmul %345, %351, %cst_173 {dimension_numbers = #tpu.dot_dimension_numbers<[1], [1], [0], [0], [0, 0, 1, 0], [], []>} : vector<2x16xf32>, vector<16x16xf32>, vector<2x16xf32> -> vector<2x16xf32>
    %356 = tpu.iota {dimensions = array<i32: 1>} : vector<16x16xi32>
    %cst_174 = arith.constant 0.000000e+00 : f32
    %357 = vector.broadcast %cst_174 : f32 to vector<16x16xf32>
    %358 = vector.extract_strided_slice %354 {offsets = [0, 0], sizes = [16, 1], strides = [1, 1]} : vector<16x2xf32> to vector<16x1xf32>
    %359 = vector.extract_strided_slice %355 {offsets = [0, 0], sizes = [1, 16], strides = [1, 1]} : vector<2x16xf32> to vector<1x16xf32>
    %360 = vector.broadcast %358 : vector<16x1xf32> to vector<16x16xf32>
    %361 = vector.broadcast %359 : vector<1x16xf32> to vector<16x16xf32>
    %362 = arith.addf %360, %361 : vector<16x16xf32>
    %cst_175 = arith.constant 0.000000e+00 : f32
    %363 = vector.broadcast %cst_175 : f32 to vector<16x16xf32>
    %364 = arith.cmpf oge, %362, %363 : vector<16x16xf32>
    %cst_176 = arith.constant 2.000000e-01 : f32
    %365 = vector.broadcast %cst_176 : f32 to vector<16x16xf32>
    %366 = arith.mulf %365, %362 : vector<16x16xf32>
    %367 = arith.select %364, %362, %366 : vector<16x16xi1>, vector<16x16xf32>
    %cst_177 = arith.constant 0.000000e+00 : f32
    %368 = vector.broadcast %cst_177 : f32 to vector<16x16xf32>
    %369 = arith.cmpf ogt, %0, %368 : vector<16x16xf32>
    %cst_178 = arith.constant -1.000000e+30 : f32
    %370 = vector.broadcast %cst_178 : f32 to vector<16x16xf32>
    %371 = arith.select %369, %367, %370 : vector<16x16xi1>, vector<16x16xf32>
    %cst_179 = arith.constant dense<0xFF800000> : vector<16xf32>
    %372 = vector.multi_reduction <maximumf>, %371, %cst_179 [1] : vector<16x16xf32> to vector<16xf32>
    %373 = vector.shape_cast %372 : vector<16xf32> to vector<16x1xf32>
    %374 = vector.broadcast %373 : vector<16x1xf32> to vector<16x16xf32>
    %375 = arith.subf %371, %374 : vector<16x16xf32>
    %376 = math.exp %375 : vector<16x16xf32>
    %cst_180 = arith.constant dense<0.000000e+00> : vector<16xf32>
    %377 = vector.multi_reduction <add>, %376, %cst_180 [1] : vector<16x16xf32> to vector<16xf32>
    %378 = vector.shape_cast %377 : vector<16xf32> to vector<16x1xf32>
    %379 = vector.broadcast %378 : vector<16x1xf32> to vector<16x16xf32>
    %380 = arith.divf %376, %379 : vector<16x16xf32>
    %cst_181 = arith.constant dense<0.000000e+00> : vector<16x16xf32>
    %381 = tpu.matmul %380, %351, %cst_181 {dimension_numbers = #tpu.dot_dimension_numbers<[1], [0], [0], [1], [0, 0, 1, 1], [], []>} : vector<16x16xf32>, vector<16x16xf32>, vector<16x16xf32> -> vector<16x16xf32>
    %c0_i32_182 = arith.constant 0 : i32
    %382 = vector.broadcast %c0_i32_182 : i32 to vector<16x16xi32>
    %383 = arith.cmpi sge, %356, %382 : vector<16x16xi32>
    %c8_i32_183 = arith.constant 8 : i32
    %384 = vector.broadcast %c8_i32_183 : i32 to vector<16x16xi32>
    %385 = arith.cmpi slt, %356, %384 : vector<16x16xi32>
    %386 = arith.andi %383, %385 : vector<16x16xi1>
    %cst_184 = arith.constant 0.000000e+00 : f32
    %387 = vector.broadcast %cst_184 : f32 to vector<16x16xf32>
    %388 = arith.select %386, %381, %387 : vector<16x16xi1>, vector<16x16xf32>
    %389 = arith.addf %357, %388 : vector<16x16xf32>
    %390 = vector.extract_strided_slice %354 {offsets = [0, 1], sizes = [16, 1], strides = [1, 1]} : vector<16x2xf32> to vector<16x1xf32>
    %391 = vector.extract_strided_slice %355 {offsets = [1, 0], sizes = [1, 16], strides = [1, 1]} : vector<2x16xf32> to vector<1x16xf32>
    %392 = vector.broadcast %390 : vector<16x1xf32> to vector<16x16xf32>
    %393 = vector.broadcast %391 : vector<1x16xf32> to vector<16x16xf32>
    %394 = arith.addf %392, %393 : vector<16x16xf32>
    %cst_185 = arith.constant 0.000000e+00 : f32
    %395 = vector.broadcast %cst_185 : f32 to vector<16x16xf32>
    %396 = arith.cmpf oge, %394, %395 : vector<16x16xf32>
    %cst_186 = arith.constant 2.000000e-01 : f32
    %397 = vector.broadcast %cst_186 : f32 to vector<16x16xf32>
    %398 = arith.mulf %397, %394 : vector<16x16xf32>
    %399 = arith.select %396, %394, %398 : vector<16x16xi1>, vector<16x16xf32>
    %cst_187 = arith.constant 0.000000e+00 : f32
    %400 = vector.broadcast %cst_187 : f32 to vector<16x16xf32>
    %401 = arith.cmpf ogt, %0, %400 : vector<16x16xf32>
    %cst_188 = arith.constant -1.000000e+30 : f32
    %402 = vector.broadcast %cst_188 : f32 to vector<16x16xf32>
    %403 = arith.select %401, %399, %402 : vector<16x16xi1>, vector<16x16xf32>
    %cst_189 = arith.constant dense<0xFF800000> : vector<16xf32>
    %404 = vector.multi_reduction <maximumf>, %403, %cst_189 [1] : vector<16x16xf32> to vector<16xf32>
    %405 = vector.shape_cast %404 : vector<16xf32> to vector<16x1xf32>
    %406 = vector.broadcast %405 : vector<16x1xf32> to vector<16x16xf32>
    %407 = arith.subf %403, %406 : vector<16x16xf32>
    %408 = math.exp %407 : vector<16x16xf32>
    %cst_190 = arith.constant dense<0.000000e+00> : vector<16xf32>
    %409 = vector.multi_reduction <add>, %408, %cst_190 [1] : vector<16x16xf32> to vector<16xf32>
    %410 = vector.shape_cast %409 : vector<16xf32> to vector<16x1xf32>
    %411 = vector.broadcast %410 : vector<16x1xf32> to vector<16x16xf32>
    %412 = arith.divf %408, %411 : vector<16x16xf32>
    %cst_191 = arith.constant dense<0.000000e+00> : vector<16x16xf32>
    %413 = tpu.matmul %412, %351, %cst_191 {dimension_numbers = #tpu.dot_dimension_numbers<[1], [0], [0], [1], [0, 0, 1, 1], [], []>} : vector<16x16xf32>, vector<16x16xf32>, vector<16x16xf32> -> vector<16x16xf32>
    %c8_i32_192 = arith.constant 8 : i32
    %414 = vector.broadcast %c8_i32_192 : i32 to vector<16x16xi32>
    %415 = arith.cmpi sge, %356, %414 : vector<16x16xi32>
    %c16_i32_193 = arith.constant 16 : i32
    %416 = vector.broadcast %c16_i32_193 : i32 to vector<16x16xi32>
    %417 = arith.cmpi slt, %356, %416 : vector<16x16xi32>
    %418 = arith.andi %415, %417 : vector<16x16xi1>
    %cst_194 = arith.constant 0.000000e+00 : f32
    %419 = vector.broadcast %cst_194 : f32 to vector<16x16xf32>
    %420 = arith.select %418, %413, %419 : vector<16x16xi1>, vector<16x16xf32>
    %421 = arith.addf %389, %420 : vector<16x16xf32>
    %422 = arith.addf %421, %353 : vector<16x16xf32>
    %423 = vector.broadcast %347 : vector<1x16xf32> to vector<16x16xf32>
    %424 = arith.addf %422, %423 : vector<16x16xf32>
    %cst_195 = arith.constant 0.000000e+00 : f32
    %425 = vector.broadcast %cst_195 : f32 to vector<16x16xf32>
    %426 = arith.cmpf ogt, %424, %425 : vector<16x16xf32>
    %427 = math.exp %424 : vector<16x16xf32>
    %cst_196 = arith.constant 1.000000e+00 : f32
    %428 = vector.broadcast %cst_196 : f32 to vector<16x16xf32>
    %429 = arith.subf %427, %428 : vector<16x16xf32>
    %430 = arith.select %426, %424, %429 : vector<16x16xi1>, vector<16x16xf32>
    %431 = vector.extract_strided_slice %430 {offsets = [0, 0], sizes = [16, 8], strides = [1, 1]} : vector<16x16xf32> to vector<16x8xf32>
    %432 = vector.extract_strided_slice %430 {offsets = [0, 8], sizes = [16, 8], strides = [1, 1]} : vector<16x16xf32> to vector<16x8xf32>
    %433 = arith.addf %431, %432 : vector<16x8xf32>
    %cst_197 = arith.constant 5.000000e-01 : f32
    %434 = vector.broadcast %cst_197 : f32 to vector<16x8xf32>
    %435 = arith.mulf %433, %434 : vector<16x8xf32>
    %c0_198 = arith.constant 0 : index
    %c0_199 = arith.constant 0 : index
    %436 = vector.load %arg35[%c0_198, %c0_199] : memref<8x3xf32, #tpu.memory_space<vmem>>, vector<8x3xf32>
    %cst_200 = arith.constant dense<0.000000e+00> : vector<16x3xf32>
    %437 = tpu.matmul %435, %436, %cst_200 {dimension_numbers = #tpu.dot_dimension_numbers<[1], [0], [0], [1], [0, 0, 1, 1], [], []>} : vector<16x8xf32>, vector<8x3xf32>, vector<16x3xf32> -> vector<16x3xf32>
    %c0_201 = arith.constant 0 : index
    %c0_202 = arith.constant 0 : index
    %438 = vector.load %arg36[%c0_201, %c0_202] : memref<1x3xf32, #tpu.memory_space<vmem>>, vector<1x3xf32>
    %439 = vector.broadcast %438 : vector<1x3xf32> to vector<16x3xf32>
    %440 = arith.addf %437, %439 : vector<16x3xf32>
    %c0_203 = arith.constant 0 : index
    %c0_204 = arith.constant 0 : index
    %441 = vector.load %arg37[%c0_203, %c0_204] : memref<16x3xf32, #tpu.memory_space<vmem>>, vector<16x3xf32>
    tpu.vector_store %arg37[%c0_203, %c0_204], %440 {strides = array<i32>} : memref<16x3xf32, #tpu.memory_space<vmem>>, vector<16x3xf32>,
    %c0_205 = arith.constant 0 : index
    %c0_206 = arith.constant 0 : index
    %442 = vector.load %arg38[%c0_205, %c0_206] : memref<16x8xf32, #tpu.memory_space<vmem>>, vector<16x8xf32>
    tpu.vector_store %arg38[%c0_205, %c0_206], %435 {strides = array<i32>} : memref<16x8xf32, #tpu.memory_space<vmem>>, vector<16x8xf32>,
    %c0_207 = arith.constant 0 : index
    %c0_208 = arith.constant 0 : index
    %443 = vector.load %arg39[%c0_207, %c0_208] : memref<16x12xf32, #tpu.memory_space<vmem>>, vector<16x12xf32>
    tpu.vector_store %arg39[%c0_207, %c0_208], %340 {strides = array<i32>} : memref<16x12xf32, #tpu.memory_space<vmem>>, vector<16x12xf32>,
    return
  }
  func.func @transform_0(%arg0: i32) -> (i32, i32) {
    %c0_i32 = arith.constant 0 : i32
    %c0_i32_0 = arith.constant 0 : i32
    %c0_i32_1 = arith.constant 0 : i32
    return %c0_i32, %c0_i32_0 : i32, i32
  }
  func.func @transform_1(%arg0: i32) -> (i32, i32) {
    %c0_i32 = arith.constant 0 : i32
    %c0_i32_0 = arith.constant 0 : i32
    %c0_i32_1 = arith.constant 0 : i32
    return %c0_i32, %c0_i32_0 : i32, i32
  }
  func.func @transform_2(%arg0: i32) -> (i32, i32) {
    %c0_i32 = arith.constant 0 : i32
    %c0_i32_0 = arith.constant 0 : i32
    %c0_i32_1 = arith.constant 0 : i32
    return %c0_i32, %c0_i32_0 : i32, i32
  }
  func.func @transform_3(%arg0: i32) -> (i32, i32) {
    %c0_i32 = arith.constant 0 : i32
    %c0_i32_0 = arith.constant 0 : i32
    %c0_i32_1 = arith.constant 0 : i32
    return %c0_i32, %c0_i32_0 : i32, i32
  }
  func.func @transform_4(%arg0: i32) -> (i32, i32) {
    %c0_i32 = arith.constant 0 : i32
    %c0_i32_0 = arith.constant 0 : i32
    %c0_i32_1 = arith.constant 0 : i32
    return %c0_i32, %c0_i32_0 : i32, i32
  }
  func.func @transform_5(%arg0: i32) -> (i32, i32) {
    %c0_i32 = arith.constant 0 : i32
    %c0_i32_0 = arith.constant 0 : i32
    %c0_i32_1 = arith.constant 0 : i32
    return %c0_i32, %c0_i32_0 : i32, i32
  }
  func.func @transform_6(%arg0: i32) -> (i32, i32) {
    %c0_i32 = arith.constant 0 : i32
    %c0_i32_0 = arith.constant 0 : i32
    %c0_i32_1 = arith.constant 0 : i32
    return %c0_i32, %c0_i32_0 : i32, i32
  }
  func.func @transform_7(%arg0: i32) -> (i32, i32) {
    %c0_i32 = arith.constant 0 : i32
    %c0_i32_0 = arith.constant 0 : i32
    %c0_i32_1 = arith.constant 0 : i32
    return %c0_i32, %c0_i32_0 : i32, i32
  }
  func.func @transform_8(%arg0: i32) -> (i32, i32) {
    %c0_i32 = arith.constant 0 : i32
    %c0_i32_0 = arith.constant 0 : i32
    %c0_i32_1 = arith.constant 0 : i32
    return %c0_i32, %c0_i32_0 : i32, i32
  }
  func.func @transform_9(%arg0: i32) -> (i32, i32) {
    %c0_i32 = arith.constant 0 : i32
    %c0_i32_0 = arith.constant 0 : i32
    %c0_i32_1 = arith.constant 0 : i32
    return %c0_i32, %c0_i32_0 : i32, i32
  }
  func.func @transform_10(%arg0: i32) -> (i32, i32) {
    %c0_i32 = arith.constant 0 : i32
    %c0_i32_0 = arith.constant 0 : i32
    %c0_i32_1 = arith.constant 0 : i32
    return %c0_i32, %c0_i32_0 : i32, i32
  }
  func.func @transform_11(%arg0: i32) -> (i32, i32) {
    %c0_i32 = arith.constant 0 : i32
    %c0_i32_0 = arith.constant 0 : i32
    %c0_i32_1 = arith.constant 0 : i32
    return %c0_i32, %c0_i32_0 : i32, i32
  }
  func.func @transform_12(%arg0: i32) -> (i32, i32) {
    %c0_i32 = arith.constant 0 : i32
    %c0_i32_0 = arith.constant 0 : i32
    %c0_i32_1 = arith.constant 0 : i32
    return %c0_i32, %c0_i32_0 : i32, i32
  }
  func.func @transform_13(%arg0: i32) -> (i32, i32) {
    %c0_i32 = arith.constant 0 : i32
    %c0_i32_0 = arith.constant 0 : i32
    %c0_i32_1 = arith.constant 0 : i32
    return %c0_i32, %c0_i32_0 : i32, i32
  }
  func.func @transform_14(%arg0: i32) -> (i32, i32) {
    %c0_i32 = arith.constant 0 : i32
    %c0_i32_0 = arith.constant 0 : i32
    %c0_i32_1 = arith.constant 0 : i32
    return %c0_i32, %c0_i32_0 : i32, i32
  }
  func.func @transform_15(%arg0: i32) -> (i32, i32) {
    %c0_i32 = arith.constant 0 : i32
    %c0_i32_0 = arith.constant 0 : i32
    %c0_i32_1 = arith.constant 0 : i32
    return %c0_i32, %c0_i32_0 : i32, i32
  }
  func.func @transform_16(%arg0: i32) -> (i32, i32) {
    %c0_i32 = arith.constant 0 : i32
    %c0_i32_0 = arith.constant 0 : i32
    %c0_i32_1 = arith.constant 0 : i32
    return %c0_i32, %c0_i32_0 : i32, i32
  }
  func.func @transform_17(%arg0: i32) -> (i32, i32) {
    %c0_i32 = arith.constant 0 : i32
    %c0_i32_0 = arith.constant 0 : i32
    %c0_i32_1 = arith.constant 0 : i32
    return %c0_i32, %c0_i32_0 : i32, i32
  }
  func.func @transform_18(%arg0: i32) -> (i32, i32) {
    %c0_i32 = arith.constant 0 : i32
    %c0_i32_0 = arith.constant 0 : i32
    %c0_i32_1 = arith.constant 0 : i32
    return %c0_i32, %c0_i32_0 : i32, i32
  }
  func.func @transform_19(%arg0: i32) -> (i32, i32) {
    %c0_i32 = arith.constant 0 : i32
    %c0_i32_0 = arith.constant 0 : i32
    %c0_i32_1 = arith.constant 0 : i32
    return %c0_i32, %c0_i32_0 : i32, i32
  }
  func.func @transform_20(%arg0: i32) -> (i32, i32) {
    %c0_i32 = arith.constant 0 : i32
    %c0_i32_0 = arith.constant 0 : i32
    %c0_i32_1 = arith.constant 0 : i32
    return %c0_i32, %c0_i32_0 : i32, i32
  }
  func.func @transform_21(%arg0: i32) -> (i32, i32) {
    %c0_i32 = arith.constant 0 : i32
    %c0_i32_0 = arith.constant 0 : i32
    %c0_i32_1 = arith.constant 0 : i32
    return %c0_i32, %c0_i32_0 : i32, i32
  }
  func.func @transform_22(%arg0: i32) -> (i32, i32) {
    %c0_i32 = arith.constant 0 : i32
    %c0_i32_0 = arith.constant 0 : i32
    %c0_i32_1 = arith.constant 0 : i32
    return %c0_i32, %c0_i32_0 : i32, i32
  }
  func.func @transform_23(%arg0: i32) -> (i32, i32) {
    %c0_i32 = arith.constant 0 : i32
    %c0_i32_0 = arith.constant 0 : i32
    %c0_i32_1 = arith.constant 0 : i32
    return %c0_i32, %c0_i32_0 : i32, i32
  }
  func.func @transform_24(%arg0: i32) -> (i32, i32) {
    %c0_i32 = arith.constant 0 : i32
    %c0_i32_0 = arith.constant 0 : i32
    %c0_i32_1 = arith.constant 0 : i32
    return %c0_i32, %c0_i32_0 : i32, i32
  }
  func.func @transform_25(%arg0: i32) -> (i32, i32) {
    %c0_i32 = arith.constant 0 : i32
    %c0_i32_0 = arith.constant 0 : i32
    %c0_i32_1 = arith.constant 0 : i32
    return %c0_i32, %c0_i32_0 : i32, i32
  }
  func.func @transform_26(%arg0: i32) -> (i32, i32) {
    %c0_i32 = arith.constant 0 : i32
    %c0_i32_0 = arith.constant 0 : i32
    %c0_i32_1 = arith.constant 0 : i32
    return %c0_i32, %c0_i32_0 : i32, i32
  }
  func.func @transform_27(%arg0: i32) -> (i32, i32) {
    %c0_i32 = arith.constant 0 : i32
    %c0_i32_0 = arith.constant 0 : i32
    %c0_i32_1 = arith.constant 0 : i32
    return %c0_i32, %c0_i32_0 : i32, i32
  }
  func.func @transform_28(%arg0: i32) -> (i32, i32) {
    %c0_i32 = arith.constant 0 : i32
    %c0_i32_0 = arith.constant 0 : i32
    %c0_i32_1 = arith.constant 0 : i32
    return %c0_i32, %c0_i32_0 : i32, i32
  }
  func.func @transform_29(%arg0: i32) -> (i32, i32) {
    %c0_i32 = arith.constant 0 : i32
    %c0_i32_0 = arith.constant 0 : i32
    %c0_i32_1 = arith.constant 0 : i32
    return %c0_i32, %c0_i32_0 : i32, i32
  }
  func.func @transform_30(%arg0: i32) -> (i32, i32) {
    %c0_i32 = arith.constant 0 : i32
    %c0_i32_0 = arith.constant 0 : i32
    %c0_i32_1 = arith.constant 0 : i32
    return %c0_i32, %c0_i32_0 : i32, i32
  }
  func.func @transform_31(%arg0: i32) -> (i32, i32) {
    %c0_i32 = arith.constant 0 : i32
    %c0_i32_0 = arith.constant 0 : i32
    %c0_i32_1 = arith.constant 0 : i32
    return %c0_i32, %c0_i32_0 : i32, i32
  }
  func.func @transform_32(%arg0: i32) -> (i32, i32) {
    %c0_i32 = arith.constant 0 : i32
    %c0_i32_0 = arith.constant 0 : i32
    %c0_i32_1 = arith.constant 0 : i32
    return %c0_i32, %c0_i32_0 : i32, i32
  }
  func.func @transform_33(%arg0: i32) -> (i32, i32) {
    %c0_i32 = arith.constant 0 : i32
    %c0_i32_0 = arith.constant 0 : i32
    %c0_i32_1 = arith.constant 0 : i32
    return %c0_i32, %c0_i32_0 : i32, i32
  }
  func.func @transform_34(%arg0: i32) -> (i32, i32) {
    %c0_i32 = arith.constant 0 : i32
    %c0_i32_0 = arith.constant 0 : i32
    %c0_i32_1 = arith.constant 0 : i32
    return %c0_i32, %c0_i32_0 : i32, i32
  }
  func.func @transform_35(%arg0: i32) -> (i32, i32) {
    %c0_i32 = arith.constant 0 : i32
    %c0_i32_0 = arith.constant 0 : i32
    %c0_i32_1 = arith.constant 0 : i32
    return %c0_i32, %c0_i32_0 : i32, i32
  }
  func.func @transform_36(%arg0: i32) -> (i32, i32) {
    %c0_i32 = arith.constant 0 : i32
    %c0_i32_0 = arith.constant 0 : i32
    %c0_i32_1 = arith.constant 0 : i32
    return %c0_i32, %c0_i32_0 : i32, i32
  }
  func.func @transform_37(%arg0: i32) -> (i32, i32) {
    %c0_i32 = arith.constant 0 : i32
    %c0_i32_0 = arith.constant 0 : i32
    %c0_i32_1 = arith.constant 0 : i32
    return %c0_i32, %c0_i32_0 : i32, i32
  }
  func.func @transform_38(%arg0: i32) -> (i32, i32) {
    %c0_i32 = arith.constant 0 : i32
    %c0_i32_0 = arith.constant 0 : i32
    %c0_i32_1 = arith.constant 0 : i32
    return %c0_i32, %c0_i32_0 : i32, i32
  }
}

</mosaic_0001>

<bundles_post_ra>
// kernel: tpu_custom_call.1
= control target key start
LH: loop header
LB: loop body
LE: loop exit
PB: predicated region body
PF: predicated region fallthrough
CT: control target
= control target key end

     0   :  { %s2953_s6 = smov 1   ;;  %s2954_s10 = smov 2   ;;  %s3646_s0 = inlined_call_operand.smem [shape: u32[39], index: -1, kind: input, shape index: {}] }
   0x1   :  { %s3019_s5 = sld [smem:[%s3646_s0]]   ;;  %s2955_s14 = smov 3  }
   0x2   :  { %s3024_s9 = sld [smem:[%s3646_s0 + %s2953_s6]]   ;;  %s2956_s18 = smov 4  }
   0x3   :  { %s3029_s13 = sld [smem:[%s3646_s0 + %s2954_s10]]   ;;  %s2957_s22 = smov 5  }
   0x4   :  { %s3034_s17 = sld [smem:[%s3646_s0 + %s2955_s14]]   ;;  %s2958_s26 = smov 6  }
   0x5   :  { %s3039_s21 = sld [smem:[%s3646_s0 + %s2956_s18]]   ;;  %s2959_s30 = smov 7  }
   0x6   :  { %s3044_s25 = sld [smem:[%s3646_s0 + %s2957_s22]]   ;;  %s2960_s4 = smov 8  }
   0x7   :  { %3660 = sst [smem:[#allocation35_spill]] %s3019_s5  ;;  %s2961_s10 = smov 9  }
   0x8   :  { %3661 = sst [smem:[#allocation36_spill]] %s3024_s9  ;;  %s2962_s15 = smov 10  }
   0x9   :  { %3662 = sst [smem:[#allocation37_spill]] %s3029_s13  ;;  %s2963_s20 = smov 11  }
   0xa   :  { %3663 = sst [smem:[#allocation38_spill]] %s3034_s17  ;;  %s2965_s1 = smov 13  }
   0xb   :  { %3664 = sst [smem:[#allocation39_spill]] %s3039_s21  ;;  %s2966_s7 = smov 14  }
   0xc   :  { %s3049_s29 = sld [smem:[%s3646_s0 + %s2958_s26]]   ;;  %s2964_s26 = smov 12  }
   0xd   :  { %s3054_s3 = sld [smem:[%s3646_s0 + %s2959_s30]]   ;;  %s2968_s22 = smov 16  }
   0xe   :  { %s3059_s8 = sld [smem:[%s3646_s0 + %s2960_s4]]   ;;  %s2969_s28 = smov 17  }
   0xf   :  { %s3064_s14 = sld [smem:[%s3646_s0 + %s2961_s10]]  }
  0x10   :  { %s3069_s19 = sld [smem:[%s3646_s0 + %s2962_s15]]   ;;  %s2967_s15 = smov 15  }
  0x11   :  { %s3074_s24 = sld [smem:[%s3646_s0 + %s2963_s20]]  }
  0x12   :  { %s3079_s30 = sld [smem:[%s3646_s0 + %s2964_s26]]  }
  0x13   :  { %3665 = sst [smem:[#allocation40_spill]] %s3054_s3 }
  0x14   :  { %3666 = sst [smem:[#allocation41_spill]] %s3059_s8 }
  0x15   :  { %s3084_s6 = sld [smem:[%s3646_s0 + %s2965_s1]]  }
  0x16   :  { %3667 = sst [smem:[#allocation42_spill]] %s3069_s19 }
  0x17   :  { %s3089_s12 = sld [smem:[%s3646_s0 + %s2966_s7]]   ;;  %s2970_s7 = smov 18  }
  0x18   :  { %3668 = sst [smem:[#allocation43_spill]] %s3079_s30 }
  0x19   :  { %s3094_s20 = sld [smem:[%s3646_s0 + %s2967_s15]]   ;;  %s2971_s15 = smov 19  }
  0x1a   :  { %s3099_s27 = sld [smem:[%s3646_s0 + %s2968_s22]]   ;;  %s2972_s22 = smov 20  }
  0x1b   :  { %s3104_s4 = sld [smem:[%s3646_s0 + %s2969_s28]]   ;;  %s2973_s28 = smov 21  }
  0x1c   :  { %s3109_s30 = sld [smem:[%s3646_s0 + %s2970_s7]]   ;;  %s2974_s7 = smov 22  }
  0x1d   :  { %s3119_s19 = sld [smem:[%s3646_s0 + %s2972_s22]]   ;;  %s2976_s22 = smov 24  }
  0x1f   :  { %3669 = sst [smem:[#allocation44_spill]] %s3094_s20 }
  0x20   :  { %s3114_s20 = sld [smem:[%s3646_s0 + %s2971_s15]]   ;;  %s2975_s15 = smov 23  }
  0x21   :  { %3670 = sst [smem:[#allocation45_spill]] %s3104_s4 }
  0x22   :  { %3671 = sst [smem:[#allocation46_spill]] %s3109_s30 }
  0x23   :  { %3673 = sst [smem:[#allocation48_spill]] %s3119_s19 }
  0x24   :  { %s3124_s4 = sld [smem:[%s3646_s0 + %s2973_s28]]   ;;  %s2977_s28 = smov 25  }
  0x25   :  { %s3129_s30 = sld [smem:[%s3646_s0 + %s2974_s7]]   ;;  %s2978_s7 = smov 26  }
  0x26   :  { %3672 = sst [smem:[#allocation47_spill]] %s3114_s20 }
  0x27   :  { %s3134_s20 = sld [smem:[%s3646_s0 + %s2975_s15]]   ;;  %s2979_s15 = smov 27  }
  0x28   :  { %s3139_s19 = sld [smem:[%s3646_s0 + %s2976_s22]]   ;;  %s2980_s22 = smov 28  }
  0x29   :  { %s3144_s13 = sld [smem:[%s3646_s0 + %s2977_s28]]   ;;  %s2981_s28 = smov 29  }
  0x2a   :  { %s3154_s3 = sld [smem:[%s3646_s0 + %s2979_s15]]   ;;  %s2983_s15 = smov 31  }
  0x2b   :  { %3674 = sst [smem:[#allocation49_spill]] %s3129_s30 }
  0x2c   :  { %s3149_s30 = sld [smem:[%s3646_s0 + %s2978_s7]]   ;;  %s2982_s7 = smov 30  }
  0x2d   :  { %s3159_s8 = sld [smem:[%s3646_s0 + %s2980_s22]]   ;;  %s2984_s22 = smov 32  }
  0x2e   :  { %s3164_s5 = sld [smem:[%s3646_s0 + %s2981_s28]]   ;;  %s2985_s28 = smov 33  }
  0x2f   :  { %s3169_s9 = sld [smem:[%s3646_s0 + %s2982_s7]]   ;;  %s2986_s7 = smov 34  }
  0x30   :  { %3675 = sst [smem:[#allocation50_spill]] %s3154_s3 }
  0x31   :  { %s3174_s3 = sld [smem:[%s3646_s0 + %s2983_s15]]   ;;  %s2987_s15 = smov 35  }
  0x32   :  { %s3179_s17 = sld [smem:[%s3646_s0 + %s2984_s22]]   ;;  %s2988_s22 = smov 36  }
  0x33   :  { %s3189_s21 = sld [smem:[%s3646_s0 + %s2986_s7]]   ;;  %s2990_s7 = smov 38  }
  0x34   :  { %3676 = sst [smem:[#allocation51_spill]] %s3164_s5 }
  0x35   :  { %s3184_s5 = sld [smem:[%s3646_s0 + %s2985_s28]]   ;;  %s2989_s28 = smov 37  }
  0x37   :  { %3677 = sst [smem:[#allocation52_spill]] %s3174_s3 }
  0x38   :  { %3678 = sst [smem:[#allocation53_spill]] %s3179_s17 }
  0x39   :  { %3680 = sst [smem:[#allocation55_spill]] %s3189_s21 }
  0x3a   :  { %s3194_s3 = sld [smem:[%s3646_s0 + %s2987_s15]]  }
  0x3b   :  { %3679 = sst [smem:[#allocation54_spill]] %s3184_s5 }
  0x3c   :  { %s3199_s17 = sld [smem:[%s3646_s0 + %s2988_s22]]  }
  0x3d   :  { %s3204_s5 = sld [smem:[%s3646_s0 + %s2989_s28]]  }
  0x3e   :  { %s3209_s21 = sld [smem:[%s3646_s0 + %s2990_s7]]  }
  0x3f   :  { %83 = vsyncpa [#allocation3], 0 }
  0x40   :  { %84 = vsyncpa [#allocation6], 0 }
  0x41   :  { %85 = vsyncpa [#allocation9], 0 }
  0x42   :  { %86 = vsyncpa [#allocation12], 0 }
  0x43   :  { %87 = vsyncpa [#allocation15], 0 }
  0x44   :  { %88 = vsyncpa [#allocation18], 0 }
  0x45   :  { %89 = vsyncpa [#allocation21], 0 }
  0x46   :  { %90 = vsyncpa [#allocation24], 0  ;;  %s118_s15 = sshll.u32 %s3049_s29, 4  ;;  %s119_s15 = int_to_ptr.hbm [resolvable:$true] %s118_s15 }
  0x47   :  { %91 = vsyncpa [#allocation4], 0  ;;  %s2991_s16 = smov [#allocation5]   ;;  %s146_s0 = sshll.u32 %s3074_s24, 4  ;;  %s147_s0 = int_to_ptr.hbm [resolvable:$true] %s146_s0 }
  0x48   :  { %s120_s18 = sshll.u32 %s2991_s16, 4  ;;  %s2575_s22 = sshra.s32 %s119_s15, 4  ;;  %s121_s18 = int_to_ptr.vmem [resolvable:$true] %s120_s18  ;;  %s2576_s22 = int_to_ptr.hbm [resolvable:$true] %s2575_s22 }
  0x49   :  { %s2577_s23 = scalar_lea.hbm %s2576_s22, 8  ;;  %s2579_s26 = scalar_lea.hbm %s3049_s29, 8 }
  0x4a   :  { %p2578_p0 = scmp.ne.s32.totalorder %s2576_s22, %s2577_s23  ;;  %p2580_p1 = scmp.lt.s32.totalorder %s2576_s22, %s3049_s29 }
  0x4b   :  { %p2581_p2 = scmp.lt.s32.totalorder %s2579_s26, %s2577_s23 }
  0x4d   :  { %p2582_p3 = por %p2581_p2, %p2580_p1 }
  0x4f   :  { %p2583_p4 = pnand %p2582_p3, %p2578_p0 }
  0x51   :  { %2586 = shalt.err (!%p2583_p4)
}
  0x52   :  { %123 = dma.hbm_to_vmem [thread:$0]  %s119_s15, 128, %s121_s18, [#allocation6]  }
  0x53   :  { %s2992_s28 = smov [#allocation8]   ;;  %s170_s2 = sshll.u32 %s3089_s12, 4  ;;  %s171_s2 = int_to_ptr.hbm [resolvable:$true] %s170_s2 }
  0x54   :  { %s148_s1 = sshll.u32 %s2992_s28, 4  ;;  %s2599_s7 = sshra.s32 %s147_s0, 4  ;;  %s149_s1 = int_to_ptr.vmem [resolvable:$true] %s148_s1  ;;  %s2600_s7 = int_to_ptr.hbm [resolvable:$true] %s2599_s7 }
  0x55   :  { %s2601_s10 = scalar_lea.hbm %s2600_s7, 8  ;;  %s2603_s11 = scalar_lea.hbm %s3074_s24, 8 }
  0x56   :  { %p2602_p5 = scmp.ne.s32.totalorder %s2600_s7, %s2601_s10  ;;  %p2604_p6 = scmp.lt.s32.totalorder %s2600_s7, %s3074_s24 }
  0x57   :  { %p2605_p7 = scmp.lt.s32.totalorder %s2603_s11, %s2601_s10 }
  0x59   :  { %p2606_p8 = por %p2605_p7, %p2604_p6 }
  0x5b   :  { %p2607_p9 = pnand %p2606_p8, %p2602_p5 }
  0x5d   :  { %2610 = shalt.err (!%p2607_p9)
}
  0x5e   :  { %151 = dma.hbm_to_vmem [thread:$0]  %s147_s0, 128, %s149_s1, [#allocation9]  }
  0x5f   :  { %s202_s29 = sshll.u32 %s3124_s4, 4  ;;  %s2993_s15 = smov [#allocation11]   ;;  %s203_s29 = int_to_ptr.hbm [resolvable:$true] %s202_s29 }
  0x60   :  { %s172_s16 = sshll.u32 %s2993_s15, 4  ;;  %s2623_s18 = sshra.s32 %s171_s2, 4  ;;  %s173_s16 = int_to_ptr.vmem [resolvable:$true] %s172_s16  ;;  %s2624_s18 = int_to_ptr.hbm [resolvable:$true] %s2623_s18 }
  0x61   :  { %s2625_s22 = scalar_lea.hbm %s2624_s18, 2  ;;  %s2627_s23 = scalar_lea.hbm %s3089_s12, 2 }
  0x62   :  { %p2626_p10 = scmp.ne.s32.totalorder %s2624_s18, %s2625_s22  ;;  %p2628_p11 = scmp.lt.s32.totalorder %s2624_s18, %s3089_s12 }
  0x63   :  { %p2629_p12 = scmp.lt.s32.totalorder %s2627_s23, %s2625_s22 }
  0x65   :  { %p2630_p13 = por %p2629_p12, %p2628_p11 }
  0x67   :  { %p2631_p0 = pnand %p2630_p13, %p2626_p10 }
  0x69   :  { %2634 = shalt.err (!%p2631_p0)
}
  0x6a   :  { %175 = dma.hbm_to_vmem [thread:$0]  %s171_s2, 32, %s173_s16, [#allocation12]  }
  0x6b   :  { %s2994_s24 = smov [#allocation14]   ;;  %s226_s26 = sshll.u32 %s3139_s19, 4  ;;  %s227_s26 = int_to_ptr.hbm [resolvable:$true] %s226_s26 }
  0x6c   :  { %s204_s0 = sshll.u32 %s2994_s24, 4  ;;  %s2647_s28 = sshra.s32 %s203_s29, 4  ;;  %s205_s0 = int_to_ptr.vmem [resolvable:$true] %s204_s0  ;;  %s2648_s28 = int_to_ptr.hbm [resolvable:$true] %s2647_s28 }
  0x6d   :  { %s2649_s1 = scalar_lea.hbm %s2648_s28, 2  ;;  %s2651_s7 = scalar_lea.hbm %s3124_s4, 2 }
  0x6e   :  { %p2650_p1 = scmp.ne.s32.totalorder %s2648_s28, %s2649_s1  ;;  %p2652_p2 = scmp.lt.s32.totalorder %s2648_s28, %s3124_s4 }
  0x6f   :  { %p2653_p3 = scmp.lt.s32.totalorder %s2651_s7, %s2649_s1 }
  0x71   :  { %p2654_p4 = por %p2653_p3, %p2652_p2 }
  0x73   :  { %p2655_p5 = pnand %p2654_p4, %p2650_p1 }
  0x75   :  { %2658 = shalt.err (!%p2655_p5)
}
  0x76   :  { %207 = dma.hbm_to_vmem [thread:$0]  %s203_s29, 32, %s205_s0, [#allocation15]  }
  0x77   :  { %s248_s12 = sshll.u32 %s3149_s30, 4  ;;  %s2995_s2 = smov [#allocation17]   ;;  %s249_s12 = int_to_ptr.hbm [resolvable:$true] %s248_s12 }
  0x78   :  { %s228_s10 = sshll.u32 %s2995_s2, 4  ;;  %s2671_s11 = sshra.s32 %s227_s26, 4  ;;  %s229_s10 = int_to_ptr.vmem [resolvable:$true] %s228_s10  ;;  %s2672_s11 = int_to_ptr.hbm [resolvable:$true] %s2671_s11 }
  0x79   :  { %s2673_s15 = scalar_lea.hbm %s2672_s11, 8  ;;  %s2675_s16 = scalar_lea.hbm %s3139_s19, 8 }
  0x7a   :  { %p2674_p6 = scmp.ne.s32.totalorder %s2672_s11, %s2673_s15  ;;  %p2676_p7 = scmp.lt.s32.totalorder %s2672_s11, %s3139_s19 }
  0x7b   :  { %p2677_p8 = scmp.lt.s32.totalorder %s2675_s16, %s2673_s15 }
  0x7d   :  { %p2678_p9 = por %p2677_p8, %p2676_p7 }
  0x7f   :  { %p2679_p10 = pnand %p2678_p9, %p2674_p6 }
  0x81   :  { %2682 = shalt.err (!%p2679_p10)
}
  0x82   :  { %231 = dma.hbm_to_vmem [thread:$0]  %s227_s26, 128, %s229_s10, [#allocation18]  }
  0x83   :  { %s2996_s4 = smov [#allocation20]   ;;  %s107_s18 = sshll.u32 %s3044_s25, 4  ;;  %s108_s18 = int_to_ptr.hbm [resolvable:$true] %s107_s18 }
  0x84   :  { %s250_s29 = sshll.u32 %s2996_s4, 4  ;;  %s2695_s22 = sshra.s32 %s249_s12, 4  ;;  %s251_s29 = int_to_ptr.vmem [resolvable:$true] %s250_s29  ;;  %s2696_s22 = int_to_ptr.hbm [resolvable:$true] %s2695_s22 }
  0x85   :  { %s2697_s23 = scalar_lea.hbm %s2696_s22, 2  ;;  %s2699_s24 = scalar_lea.hbm %s3149_s30, 2 }
  0x86   :  { %p2698_p11 = scmp.ne.s32.totalorder %s2696_s22, %s2697_s23  ;;  %p2700_p12 = scmp.lt.s32.totalorder %s2696_s22, %s3149_s30 }
  0x87   :  { %p2701_p13 = scmp.lt.s32.totalorder %s2699_s24, %s2697_s23 }
  0x89   :  { %p2702_p0 = por %p2701_p13, %p2700_p12 }
  0x8b   :  { %p2703_p1 = pnand %p2702_p0, %p2698_p11 }
  0x8d   :  { %2706 = shalt.err (!%p2703_p1)
}
  0x8e   :  { %253 = dma.hbm_to_vmem [thread:$0]  %s249_s12, 32, %s251_s29, [#allocation21]  }
  0x8f   :  { %s133_s19 = sshll.u32 %s3064_s14, 4  ;;  %s2997_s0 = smov [#allocation2]   ;;  %s134_s19 = int_to_ptr.hbm [resolvable:$true] %s133_s19 }
  0x90   :  { %s109_s26 = sshll.u32 %s2997_s0, 4  ;;  %s2719_s28 = sshra.s32 %s108_s18, 4  ;;  %s110_s26 = int_to_ptr.vmem [resolvable:$true] %s109_s26  ;;  %s2720_s28 = int_to_ptr.hbm [resolvable:$true] %s2719_s28 }
  0x91   :  { %s2721_s1 = scalar_lea.hbm %s2720_s28, 8  ;;  %s2723_s7 = scalar_lea.hbm %s3044_s25, 8 }
  0x92   :  { %p2722_p2 = scmp.ne.s32.totalorder %s2720_s28, %s2721_s1  ;;  %p2724_p3 = scmp.lt.s32.totalorder %s2720_s28, %s3044_s25 }
  0x93   :  { %p2725_p4 = scmp.lt.s32.totalorder %s2723_s7, %s2721_s1 }
  0x95   :  { %p2726_p5 = por %p2725_p4, %p2724_p3 }
  0x97   :  { %p2727_p6 = pnand %p2726_p5, %p2722_p2 }
  0x99   :  { %2730 = shalt.err (!%p2727_p6)
}
  0x9a   :  { %112 = dma.hbm_to_vmem [thread:$0]  %s108_s18, 128, %s110_s26, [#allocation3]  }
  0x9b   :  { %s2998_s30 = smov [#allocation7]   ;;  %s159_s2 = sshll.u32 %s3084_s6, 4  ;;  %s160_s2 = int_to_ptr.hbm [resolvable:$true] %s159_s2 }
  0x9c   :  { %s135_s12 = sshll.u32 %s2998_s30, 4  ;;  %s2743_s10 = sshra.s32 %s134_s19, 4  ;;  %s136_s12 = int_to_ptr.vmem [resolvable:$true] %s135_s12  ;;  %s2744_s10 = int_to_ptr.hbm [resolvable:$true] %s2743_s10 }
  0x9d   :  { %s2745_s11 = scalar_lea.hbm %s2744_s10, 1  ;;  %s2747_s15 = scalar_lea.hbm %s3064_s14, 1 }
  0x9e   :  { %p2746_p7 = scmp.ne.s32.totalorder %s2744_s10, %s2745_s11  ;;  %p2748_p8 = scmp.lt.s32.totalorder %s2744_s10, %s3064_s14 }
  0x9f   :  { %p2749_p9 = scmp.lt.s32.totalorder %s2747_s15, %s2745_s11 }
  0xa1   :  { %p2750_p10 = por %p2749_p9, %p2748_p8 }
  0xa3   :  { %p2751_p11 = pnand %p2750_p10, %p2746_p7 }
  0xa5   :  { %2754 = shalt.err (!%p2751_p11)
}
  0xa6   :  { %138 = dma.hbm_to_vmem [thread:$0]  %s134_s19, 16, %s136_s12, [#allocation6]  }
  0xa7   :  { %s183_s25 = sshll.u32 %s3099_s27, 4  ;;  %s2999_s16 = smov [#allocation10]   ;;  %s184_s25 = int_to_ptr.hbm [resolvable:$true] %s183_s25 }
  0xa8   :  { %s161_s4 = sshll.u32 %s2999_s16, 4  ;;  %s2767_s29 = sshra.s32 %s160_s2, 4  ;;  %s162_s4 = int_to_ptr.vmem [resolvable:$true] %s161_s4  ;;  %s2768_s29 = int_to_ptr.hbm [resolvable:$true] %s2767_s29 }
  0xa9   :  { %s2769_s18 = scalar_lea.hbm %s2768_s29, 8  ;;  %s2771_s22 = scalar_lea.hbm %s3084_s6, 8 }
  0xaa   :  { %p2770_p12 = scmp.ne.s32.totalorder %s2768_s29, %s2769_s18  ;;  %p2772_p13 = scmp.lt.s32.totalorder %s2768_s29, %s3084_s6 }
  0xab   :  { %p2773_p0 = scmp.lt.s32.totalorder %s2771_s22, %s2769_s18 }
  0xad   :  { %p2774_p1 = por %p2773_p0, %p2772_p13 }
  0xaf   :  { %p2775_p2 = pnand %p2774_p1, %p2770_p12 }
  0xb1   :  { %2778 = shalt.err (!%p2775_p2)
}
  0xb2   :  { %164 = dma.hbm_to_vmem [thread:$0]  %s160_s2, 128, %s162_s4, [#allocation9]  }
  0xb3   :  { %s3000_s14 = smov [#allocation13]   ;;  %s215_s24 = sshll.u32 %s3134_s20, 4  ;;  %s216_s24 = int_to_ptr.hbm [resolvable:$true] %s215_s24 }
  0xb4   :  { %s185_s23 = sshll.u32 %s3000_s14, 4  ;;  %s2791_s19 = sshra.s32 %s184_s25, 4  ;;  %s186_s23 = int_to_ptr.vmem [resolvable:$true] %s185_s23  ;;  %s2792_s19 = int_to_ptr.hbm [resolvable:$true] %s2791_s19 }
  0xb5   :  { %s2793_s0 = scalar_lea.hbm %s2792_s19, 1  ;;  %s2795_s26 = scalar_lea.hbm %s3099_s27, 1 }
  0xb6   :  { %p2794_p3 = scmp.ne.s32.totalorder %s2792_s19, %s2793_s0  ;;  %p2796_p4 = scmp.lt.s32.totalorder %s2792_s19, %s3099_s27 }
  0xb7   :  { %p2797_p5 = scmp.lt.s32.totalorder %s2795_s26, %s2793_s0 }
  0xb9   :  { %p2798_p6 = por %p2797_p5, %p2796_p4 }
  0xbb   :  { %p2799_p7 = pnand %p2798_p6, %p2794_p3 }
  0xbd   :  { %2802 = shalt.err (!%p2799_p7)
}
  0xbe   :  { %188 = dma.hbm_to_vmem [thread:$0]  %s184_s25, 16, %s186_s23, [#allocation12]  }
  0xbf   :  { %s237_s6 = sshll.u32 %s3144_s13, 4  ;;  %s3001_s28 = smov [#allocation16]   ;;  %s238_s6 = int_to_ptr.hbm [resolvable:$true] %s237_s6 }
  0xc0   :  { %s217_s1 = sshll.u32 %s3001_s28, 4  ;;  %s2815_s7 = sshra.s32 %s216_s24, 4  ;;  %s218_s1 = int_to_ptr.vmem [resolvable:$true] %s217_s1  ;;  %s2816_s7 = int_to_ptr.hbm [resolvable:$true] %s2815_s7 }
  0xc1   :  { %s2817_s30 = scalar_lea.hbm %s2816_s7, 1  ;;  %s2819_s12 = scalar_lea.hbm %s3134_s20, 1 }
  0xc2   :  { %p2818_p8 = scmp.ne.s32.totalorder %s2816_s7, %s2817_s30  ;;  %p2820_p9 = scmp.lt.s32.totalorder %s2816_s7, %s3134_s20 }
  0xc3   :  { %p2821_p10 = scmp.lt.s32.totalorder %s2819_s12, %s2817_s30 }
  0xc5   :  { %p2822_p11 = por %p2821_p10, %p2820_p9 }
  0xc7   :  { %p2823_p12 = pnand %p2822_p11, %p2818_p8 }
  0xc9   :  { %2826 = shalt.err (!%p2823_p12)
}
  0xca   :  { %220 = dma.hbm_to_vmem [thread:$0]  %s216_s24, 16, %s218_s1, [#allocation15]  }
  0xcb   :  { %s3002_s27 = smov [#allocation19]   ;;  %s261_s10 = sshll.u32 %s3159_s8, 4  ;;  %s262_s10 = int_to_ptr.hbm [resolvable:$true] %s261_s10 }
  0xcc   :  { %s239_s2 = sshll.u32 %s3002_s27, 4  ;;  %s2839_s11 = sshra.s32 %s238_s6, 4  ;;  %s240_s2 = int_to_ptr.vmem [resolvable:$true] %s239_s2  ;;  %s2840_s11 = int_to_ptr.hbm [resolvable:$true] %s2839_s11 }
  0xcd   :  { %s2841_s15 = scalar_lea.hbm %s2840_s11, 8  ;;  %s2843_s25 = scalar_lea.hbm %s3144_s13, 8 }
  0xce   :  { %p2842_p13 = scmp.ne.s32.totalorder %s2840_s11, %s2841_s15  ;;  %p2844_p0 = scmp.lt.s32.totalorder %s2840_s11, %s3144_s13 }
  0xcf   :  { %p2845_p1 = scmp.lt.s32.totalorder %s2843_s25, %s2841_s15 }
  0xd1   :  { %p2846_p2 = por %p2845_p1, %p2844_p0 }
  0xd3   :  { %p2847_p3 = pnand %p2846_p2, %p2842_p13 }
  0xd5   :  { %2850 = shalt.err (!%p2847_p3)
}
  0xd6   :  { %242 = dma.hbm_to_vmem [thread:$0]  %s238_s6, 128, %s240_s2, [#allocation18]  }
  0xd7   :  { %s274_s20 = sshll.u32 %s3169_s9, 4  ;;  %s3003_s16 = smov [#allocation22]   ;;  %s275_s20 = int_to_ptr.hbm [resolvable:$true] %s274_s20 }
  0xd8   :  { %s263_s4 = sshll.u32 %s3003_s16, 4  ;;  %s2863_s29 = sshra.s32 %s262_s10, 4  ;;  %s264_s4 = int_to_ptr.vmem [resolvable:$true] %s263_s4  ;;  %s2864_s29 = int_to_ptr.hbm [resolvable:$true] %s2863_s29 }
  0xd9   :  { %s2865_s18 = scalar_lea.hbm %s2864_s29, 1  ;;  %s2867_s22 = scalar_lea.hbm %s3159_s8, 1 }
  0xda   :  { %p2866_p4 = scmp.ne.s32.totalorder %s2864_s29, %s2865_s18  ;;  %p2868_p5 = scmp.lt.s32.totalorder %s2864_s29, %s3159_s8 }
  0xdb   :  { %p2869_p6 = scmp.lt.s32.totalorder %s2867_s22, %s2865_s18 }
  0xdd   :  { %p2870_p7 = por %p2869_p6, %p2868_p5 }
  0xdf   :  { %p2871_p8 = pnand %p2870_p7, %p2866_p4 }
  0xe1   :  { %2874 = shalt.err (!%p2871_p8)
}
  0xe2   :  { %266 = dma.hbm_to_vmem [thread:$0]  %s262_s10, 16, %s264_s4, [#allocation21]  }
  0xe3   :  { %s3004_s13 = smov [#allocation23]   ;;  %s2887_s23 = sshra.s32 %s275_s20, 4  ;;  %s2888_s23 = int_to_ptr.hbm [resolvable:$true] %s2887_s23 }
  0xe4   :  { %s276_s14 = sshll.u32 %s3004_s13, 4  ;;  %s2889_s24 = scalar_lea.hbm %s2888_s23, 8  ;;  %s277_s14 = int_to_ptr.vmem [resolvable:$true] %s276_s14 }
  0xe5   :  { %p2890_p9 = scmp.ne.s32.totalorder %s2888_s23, %s2889_s24  ;;  %s2891_s19 = scalar_lea.hbm %s3169_s9, 8 }
  0xe6   :  { %p2892_p10 = scmp.lt.s32.totalorder %s2888_s23, %s3169_s9  ;;  %p2893_p11 = scmp.lt.s32.totalorder %s2891_s19, %s2889_s24 }
  0xe8   :  { %p2894_p12 = por %p2893_p11, %p2892_p10 }
  0xea   :  { %p2895_p13 = pnand %p2894_p12, %p2890_p9 }
  0xec   :  { %2898 = shalt.err (!%p2895_p13)
}
  0xed   :  { %279 = dma.hbm_to_vmem [thread:$0]  %s275_s20, 128, %s277_s14, [#allocation24]  }
  0xee   :  { %2935 = dma.done.wait [#allocation3], 128  }
  0xef   :  { %2936 = vsyncadd [#allocation3], 4294967168 }
  0xf0   :  { %2937 = dma.done.wait [#allocation6], 144  }
  0xf1   :  { %2938 = vsyncadd [#allocation6], 4294967152 }
  0xf2   :  { %2939 = dma.done.wait [#allocation9], 256  }
  0xf3   :  { %2940 = vsyncadd [#allocation9], 4294967040 }
  0xf4   :  { %2941 = dma.done.wait [#allocation12], 48  }
  0xf5   :  { %2942 = vsyncadd [#allocation12], 4294967248 }
  0xf6   :  { %2943 = dma.done.wait [#allocation15], 48  }
  0xf7   :  { %2944 = vsyncadd [#allocation15], 4294967248 }
  0xf8   :  { %2945 = dma.done.wait [#allocation18], 256  }
  0xf9   :  { %2946 = vsyncadd [#allocation18], 4294967040 }
  0xfa   :  { %2947 = dma.done.wait [#allocation21], 48  }
  0xfb   :  { %2948 = vsyncadd [#allocation21], 4294967248 }
  0xfc   :  { %2949 = dma.done.wait [#allocation24], 128  }
  0xfd   :  { %2950 = vsyncadd [#allocation24], 4294967168  ;;  %s3681_s9 = sld [smem:[#allocation39_spill]]  ;;  %vm367_vm0 = vcmask 1045504   ;;  %vm360_vm1 = vcmask 48128   ;;  %vm394_vm2 = vcmask 64512  }
  0xfe   :  { %s3682_s8 = sld [smem:[#allocation38_spill]]  ;;  %v355_v8 = vld [vmem:[#allocation5] sm:$0x3f]  ;;  %v354_v9 = vld [vmem:[#allocation2] sm:$0xff]  ;;  %v3005_v10 = vmov 1   ;;  %v3006_v11 = vmov 0  }
  0xff   :  { %s3683_s0 = sld [smem:[#allocation36_spill]]  ;;  %465 = vmatpush.msra.mxu3 %v354_v9  ;;  %2459 = vset.pattern.permute.xlu1 %v3005_v10  ;;  %vm473_vm3 = vcmask 130048   ;;  %v755_v50 = vld [vmem:[#allocation17] sm:$0x3f]  ;;  %s3007_s22 = smov 120  }
 0x100   :  { %s3684_s26 = sld [smem:[#allocation35_spill]]  ;;  %2458 = vset.pattern.permute.xlu0 %v3006_v11  ;;  %2460 = vset.pattern.permute.xlu2 %v3005_v10  ;;  %s3008_s13 = smov [#allocation25]  }
 0x101   :  { %s3685_s6 = sld [smem:[#allocation41_spill]]  ;;  %s2243_s14 = sshll.u32 %s3008_s13, 4  ;;  %s2244_s14 = int_to_ptr.vmem [resolvable:$true] %s2243_s14 }
 0x102   :  { %s3686_s28 = sld [smem:[#allocation40_spill]]  ;;  %s2245_s23 = sshll.u32 %s3209_s21, 4  ;;  %s2246_s23 = int_to_ptr.hbm [resolvable:$true] %s2245_s23 }
 0x103   :  { %v353_v0 = vld [vmem:[%s3681_s9] sm:$0x3f]  ;;  %s3687_s1 = sld [smem:[#allocation37_spill]]  ;;  %s2923_s24 = sshra.s32 %s2246_s23, 4  ;;  %s2924_s24 = int_to_ptr.hbm [resolvable:$true] %s2923_s24 }
 0x104   :  { %v352_v1 = vld [vmem:[%s3682_s8] sm:$0xff]  ;;  %2307 = vmatpush.msk.msra.mxu0 %vm367_vm0, %v353_v0  ;;  %2399 = vmatpush.msk.msra.mxu2 %vm367_vm0, %v353_v0  ;;  %s3688_s7 = sld [smem:[#allocation50_spill]]  ;;  %s2925_s19 = scalar_lea.hbm %s2924_s24, 16 }
 0x105   :  { %v3256_v2 = vld [vmem:[%s3683_s0] sm:$0xff]  ;;  %416 = vmatpush.msra.mxu1 %v352_v1  ;;  %v3261_v4 = vld [vmem:[%s3683_s0 + $0x8] sm:$0xff]  ;;  %s3689_s30 = sld [smem:[#allocation42_spill]]  ;;  %p2926_p0 = scmp.ne.s32.totalorder %s2924_s24, %s2925_s19 }
 0x106   :  { %v348_v3 = vld [vmem:[%s3684_s26] sm:$0xff]  ;;  %2308 = vmatmul.msk.f32.vlgmr.msra.gmra.mxu0 %vm360_vm1, %v3256_v2  ;;  %2309 = vmatmul.msk.f32.vlgmr.msra.gmra.mxu2 %vm360_vm1, %v3261_v4  ;;  %v349_v7 = vld [vmem:[%s3684_s26 + $0x8] sm:$0xff]  ;;  %s3692_s12 = sld [smem:[#allocation43_spill]]  ;;  %s2927_s9 = scalar_lea.hbm %s3209_s21, 16 }
 0x107   :  { %2310 = vmatmul.msk.f32.vlgmr.msra.gmra.mxu1 %vm394_vm2, %v348_v3  ;;  %v358_v5 = vld [vmem:[%s3685_s6 + $0x8] sm:$0xff]  ;;  %v357_v6 = vld [vmem:[%s3685_s6] sm:$0xff]  ;;  %2312 = vmatpush.msk.msrb.mxu2 %vm367_vm0, %v355_v8  ;;  %s3693_s27 = sld [smem:[#allocation51_spill]]  ;;  %p2928_p1 = scmp.lt.s32.totalorder %s2924_s24, %s3209_s21 }
 0x108   :  { %494 = vmatpush.msrb.mxu0 %v358_v5  ;;  %2315 = vmatmul.msk.f32.vlgmr.msra.gmra.mxu3 %vm394_vm2, %v348_v3  ;;  %v356_v18 = vld [vmem:[%s3686_s28] sm:$0x3]  ;;  %s3694_s2 = sld [smem:[#allocation44_spill]]  ;;  %p2929_p2 = scmp.lt.s32.totalorder %s2927_s9, %s2925_s19 }
 0x109   :  { %v3290_v24 = vld [vmem:[%s3687_s1] sm:$0xff]  ;;  %v3300_v37 = vld [vmem:[%s3687_s1 + $0x8] sm:$0xff]  ;;  %s3697_s10 = sld [smem:[#allocation53_spill]] }
 0x10a   :  { %495 = vmatpush.msrb.mxu0 %v357_v6  ;;  %vm547_vm4 = vcmp.gt.f32.partialorder %v3290_v24, 0.0  ;;  %vm548_vm7 = vcmp.gt.f32.partialorder %v3300_v37, 0.0  ;;  %s3698_s11 = sld [smem:[#allocation52_spill]]  ;;  %p2930_p3 = por %p2929_p2, %p2928_p1 }
 0x10b   :  { %s3699_s15 = sld [smem:[#allocation45_spill]] }
 0x10c   :  { %s3700_s25 = sld [smem:[#allocation47_spill]]  ;;  %p2931_p4 = pnand %p2930_p3, %p2926_p0 }
 0x10d   :  { %s3701_s20 = sld [smem:[#allocation46_spill]] }
 0x10e   :  { %2313 = vmatmul.msk.f32.vlgmr.msrb.gmra.mxu2 %vm360_vm1, %v3256_v2  ;;  %s3702_s16 = sld [smem:[#allocation48_spill]] }
 0x10f   :  { %2311 = vmatmul.msk.f32.gmra.mxu1 %vm394_vm2, %v349_v7  ;;  %s3703_s4 = sld [smem:[#allocation49_spill]] }
 0x110   :  { %2316 = vmatmul.msk.f32.gmra.mxu3 %vm394_vm2, %v349_v7  ;;  %s3704_s29 = sld [smem:[#allocation54_spill]] }
 0x111   :  { %s3705_s18 = sld [smem:[#allocation55_spill]] }
 0x116   :  { %2314 = vmatmul.msk.f32.gmra.mxu2 %vm360_vm1, %v3261_v4 }
 0x183   :  { %v388_v12 = vpop.f32.mrf.mxu0 }
 0x184   :  { %v418_v13 = vpop.f32.mrf.mxu1 }
 0x185   :  { %v419_v14 = vadd.f32 %v418_v13, %v388_v12  ;;  %v758_v12 = vld [vmem:[%s3688_s7] sm:$0xff] }
 0x187   :  { %2317 = vmatmul.msk.f32.vlgmr.msrb.gmra.mxu0 %vm473_vm3, %v419_v14 }
 0x189   :  { %v391_v15 = vpop.f32.mrf.mxu2 }
 0x18c   :  { %v421_v16 = vpop.f32.mrf.mxu1 }
 0x18d   :  { %v422_v17 = vadd.f32 %v421_v16, %v391_v15 }
 0x18f   :  { %2318 = vmatmul.msk.f32.gmra.mxu0 %vm473_vm3, %v422_v17  ;;  %2319 = vmatpush.xpose.msk.msrb.mxu1 %vm473_vm3, %v422_v17 }
 0x190   :  { %619 = vmatpush.msra.mxu2 %v422_v17  ;;  %722 = vmatpush.msrb.mxu3 %v422_v17 }
 0x192   :  { %620 = vmatpush.msra.mxu2 %v419_v14  ;;  %723 = vmatpush.msrb.mxu3 %v419_v14 }
 0x193   :  { %2320 = vmatpush.xpose.msk.msrb.mxu1 %vm473_vm3, %v419_v14 }
 0x194   :  { %833 = vmatpush.msrb.mxu2 %v758_v12  ;;  %v526_v12 = vlaneseq }
 0x196   :  { %2321 = vmatmul.msk.f32.vlgmr.msrb.gmra.mxu1 %vm473_vm3, %v356_v18 }
 0x197   :  { %2328 = vmatpush.msk.msra.mxu1 %vm367_vm0, %v755_v50 }
 0x19e   :  { %2329 = vmatmul.msk.f32.vlgmr.msra.gmra.mxu1 %vm360_vm1, %v3256_v2 }
 0x1a6   :  { %2330 = vmatmul.msk.f32.gmra.mxu1 %vm360_vm1, %v3261_v4 }
 0x204   :  { %v497_v19 = vpop.f32.mrf.mxu0 }
 0x205   :  { %636 = vperm.xlu1 %2459, %v497_v19   ;;  %530 = vperm.xlu0 %2458, %v497_v19  }
 0x20c   :  { %v500_v20 = vpop.f32.mrf.mxu0 }
 0x20d   :  { %640 = vperm.xlu1 %2459, %v500_v20   ;;  %535 = vperm.xlu0 %2458, %v500_v20  }
 0x213   :  { %v523_v21 = vpop.f32.mrf.mxu1 }
 0x214   :  { %v538_v22 = vperm.slane %v523_v21, 0  ;;  %v643_v23 = vperm.slane %v523_v21, 1 }
 0x21b   :  { %v3324_v9 = vpop.f32.mrf.mxu1 }
 0x223   :  { %v3327_v13 = vpop.f32.mrf.mxu1 }
 0x224   :  { %2336 = vmatpush.xpose.msk.msra.mxu3 %vm394_vm2, %v3327_v13  ;;  %953 = vmatpush.msrb.mxu1 %v3327_v13 }
 0x226   :  { %954 = vmatpush.msrb.mxu1 %v3324_v9 }
 0x228   :  { %2337 = vmatpush.xpose.msk.msra.mxu3 %vm394_vm2, %v3324_v9 }
 0x277   :  { %v637_v25 = vpop.permute.xlu1 %636  ;;  %v531_v26 = vpop.permute.xlu0 %530 }
 0x278   :  { %v644_v27 = vadd.f32 %v643_v23, %v637_v25  ;;  %v539_v28 = vadd.f32 %v538_v22, %v531_v26 }
 0x27a   :  { %v648_v29 = vmul.f32 0.2, %v644_v27  ;;  %v543_v30 = vmul.f32 0.2, %v539_v28  ;;  %vm646_vm5 = vcmp.ge.f32.partialorder %v644_v27, 0.0  ;;  %vm541_vm6 = vcmp.ge.f32.partialorder %v539_v28, 0.0 }
 0x27c   :  { %v650_v31 = vsel %vm646_vm5, %v644_v27, %v648_v29  ;;  %v545_v32 = vsel %vm541_vm6, %v539_v28, %v543_v30 }
 0x27d   :  { %v652_v33 = vsel %vm547_vm4, %v650_v31, -1e+30  ;;  %v549_v34 = vsel %vm547_vm4, %v545_v32, -1e+30 }
 0x27e   :  { %v654_v35 = vsel %vm473_vm3, %v652_v33, -inf  ;;  %v551_v36 = vsel %vm473_vm3, %v549_v34, -inf }
 0x27f   :  { %v641_v38 = vpop.permute.xlu1 %640  ;;  %v536_v39 = vpop.permute.xlu0 %535  ;;  %655 = vmax.xlane.f32.xlu0 %v654_v35  ;;  %552 = vmax.xlane.f32.xlu2 %v551_v36 }
 0x280   :  { %v645_v40 = vadd.f32 %v643_v23, %v641_v38  ;;  %v540_v41 = vadd.f32 %v538_v22, %v536_v39 }
 0x282   :  { %v649_v42 = vmul.f32 0.2, %v645_v40  ;;  %v544_v43 = vmul.f32 0.2, %v540_v41  ;;  %vm647_vm8 = vcmp.ge.f32.partialorder %v645_v40, 0.0  ;;  %vm542_vm9 = vcmp.ge.f32.partialorder %v540_v41, 0.0 }
 0x284   :  { %v651_v44 = vsel %vm647_vm8, %v645_v40, %v649_v42  ;;  %v546_v45 = vsel %vm542_vm9, %v540_v41, %v544_v43 }
 0x285   :  { %v653_v46 = vsel %vm548_vm7, %v651_v44, -1e+30  ;;  %v550_v47 = vsel %vm548_vm7, %v546_v45, -1e+30 }
 0x286   :  { %v657_v48 = vsel %vm473_vm3, %v653_v46, -inf  ;;  %v554_v49 = vsel %vm473_vm3, %v550_v47, -inf }
 0x287   :  { %658 = vmax.xlane.f32.xlu1 %v657_v48  ;;  %555 = vmax.xlane.f32.xlu2 %v554_v49 }
 0x2f2   :  { %v553_v51 = vpop.xlane.xlu2 %552  ;;  %v656_v55 = vpop.xlane.xlu0 %655 }
 0x2f3   :  { %v557_v52 = vsub.f32 %v549_v34, %v553_v51  ;;  %v660_v59 = vsub.f32 %v652_v33, %v656_v55 }
 0x2f5   :  { %v559_v53 = vmul.f32 1.442695, %v557_v52  ;;  %v662_v61 = vmul.f32 1.442695, %v660_v59 }
 0x2f7   :  { %2475 = vpow2.f32 %v559_v53 }
 0x2fa   :  { %v556_v54 = vpop.xlane.xlu2 %555  ;;  %v659_v62 = vpop.xlane.xlu1 %658 }
 0x2fb   :  { %v558_v56 = vsub.f32 %v550_v47, %v556_v54  ;;  %v661_v0 = vsub.f32 %v653_v46, %v659_v62 }
 0x2fd   :  { %v561_v57 = vmul.f32 1.442695, %v558_v56  ;;  %v2476_v58 = vpop.eup %2475  ;;  %v664_v3 = vmul.f32 1.442695, %v661_v0  ;;  %v757_v0 = vld [vmem:[#allocation20] sm:$0x3] }
 0x2fe   :  { %v563_v60 = vsel %vm473_vm3, %v2476_v58, 0.0 }
 0x2ff   :  { %2477 = vpow2.f32 %v561_v57  ;;  %564 = vadd.xlane.f32.xlu2 %v563_v60 }
 0x300   :  { %2479 = vpow2.f32 %v662_v61 }
 0x301   :  { %2481 = vpow2.f32 %v664_v3 }
 0x305   :  { %v2478_v63 = vpop.eup %2477 }
 0x306   :  { %v566_v1 = vsel %vm473_vm3, %v2478_v63, 0.0  ;;  %v3316_v5 = vpop.eup %2479 }
 0x307   :  { %567 = vadd.xlane.f32.xlu2 %v566_v1  ;;  %v666_v6 = vsel %vm473_vm3, %v3316_v5, 0.0  ;;  %v3320_v7 = vpop.eup %2481  ;;  %v444_v1 = vpop.f32.mrf.mxu2 }
 0x308   :  { %v669_v8 = vsel %vm473_vm3, %v3320_v7, 0.0 }
 0x30f   :  { %667 = vadd.xlane.f32.xlu2 %v666_v6  ;;  %v447_v3 = vpop.f32.mrf.mxu2  ;;  %v1080_v6 = vld [vmem:[%s3689_s30 + $0x8] sm:$0xff] }
 0x317   :  { %670 = vadd.xlane.f32.xlu2 %v669_v8  ;;  %v1079_v8 = vld [vmem:[%s3689_s30] sm:$0xff] }
 0x372   :  { %v565_v14 = vpop.xlane.xlu2 %564 }
 0x373   :  { %2483 = vrcp.f32 %v565_v14  ;;  %v580_v19 = vand.u32 2147483648, %v565_v14  ;;  %v578_v21 = vand.u32 2147483647, %v565_v14  ;;  %vm574_vm11 = vweird.f32 %v565_v14 }
 0x375   :  { %v581_v25 = vor.u32 1.1754944e-38, %v580_v19  ;;  %vm579_vm13 = vcmp.eq.f32.partialorder %v578_v21, 8.507059e+37 }
 0x379   :  { %v2484_v15 = vpop.eup %2483 }
 0x37a   :  { %v570_v16 = vmul.f32 %v2484_v15, %v565_v14  ;;  %v568_v17 = vpop.xlane.xlu2 %567  ;;  %vm575_vm10 = vweird.f32 %v2484_v15 }
 0x37b   :  { %2485 = vrcp.f32 %v568_v17  ;;  %vm576_vm12 = vmor %vm574_vm11, %vm575_vm10  ;;  %v595_v32 = vand.u32 2147483648, %v568_v17  ;;  %v593_v34 = vand.u32 2147483647, %v568_v17  ;;  %vm589_vm15 = vweird.f32 %v568_v17 }
 0x37c   :  { %v571_v18 = vsub.f32 1.0, %v570_v16 }
 0x37d   :  { %v596_v38 = vor.u32 1.1754944e-38, %v595_v32  ;;  %vm594_vm6 = vcmp.eq.f32.partialorder %v593_v34, 8.507059e+37 }
 0x37e   :  { %v572_v20 = vmul.f32 %v2484_v15, %v571_v18 }
 0x380   :  { %v573_v22 = vadd.f32 %v2484_v15, %v572_v20 }
 0x381   :  { %v2486_v23 = vpop.eup %2485 }
 0x382   :  { %v577_v26 = vsel %vm576_vm12, %v2484_v15, %v573_v22  ;;  %v585_v27 = vmul.f32 %v2486_v23, %v568_v17  ;;  %v668_v28 = vpop.xlane.xlu2 %667  ;;  %vm590_vm14 = vweird.f32 %v2486_v23  ;;  %v2469_v22 = vld [vmem:[#allocation7] ss:$0 sm:$0xff] }
 0x383   :  { %v582_v29 = vsel %vm579_vm13, %v581_v25, %v577_v26  ;;  %2487 = vrcp.f32 %v668_v28  ;;  %vm591_vm5 = vmor %vm589_vm15, %vm590_vm14  ;;  %v683_v45 = vand.u32 2147483648, %v668_v28  ;;  %v681_v47 = vand.u32 2147483647, %v668_v28 }
 0x384   :  { %v586_v30 = vsub.f32 1.0, %v585_v27  ;;  %v583_v31 = vmul.f32 %v2476_v58, %v582_v29  ;;  %vm677_vm9 = vweird.f32 %v668_v28 }
 0x385   :  { %v684_v50 = vor.u32 1.1754944e-38, %v683_v45  ;;  %vm682_vm11 = vcmp.eq.f32.partialorder %v681_v47, 8.507059e+37 }
 0x386   :  { %v587_v33 = vmul.f32 %v2486_v23, %v586_v30  ;;  %2322 = vmatmul.msk.f32.vlgmr.msra.gmra.mxu2 %vm473_vm3, %v583_v31 }
 0x387   :  { %1138 = vmatpush.msra.mxu2 %v1080_v6 }
 0x388   :  { %v588_v35 = vadd.f32 %v2486_v23, %v587_v33 }
 0x389   :  { %v2488_v36 = vpop.eup %2487  ;;  %1139 = vmatpush.msra.mxu2 %v1079_v8 }
 0x38a   :  { %v673_v39 = vmul.f32 %v2488_v36, %v668_v28  ;;  %v671_v40 = vpop.xlane.xlu2 %670  ;;  %v592_v41 = vsel %vm591_vm5, %v2486_v23, %v588_v35  ;;  %vm678_vm8 = vweird.f32 %v2488_v36 }
 0x38b   :  { %2489 = vrcp.f32 %v671_v40  ;;  %v597_v42 = vsel %vm594_vm6, %v596_v38, %v592_v41  ;;  %vm679_vm10 = vmor %vm677_vm9, %vm678_vm8  ;;  %v698_v56 = vand.u32 2147483648, %v671_v40  ;;  %v696_v58 = vand.u32 2147483647, %v671_v40 }
 0x38c   :  { %v674_v43 = vsub.f32 1.0, %v673_v39  ;;  %v598_v44 = vmul.f32 %v2478_v63, %v597_v42  ;;  %vm692_vm13 = vweird.f32 %v671_v40 }
 0x38d   :  { %v699_v60 = vor.u32 1.1754944e-38, %v698_v56  ;;  %vm697_vm15 = vcmp.eq.f32.partialorder %v696_v58, 8.507059e+37 }
 0x38e   :  { %v675_v46 = vmul.f32 %v2488_v36, %v674_v43  ;;  %2323 = vmatmul.msk.f32.gmra.mxu2 %vm473_vm3, %v598_v44 }
 0x390   :  { %v676_v48 = vadd.f32 %v2488_v36, %v675_v46 }
 0x391   :  { %v2490_v49 = vpop.eup %2489 }
 0x392   :  { %v688_v51 = vmul.f32 %v2490_v49, %v671_v40  ;;  %v680_v52 = vsel %vm679_vm10, %v2488_v36, %v676_v48  ;;  %vm693_vm12 = vweird.f32 %v2490_v49 }
 0x393   :  { %v685_v53 = vsel %vm682_vm11, %v684_v50, %v680_v52  ;;  %vm694_vm14 = vmor %vm692_vm13, %vm693_vm12 }
 0x394   :  { %v689_v54 = vsub.f32 1.0, %v688_v51  ;;  %v686_v55 = vmul.f32 %v3316_v5, %v685_v53  ;;  %v467_v5 = vpop.f32.mrf.mxu3 }
 0x395   :  { %v468_v20 = vadd.f32 %v467_v5, %v444_v1 }
 0x396   :  { %v690_v57 = vmul.f32 %v2490_v49, %v689_v54  ;;  %2324 = vmatmul.msk.f32.vlgmr.msrb.gmra.mxu3 %vm473_vm3, %v686_v55  ;;  %2334 = vmatmul.msk.f32.vlgmr.msrb.gmra.mxu2 %vm394_vm2, %v3324_v9 }
 0x397   :  { %1055 = vmatpush.msrb.mxu3 %v3327_v13 }
 0x398   :  { %v691_v59 = vadd.f32 %v2490_v49, %v690_v57 }
 0x399   :  { %1056 = vmatpush.msrb.mxu3 %v3324_v9 }
 0x39a   :  { %v695_v61 = vsel %vm694_vm14, %v2490_v49, %v691_v59 }
 0x39b   :  { %v700_v62 = vsel %vm697_vm15, %v699_v60, %v695_v61 }
 0x39c   :  { %v701_v63 = vmul.f32 %v3320_v7, %v700_v62  ;;  %v470_v14 = vpop.f32.mrf.mxu3  ;;  %v3350_v7 = vand.u32 127, %v526_v12 }
 0x39d   :  { %v471_v31 = vadd.f32 %v470_v14, %v447_v3 }
 0x39e   :  { %2325 = vmatmul.msk.f32.gmra.mxu3 %vm473_vm3, %v701_v63  ;;  %2335 = vmatmul.msk.f32.gmra.mxu2 %vm394_vm2, %v3327_v13  ;;  %vm731_vm5 = vcmp.ge.s32.totalorder %v3350_v7, 8  ;;  %vm732_vm6 = vcmp.lt.s32.totalorder %v3350_v7, 16  ;;  %vm629_vm8 = vcmp.lt.s32.totalorder %v3350_v7, 8 }
 0x39f   :  { %vm3355_vm9 = vmand %vm731_vm5, %vm732_vm6 }
 0x3a6   :  { %2338 = vmatmul.msk.f32.vlgmr.msra.gmra.mxu3 %vm394_vm2, %v757_v0 }
 0x409   :  { %v622_v9 = vpop.f32.mrf.mxu2 }
 0x40a   :  { %v631_v18 = vsel %vm629_vm8, %v622_v9, 0.0 }
 0x411   :  { %v625_v15 = vpop.f32.mrf.mxu2 }
 0x412   :  { %v632_v29 = vsel %vm629_vm8, %v625_v15, 0.0 }
 0x419   :  { %v725_v16 = vpop.f32.mrf.mxu3  ;;  %v835_v17 = vpop.f32.mrf.mxu2 }
 0x41a   :  { %v734_v19 = vsel %vm3355_vm9, %v725_v16, 0.0  ;;  %866 = vperm.xlu0 %2458, %v835_v17   ;;  %969 = vperm.xlu2 %2460, %v835_v17  }
 0x41b   :  { %v736_v21 = vadd.f32 %v734_v19, %v631_v18 }
 0x41d   :  { %v738_v23 = vadd.f32 %v736_v21, %v468_v20 }
 0x41f   :  { %v743_v25 = vadd.f32 %v2469_v22, %v738_v23 }
 0x421   :  { %v747_v26 = vmul.f32 1.442695, %v743_v25  ;;  %v728_v27 = vpop.f32.mrf.mxu3  ;;  %v838_v28 = vpop.f32.mrf.mxu2  ;;  %vm745_vm10 = vcmp.gt.f32.partialorder %v743_v25, 0.0 }
 0x422   :  { %v735_v30 = vsel %vm3355_vm9, %v728_v27, 0.0  ;;  %2461 = vset.pattern.permute.xlu2 %v3006_v11  ;;  %973 = vperm.xlu1 %2459, %v838_v28  }
 0x423   :  { %2491 = vpow2.f32 %v747_v26  ;;  %v737_v32 = vadd.f32 %v735_v30, %v632_v29  ;;  %871 = vperm.xlu2 %2461, %v838_v28  }
 0x425   :  { %v739_v33 = vadd.f32 %v737_v32, %v471_v31 }
 0x427   :  { %v744_v34 = vadd.f32 %v2469_v22, %v739_v33 }
 0x429   :  { %v2492_v35 = vpop.eup %2491  ;;  %v749_v36 = vmul.f32 1.442695, %v744_v34  ;;  %vm746_vm11 = vcmp.gt.f32.partialorder %v744_v34, 0.0  ;;  %v861_v43 = vpop.f32.mrf.mxu3 }
 0x42a   :  { %v2326_v38 = vadd.f32 -1.0, %v2492_v35  ;;  %2462 = vset.pattern.permute.xlu1 %v3006_v11  ;;  %v976_v44 = vperm.slane %v861_v43, 1  ;;  %v874_v49 = vperm.slane %v861_v43, 0  ;;  %v756_v43 = vld [vmem:[#allocation19] sm:$0x3f] }
 0x42b   :  { %2493 = vpow2.f32 %v749_v36  ;;  %2463 = vset.pattern.permute.xlu2 %v3005_v10  ;;  %2331 = vmatpush.msk.msra.mxu0 %vm367_vm0, %v756_v43 }
 0x42c   :  { %v3370_v39 = vsel %vm745_vm10, %v743_v25, %v2326_v38  ;;  %2332 = vmatmul.msk.f32.vlgmr.msra.gmra.mxu0 %vm360_vm1, %v3256_v2 }
 0x42d   :  { %2345 = vmatmul.msk.f32.vlgmr.msra.gmra.mxu2 %vm473_vm3, %v3370_v39 }
 0x431   :  { %v2494_v40 = vpop.eup %2493 }
 0x432   :  { %v2327_v41 = vadd.f32 -1.0, %v2494_v40 }
 0x434   :  { %v3374_v42 = vsel %vm746_vm11, %v744_v34, %v2327_v41  ;;  %2333 = vmatmul.msk.f32.gmra.mxu0 %vm360_vm1, %v3261_v4 }
 0x435   :  { %2346 = vmatmul.msk.f32.gmra.mxu2 %vm473_vm3, %v3374_v42 }
 0x474   :  { %v970_v45 = vpop.permute.xlu2 %969 }
 0x475   :  { %v977_v46 = vadd.f32 %v976_v44, %v970_v45 }
 0x477   :  { %v981_v47 = vmul.f32 0.2, %v977_v46  ;;  %vm979_vm12 = vcmp.ge.f32.partialorder %v977_v46, 0.0 }
 0x479   :  { %v983_v48 = vsel %vm979_vm12, %v977_v46, %v981_v47 }
 0x47a   :  { %v985_v50 = vsel %vm547_vm4, %v983_v48, -1e+30 }
 0x47b   :  { %v987_v51 = vsel %vm473_vm3, %v985_v50, -inf }
 0x47c   :  { %988 = vmax.xlane.f32.xlu0 %v987_v51  ;;  %v1082_v51 = vld [vmem:[%s3692_s12] sm:$0xff] }
 0x47d   :  { %v872_v52 = vpop.permute.xlu2 %871 }
 0x47e   :  { %v876_v53 = vadd.f32 %v874_v49, %v872_v52 }
 0x480   :  { %v880_v54 = vmul.f32 0.2, %v876_v53  ;;  %vm878_vm13 = vcmp.ge.f32.partialorder %v876_v53, 0.0 }
 0x482   :  { %v882_v55 = vsel %vm878_vm13, %v876_v53, %v880_v54 }
 0x483   :  { %v884_v56 = vsel %vm548_vm7, %v882_v55, -1e+30 }
 0x484   :  { %v888_v57 = vsel %vm473_vm3, %v884_v56, -inf }
 0x485   :  { %889 = vmax.xlane.f32.xlu0 %v888_v57 }
 0x48c   :  { %v867_v58 = vpop.permute.xlu0 %866 }
 0x48d   :  { %v875_v59 = vadd.f32 %v874_v49, %v867_v58 }
 0x48f   :  { %v879_v60 = vmul.f32 0.2, %v875_v59  ;;  %vm877_vm14 = vcmp.ge.f32.partialorder %v875_v59, 0.0 }
 0x491   :  { %v881_v61 = vsel %vm877_vm14, %v875_v59, %v879_v60 }
 0x492   :  { %v883_v62 = vsel %vm547_vm4, %v881_v61, -1e+30 }
 0x493   :  { %v885_v63 = vsel %vm473_vm3, %v883_v62, -inf }
 0x494   :  { %v974_v0 = vpop.permute.xlu1 %973  ;;  %886 = vmax.xlane.f32.xlu2 %v885_v63 }
 0x495   :  { %v978_v1 = vadd.f32 %v976_v44, %v974_v0 }
 0x497   :  { %v982_v3 = vmul.f32 0.2, %v978_v1  ;;  %vm980_vm15 = vcmp.ge.f32.partialorder %v978_v1, 0.0 }
 0x499   :  { %v984_v5 = vsel %vm980_vm15, %v978_v1, %v982_v3 }
 0x49a   :  { %v986_v6 = vsel %vm548_vm7, %v984_v5, -1e+30 }
 0x49b   :  { %v990_v8 = vsel %vm473_vm3, %v986_v6, -inf }
 0x49c   :  { %991 = vmax.xlane.f32.xlu1 %v990_v8 }
 0x4ef   :  { %v989_v9 = vpop.xlane.xlu0 %988 }
 0x4f0   :  { %v993_v12 = vsub.f32 %v985_v50, %v989_v9  ;;  %v1083_v50 = vld [vmem:[%s3692_s12 + $0x8] sm:$0xff] }
 0x4f1   :  { %1184 = vmatpush.msra.mxu3 %v1083_v50 }
 0x4f2   :  { %v995_v14 = vmul.f32 1.442695, %v993_v12 }
 0x4f3   :  { %1185 = vmatpush.msra.mxu3 %v1082_v51 }
 0x4f4   :  { %2495 = vpow2.f32 %v995_v14 }
 0x4f8   :  { %v890_v15 = vpop.xlane.xlu0 %889 }
 0x4f9   :  { %v892_v16 = vsub.f32 %v884_v56, %v890_v15 }
 0x4fa   :  { %v2496_v17 = vpop.eup %2495 }
 0x4fb   :  { %v895_v18 = vmul.f32 1.442695, %v892_v16  ;;  %v999_v19 = vsel %vm473_vm3, %v2496_v17, 0.0 }
 0x4fc   :  { %1000 = vadd.xlane.f32.xlu2 %v999_v19 }
 0x4fd   :  { %2497 = vpow2.f32 %v895_v18 }
 0x503   :  { %v3391_v20 = vpop.eup %2497 }
 0x504   :  { %v900_v21 = vsel %vm473_vm3, %v3391_v20, 0.0 }
 0x505   :  { %901 = vadd.xlane.f32.xlu2 %v900_v21 }
 0x507   :  { %v887_v22 = vpop.xlane.xlu2 %886 }
 0x508   :  { %v891_v23 = vsub.f32 %v883_v62, %v887_v22 }
 0x50a   :  { %v893_v25 = vmul.f32 1.442695, %v891_v23 }
 0x50c   :  { %2499 = vpow2.f32 %v893_v25 }
 0x50f   :  { %v992_v26 = vpop.xlane.xlu1 %991 }
 0x510   :  { %v994_v27 = vsub.f32 %v986_v6, %v992_v26 }
 0x512   :  { %v3395_v28 = vpop.eup %2499  ;;  %v997_v29 = vmul.f32 1.442695, %v994_v27 }
 0x513   :  { %v897_v30 = vsel %vm473_vm3, %v3395_v28, 0.0 }
 0x514   :  { %2501 = vpow2.f32 %v997_v29  ;;  %898 = vadd.xlane.f32.xlu1 %v897_v30  ;;  %v1081_v29 = vld [vmem:[#allocation8] sm:$0xff]  ;;  %v1084_v30 = vld [vmem:[#allocation10] sm:$0xff] }
 0x515   :  { %1110 = vmatpush.msrb.mxu0 %v1081_v29  ;;  %1162 = vmatpush.msra.mxu1 %v1084_v30 }
 0x51a   :  { %v3399_v31 = vpop.eup %2501 }
 0x51b   :  { %v1002_v32 = vsel %vm473_vm3, %v3399_v31, 0.0 }
 0x51c   :  { %1003 = vadd.xlane.f32.xlu0 %v1002_v32  ;;  %v1464_v32 = vld [vmem:[%s3693_s27] sm:$0xff] }
 0x56f   :  { %v1001_v33 = vpop.xlane.xlu2 %1000 }
 0x570   :  { %2503 = vrcp.f32 %v1001_v33  ;;  %v1016_v38 = vand.u32 2147483648, %v1001_v33  ;;  %v1014_v41 = vand.u32 2147483647, %v1001_v33  ;;  %vm1010_vm6 = vweird.f32 %v1001_v33 }
 0x572   :  { %v1017_v45 = vor.u32 1.1754944e-38, %v1016_v38  ;;  %vm1015_vm11 = vcmp.eq.f32.partialorder %v1014_v41, 8.507059e+37  ;;  %v2470_v38 = vld [vmem:[#allocation22] ss:$0 sm:$0xff] }
 0x576   :  { %v2504_v34 = vpop.eup %2503 }
 0x577   :  { %v1006_v35 = vmul.f32 %v2504_v34, %v1001_v33  ;;  %vm1011_vm5 = vweird.f32 %v2504_v34 }
 0x578   :  { %vm1012_vm10 = vmor %vm1010_vm6, %vm1011_vm5  ;;  %v902_v47 = vpop.xlane.xlu2 %901 }
 0x579   :  { %v1007_v36 = vsub.f32 1.0, %v1006_v35  ;;  %2505 = vrcp.f32 %v902_v47  ;;  %v929_v6 = vand.u32 2147483648, %v902_v47  ;;  %vm923_vm15 = vweird.f32 %v902_v47  ;;  %v806_v35 = vpop.f32.mrf.mxu0 }
 0x57a   :  { %v927_v14 = vand.u32 2147483647, %v902_v47 }
 0x57b   :  { %v1008_v40 = vmul.f32 %v2504_v34, %v1007_v36  ;;  %v930_v19 = vor.u32 1.1754944e-38, %v929_v6 }
 0x57d   :  { %v1009_v44 = vadd.f32 %v2504_v34, %v1008_v40 }
 0x57f   :  { %v1013_v46 = vsel %vm1012_vm10, %v2504_v34, %v1009_v44  ;;  %v2506_v53 = vpop.eup %2505 }
 0x580   :  { %v1018_v48 = vsel %vm1015_vm11, %v1017_v45, %v1013_v46  ;;  %v919_v2 = vmul.f32 %v2506_v53, %v902_v47  ;;  %vm924_vm13 = vweird.f32 %v2506_v53  ;;  %vm928_vm11 = vcmp.eq.f32.partialorder %v927_v14, 8.507059e+37 }
 0x581   :  { %v1019_v49 = vmul.f32 %v2496_v17, %v1018_v48  ;;  %vm925_vm5 = vmor %vm923_vm15, %vm924_vm13  ;;  %v809_v48 = vpop.f32.mrf.mxu0  ;;  %vm1516_vm15 = vcmask 97280  }
 0x582   :  { %v920_v55 = vsub.f32 1.0, %v919_v2  ;;  %v1465_v2 = vld [vmem:[#allocation23] sm:$0xff] }
 0x583   :  { %2341 = vmatmul.msk.f32.vlgmr.msrb.gmra.mxu3 %vm473_vm3, %v1019_v49 }
 0x584   :  { %v921_v60 = vmul.f32 %v2506_v53, %v920_v55  ;;  %1485 = vmatpush.msrb.mxu3 %v1464_v32  ;;  %v1141_v55 = vpop.f32.mrf.mxu2 }
 0x586   :  { %v922_v5 = vadd.f32 %v2506_v53, %v921_v60 }
 0x587   :  { %v899_v52 = vpop.xlane.xlu1 %898 }
 0x588   :  { %2507 = vrcp.f32 %v899_v52  ;;  %v914_v59 = vand.u32 2147483648, %v899_v52  ;;  %v912_v62 = vand.u32 2147483647, %v899_v52  ;;  %vm908_vm12 = vweird.f32 %v899_v52 }
 0x589   :  { %v926_v17 = vsel %vm925_vm5, %v2506_v53, %v922_v5  ;;  %v1086_v53 = vld [vmem:[%s3694_s2] sm:$0xff] }
 0x58a   :  { %v915_v4 = vor.u32 1.1754944e-38, %v914_v59  ;;  %vm913_vm14 = vcmp.eq.f32.partialorder %v912_v62, 8.507059e+37  ;;  %v931_v23 = vsel %vm928_vm11, %v930_v19, %v926_v17 }
 0x58b   :  { %v932_v27 = vmul.f32 %v3391_v20, %v931_v23 }
 0x58c   :  { %v1144_v60 = vpop.f32.mrf.mxu2 }
 0x58e   :  { %v2508_v54 = vpop.eup %2507 }
 0x58f   :  { %v904_v56 = vmul.f32 %v2508_v54, %v899_v52  ;;  %v1004_v57 = vpop.xlane.xlu0 %1003  ;;  %vm909_vm0 = vweird.f32 %v2508_v54 }
 0x590   :  { %2509 = vrcp.f32 %v1004_v57  ;;  %vm910_vm1 = vmor %vm908_vm12, %vm909_vm0  ;;  %v1031_v15 = vand.u32 2147483648, %v1004_v57  ;;  %v1029_v18 = vand.u32 2147483647, %v1004_v57  ;;  %vm1025_vm10 = vweird.f32 %v1004_v57 }
 0x591   :  { %v905_v58 = vsub.f32 1.0, %v904_v56 }
 0x592   :  { %v1032_v22 = vor.u32 1.1754944e-38, %v1031_v15  ;;  %vm1030_vm12 = vcmp.eq.f32.partialorder %v1029_v18, 8.507059e+37 }
 0x593   :  { %v906_v61 = vmul.f32 %v2508_v54, %v905_v58 }
 0x595   :  { %v907_v63 = vadd.f32 %v2508_v54, %v906_v61 }
 0x596   :  { %v2510_v0 = vpop.eup %2509 }
 0x597   :  { %v911_v1 = vsel %vm910_vm1, %v2508_v54, %v907_v63  ;;  %v1021_v3 = vmul.f32 %v2510_v0, %v1004_v57  ;;  %vm1026_vm6 = vweird.f32 %v2510_v0  ;;  %vm1064_vm1 = vcmp.ge.s32.totalorder %v3350_v7, 4 }
 0x598   :  { %v916_v8 = vsel %vm913_vm14, %v915_v4, %v911_v1  ;;  %vm1027_vm0 = vmor %vm1025_vm10, %vm1026_vm6  ;;  %vm962_vm14 = vcmp.lt.s32.totalorder %v3350_v7, 4 }
 0x599   :  { %v1022_v9 = vsub.f32 1.0, %v1021_v3  ;;  %v917_v12 = vmul.f32 %v3395_v28, %v916_v8  ;;  %vm3425_vm13 = vmand %vm1064_vm1, %vm629_vm8 }
 0x59b   :  { %v1023_v16 = vmul.f32 %v2510_v0, %v1022_v9  ;;  %2339 = vmatmul.msk.f32.vlgmr.msrb.gmra.mxu1 %vm473_vm3, %v917_v12 }
 0x59d   :  { %v1024_v21 = vadd.f32 %v2510_v0, %v1023_v16 }
 0x59f   :  { %v1028_v25 = vsel %vm1027_vm0, %v2510_v0, %v1024_v21  ;;  %v1085_v0 = vld [vmem:[#allocation11] sm:$0x3]  ;;  %vm1523_vm0 = vcmask 1043456  }
 0x5a0   :  { %v1033_v26 = vsel %vm1030_vm12, %v1032_v22, %v1028_v25 }
 0x5a1   :  { %v1034_v28 = vmul.f32 %v3399_v31, %v1033_v26 }
 0x5a3   :  { %2340 = vmatmul.msk.f32.gmra.mxu1 %vm473_vm3, %v932_v27  ;;  %2342 = vmatmul.msk.f32.gmra.mxu3 %vm473_vm3, %v1034_v28 }
 0x5ab   :  { %2349 = vmatmul.msk.f32.vlgmr.msra.gmra.mxu3 %vm473_vm3, %v3370_v39  ;;  %v1087_v39 = vld [vmem:[%s3694_s2 + $0x8] sm:$0xff] }
 0x5ac   :  { %1213 = vmatpush.msra.mxu0 %v1087_v39 }
 0x5ae   :  { %1214 = vmatpush.msra.mxu0 %v1086_v53 }
 0x5b3   :  { %2350 = vmatmul.msk.f32.gmra.mxu3 %vm473_vm3, %v3374_v42 }
 0x606   :  { %v1058_v20 = vpop.f32.mrf.mxu3 }
 0x607   :  { %v1066_v33 = vsel %vm3425_vm13, %v1058_v20, 0.0 }
 0x618   :  { %v956_v42 = vpop.f32.mrf.mxu1 }
 0x619   :  { %v964_v34 = vsel %vm962_vm14, %v956_v42, 0.0 }
 0x61a   :  { %v1068_v36 = vadd.f32 %v1066_v33, %v964_v34 }
 0x61c   :  { %v1070_v40 = vadd.f32 %v1068_v36, %v806_v35 }
 0x61e   :  { %v1075_v41 = vadd.f32 %v2470_v38, %v1070_v40 }
 0x620   :  { %2511 = vtanh.f32 %v1075_v41  ;;  %v959_v43 = vpop.f32.mrf.mxu1 }
 0x621   :  { %v965_v46 = vsel %vm962_vm14, %v959_v43, 0.0 }
 0x626   :  { %v2512_v44 = vpop.eup %2511  ;;  %v1061_v45 = vpop.f32.mrf.mxu3 }
 0x627   :  { %v1067_v47 = vsel %vm3425_vm13, %v1061_v45, 0.0  ;;  %2343 = vmatmul.msk.f32.vlgmr.msrb.gmra.mxu0 %vm394_vm2, %v2512_v44  ;;  %2347 = vmatmul.msk.f32.vlgmr.msra.gmra.mxu1 %vm394_vm2, %v2512_v44 }
 0x628   :  { %v1069_v49 = vadd.f32 %v1067_v47, %v965_v46  ;;  %2362 = vmatmul.msk.f32.vlgmr.msrb.gmra.mxu3 %vm394_vm2, %v2512_v44  ;;  %1508 = vmatpush.msrb.mxu0 %v1465_v2 }
 0x62a   :  { %v1071_v50 = vadd.f32 %v1069_v49, %v809_v48 }
 0x62c   :  { %v1076_v51 = vadd.f32 %v2470_v38, %v1071_v50 }
 0x62e   :  { %2513 = vtanh.f32 %v1076_v51  ;;  %v3442_v54 = vpop.f32.mrf.mxu3 }
 0x634   :  { %v2514_v52 = vpop.eup %2513 }
 0x635   :  { %2344 = vmatmul.msk.f32.gmra.mxu0 %vm394_vm2, %v2514_v52  ;;  %2348 = vmatmul.msk.f32.gmra.mxu1 %vm394_vm2, %v2514_v52 }
 0x636   :  { %2363 = vmatmul.msk.f32.gmra.mxu3 %vm394_vm2, %v2514_v52  ;;  %v3445_v58 = vpop.f32.mrf.mxu3 }
 0x6a4   :  { %v1112_v56 = vpop.f32.mrf.mxu0 }
 0x6a5   :  { %v1142_v57 = vadd.f32 %v1141_v55, %v1112_v56 }
 0x6a7   :  { %2351 = vmatmul.msk.f32.vlgmr.msra.gmra.mxu0 %vm473_vm3, %v1142_v57 }
 0x6ab   :  { %v3447_v59 = vpop.f32.mrf.mxu3 }
 0x6b2   :  { %v1115_v61 = vpop.f32.mrf.mxu0 }
 0x6b3   :  { %v1145_v62 = vadd.f32 %v1144_v60, %v1115_v61  ;;  %v1468_v60 = vld [vmem:[%s3697_s10 + $0x8] sm:$0xf]  ;;  %v1467_v61 = vld [vmem:[%s3697_s10] sm:$0xff] }
 0x6b5   :  { %2352 = vmatmul.msk.f32.gmra.mxu0 %vm473_vm3, %v1145_v62  ;;  %2353 = vmatpush.xpose.msk.msrb.mxu2 %vm473_vm3, %v1145_v62 }
 0x6b6   :  { %1334 = vmatpush.msrb.mxu1 %v1145_v62 }
 0x6b8   :  { %1335 = vmatpush.msrb.mxu1 %v1142_v57 }
 0x6b9   :  { %v3451_v63 = vpop.f32.mrf.mxu3  ;;  %2354 = vmatpush.xpose.msk.msrb.mxu2 %vm473_vm3, %v1142_v57 }
 0x6ba   :  { %1662 = vmatpush.msra.mxu3 %v3451_v63  ;;  %1764 = vmatpush.msra.mxu0 %v3451_v63 }
 0x6bb   :  { %2366 = vmatpush.msk.msra.mxu1 %vm1523_vm0, %v1468_v60  ;;  %v1789_v60 = vld [vmem:[%s3699_s15] sm:$0xff] }
 0x6bc   :  { %1663 = vmatpush.msra.mxu3 %v3447_v59  ;;  %1765 = vmatpush.msra.mxu0 %v3447_v59 }
 0x6bd   :  { %1434 = vmatpush.msra.mxu2 %v1145_v62  ;;  %2364 = vmatmul.msk.f32.vlgmr.msrb.gmra.mxu0 %vm394_vm2, %v2512_v44 }
 0x6be   :  { %2355 = vmatmul.msk.f32.vlgmr.msrb.gmra.mxu2 %vm473_vm3, %v1085_v0  ;;  %1542 = vmatpush.msra.mxu1 %v1467_v61 }
 0x6bf   :  { %1435 = vmatpush.msra.mxu2 %v1142_v57 }
 0x6c1   :  { %2369 = vmatpush.xpose.msk.msrb.mxu2 %vm1516_vm15, %v3451_v63 }
 0x6c5   :  { %2370 = vmatpush.xpose.msk.msrb.mxu2 %vm1516_vm15, %v3447_v59  ;;  %2365 = vmatmul.msk.f32.gmra.mxu0 %vm394_vm2, %v2514_v52 }
 0x724   :  { %v1216_v4 = vpop.f32.mrf.mxu0 }
 0x725   :  { %1348 = vperm.xlu2 %2463, %v1216_v4   ;;  %1247 = vperm.xlu1 %2462, %v1216_v4  }
 0x732   :  { %v1219_v1 = vpop.f32.mrf.mxu0 }
 0x733   :  { %1252 = vperm.xlu0 %2458, %v1219_v1  }
 0x73b   :  { %2464 = vset.pattern.permute.xlu0 %v3005_v10 }
 0x73c   :  { %1352 = vperm.xlu0 %2464, %v1219_v1  }
 0x741   :  { %v1242_v3 = vpop.f32.mrf.mxu2 }
 0x742   :  { %v1355_v5 = vperm.slane %v1242_v3, 1  ;;  %v1255_v16 = vperm.slane %v1242_v3, 0 }
 0x744   :  { %2465 = vset.pattern.permute.xlu0 %v3006_v11 }
 0x77f   :  { %v1349_v6 = vpop.permute.xlu2 %1348 }
 0x780   :  { %v1356_v8 = vadd.f32 %v1355_v5, %v1349_v6 }
 0x782   :  { %v1360_v9 = vmul.f32 0.2, %v1356_v8  ;;  %vm1358_vm5 = vcmp.ge.f32.partialorder %v1356_v8, 0.0 }
 0x784   :  { %v1362_v12 = vsel %vm1358_vm5, %v1356_v8, %v1360_v9 }
 0x785   :  { %v1364_v14 = vsel %vm547_vm4, %v1362_v12, -1e+30 }
 0x786   :  { %v1366_v15 = vsel %vm473_vm3, %v1364_v14, -inf }
 0x787   :  { %1367 = vmax.xlane.f32.xlu0 %v1366_v15 }
 0x797   :  { %v1248_v17 = vpop.permute.xlu1 %1247 }
 0x798   :  { %v1256_v18 = vadd.f32 %v1255_v16, %v1248_v17 }
 0x79a   :  { %v1260_v19 = vmul.f32 0.2, %v1256_v18  ;;  %vm1258_vm6 = vcmp.ge.f32.partialorder %v1256_v18, 0.0 }
 0x79c   :  { %v1262_v21 = vsel %vm1258_vm6, %v1256_v18, %v1260_v19 }
 0x79d   :  { %v1264_v22 = vsel %vm547_vm4, %v1262_v21, -1e+30 }
 0x79e   :  { %v1266_v23 = vsel %vm473_vm3, %v1264_v22, -inf }
 0x79f   :  { %1267 = vmax.xlane.f32.xlu1 %v1266_v23 }
 0x7a5   :  { %v1253_v25 = vpop.permute.xlu0 %1252 }
 0x7a6   :  { %v1257_v26 = vadd.f32 %v1255_v16, %v1253_v25 }
 0x7a8   :  { %v1261_v27 = vmul.f32 0.2, %v1257_v26  ;;  %vm1259_vm10 = vcmp.ge.f32.partialorder %v1257_v26, 0.0 }
 0x7aa   :  { %v1263_v28 = vsel %vm1259_vm10, %v1257_v26, %v1261_v27 }
 0x7ab   :  { %v1265_v29 = vsel %vm548_vm7, %v1263_v28, -1e+30 }
 0x7ac   :  { %v1269_v30 = vsel %vm473_vm3, %v1265_v29, -inf }
 0x7ad   :  { %1270 = vmax.xlane.f32.xlu2 %v1269_v30 }
 0x7ae   :  { %v1353_v32 = vpop.permute.xlu0 %1352 }
 0x7af   :  { %v1357_v20 = vadd.f32 %v1355_v5, %v1353_v32 }
 0x7b1   :  { %v1361_v31 = vmul.f32 0.2, %v1357_v20  ;;  %vm1359_vm11 = vcmp.ge.f32.partialorder %v1357_v20, 0.0 }
 0x7b3   :  { %v1363_v39 = vsel %vm1359_vm11, %v1357_v20, %v1361_v31 }
 0x7b4   :  { %v1365_v42 = vsel %vm548_vm7, %v1363_v39, -1e+30 }
 0x7b5   :  { %v1369_v33 = vsel %vm473_vm3, %v1365_v42, -inf }
 0x7b6   :  { %1370 = vmax.xlane.f32.xlu1 %v1369_v33 }
 0x7fa   :  { %v1368_v34 = vpop.xlane.xlu0 %1367 }
 0x7fb   :  { %v1372_v38 = vsub.f32 %v1364_v14, %v1368_v34 }
 0x7fd   :  { %v1374_v41 = vmul.f32 1.442695, %v1372_v38 }
 0x812   :  { %v1268_v35 = vpop.xlane.xlu1 %1267 }
 0x813   :  { %v1272_v36 = vsub.f32 %v1264_v22, %v1268_v35 }
 0x815   :  { %v1274_v40 = vmul.f32 1.442695, %v1272_v36 }
 0x817   :  { %2515 = vpow2.f32 %v1274_v40 }
 0x818   :  { %2517 = vpow2.f32 %v1374_v41 }
 0x81d   :  { %v2516_v43 = vpop.eup %2515 }
 0x81e   :  { %v1278_v44 = vsel %vm473_vm3, %v2516_v43, 0.0  ;;  %v3480_v47 = vpop.eup %2517 }
 0x81f   :  { %1279 = vadd.xlane.f32.xlu2 %v1278_v44  ;;  %v1378_v49 = vsel %vm473_vm3, %v3480_v47, 0.0 }
 0x820   :  { %v1271_v45 = vpop.xlane.xlu2 %1270 }
 0x821   :  { %v1273_v46 = vsub.f32 %v1265_v29, %v1271_v45 }
 0x823   :  { %v1276_v48 = vmul.f32 1.442695, %v1273_v46 }
 0x825   :  { %2519 = vpow2.f32 %v1276_v48 }
 0x827   :  { %1379 = vadd.xlane.f32.xlu2 %v1378_v49 }
 0x829   :  { %v1371_v50 = vpop.xlane.xlu1 %1370 }
 0x82a   :  { %v1373_v51 = vsub.f32 %v1365_v42, %v1371_v50 }
 0x82b   :  { %v3484_v52 = vpop.eup %2519 }
 0x82c   :  { %v1376_v53 = vmul.f32 1.442695, %v1373_v51  ;;  %v1281_v2 = vsel %vm473_vm3, %v3484_v52, 0.0 }
 0x82d   :  { %1282 = vadd.xlane.f32.xlu1 %v1281_v2  ;;  %v1164_v2 = vpop.f32.mrf.mxu1 }
 0x82e   :  { %2521 = vpow2.f32 %v1376_v53 }
 0x834   :  { %v3488_v55 = vpop.eup %2521 }
 0x835   :  { %v1381_v56 = vsel %vm473_vm3, %v3488_v55, 0.0 }
 0x836   :  { %1382 = vadd.xlane.f32.xlu0 %v1381_v56  ;;  %v1167_v56 = vpop.f32.mrf.mxu1 }
 0x892   :  { %v1280_v57 = vpop.xlane.xlu2 %1279 }
 0x893   :  { %2523 = vrcp.f32 %v1280_v57  ;;  %v1295_v3 = vand.u32 2147483648, %v1280_v57  ;;  %v1293_v6 = vand.u32 2147483647, %v1280_v57  ;;  %vm1289_vm1 = vweird.f32 %v1280_v57 }
 0x895   :  { %v1296_v14 = vor.u32 1.1754944e-38, %v1295_v3  ;;  %vm1294_vm14 = vcmp.eq.f32.partialorder %v1293_v6, 8.507059e+37 }
 0x899   :  { %v2524_v62 = vpop.eup %2523 }
 0x89a   :  { %v1285_v0 = vmul.f32 %v2524_v62, %v1280_v57  ;;  %v1380_v4 = vpop.xlane.xlu2 %1379  ;;  %vm1290_vm12 = vweird.f32 %v2524_v62  ;;  %v1790_v57 = vld [vmem:[%s3699_s15 + $0x8] sm:$0xff] }
 0x89b   :  { %2525 = vrcp.f32 %v1380_v4  ;;  %vm1291_vm13 = vmor %vm1289_vm1, %vm1290_vm12  ;;  %v1395_v21 = vand.u32 2147483648, %v1380_v4  ;;  %v1393_v23 = vand.u32 2147483647, %v1380_v4  ;;  %vm1389_vm6 = vweird.f32 %v1380_v4 }
 0x89c   :  { %v1286_v1 = vsub.f32 1.0, %v1285_v0 }
 0x89d   :  { %v1396_v28 = vor.u32 1.1754944e-38, %v1395_v21  ;;  %vm1394_vm11 = vcmp.eq.f32.partialorder %v1393_v23, 8.507059e+37 }
 0x89e   :  { %v1287_v5 = vmul.f32 %v2524_v62, %v1286_v1  ;;  %v2471_v1 = vld [vmem:[#allocation13] ss:$0 sm:$0xff] }
 0x8a0   :  { %v1288_v8 = vadd.f32 %v2524_v62, %v1287_v5  ;;  %v1283_v9 = vpop.xlane.xlu1 %1282 }
 0x8a1   :  { %v2526_v12 = vpop.eup %2525  ;;  %2527 = vrcp.f32 %v1283_v9  ;;  %v1310_v31 = vand.u32 2147483648, %v1283_v9  ;;  %v1308_v33 = vand.u32 2147483647, %v1283_v9  ;;  %vm1304_vm1 = vweird.f32 %v1283_v9 }
 0x8a2   :  { %v1292_v15 = vsel %vm1291_vm13, %v2524_v62, %v1288_v8  ;;  %v1385_v16 = vmul.f32 %v2526_v12, %v1380_v4  ;;  %vm1390_vm5 = vweird.f32 %v2526_v12  ;;  %v1188_v4 = vadd.f32 %v3442_v54, %v1164_v2 }
 0x8a3   :  { %v1297_v17 = vsel %vm1294_vm14, %v1296_v14, %v1292_v15  ;;  %vm1391_vm10 = vmor %vm1389_vm6, %vm1390_vm5  ;;  %v1311_v35 = vor.u32 1.1754944e-38, %v1310_v31  ;;  %vm1309_vm14 = vcmp.eq.f32.partialorder %v1308_v33, 8.507059e+37  ;;  %v1191_v54 = vadd.f32 %v3445_v58, %v1167_v56 }
 0x8a4   :  { %v1386_v18 = vsub.f32 1.0, %v1385_v16  ;;  %v1298_v19 = vmul.f32 %v2516_v43, %v1297_v17 }
 0x8a6   :  { %v1387_v22 = vmul.f32 %v2526_v12, %v1386_v18  ;;  %2356 = vmatmul.msk.f32.vlgmr.msrb.gmra.mxu1 %vm473_vm3, %v1298_v19 }
 0x8a7   :  { %v2528_v25 = vpop.eup %2527  ;;  %1853 = vmatpush.msrb.mxu1 %v1790_v57 }
 0x8a8   :  { %v1388_v26 = vadd.f32 %v2526_v12, %v1387_v22  ;;  %v1300_v27 = vmul.f32 %v2528_v25, %v1283_v9  ;;  %vm1305_vm12 = vweird.f32 %v2528_v25 }
 0x8a9   :  { %v1383_v29 = vpop.xlane.xlu0 %1382  ;;  %vm1306_vm13 = vmor %vm1304_vm1, %vm1305_vm12  ;;  %1854 = vmatpush.msrb.mxu1 %v1789_v60 }
 0x8aa   :  { %v1392_v30 = vsel %vm1391_vm10, %v2526_v12, %v1388_v26  ;;  %v1301_v32 = vsub.f32 1.0, %v1300_v27  ;;  %2529 = vrcp.f32 %v1383_v29  ;;  %v1410_v45 = vand.u32 2147483648, %v1383_v29 }
 0x8ab   :  { %v1397_v20 = vsel %vm1394_vm11, %v1396_v28, %v1392_v30  ;;  %vm1404_vm6 = vweird.f32 %v1383_v29 }
 0x8ac   :  { %v1302_v39 = vmul.f32 %v2528_v25, %v1301_v32  ;;  %v1398_v42 = vmul.f32 %v3480_v47, %v1397_v20  ;;  %v1408_v47 = vand.u32 2147483647, %v1383_v29  ;;  %v1411_v49 = vor.u32 1.1754944e-38, %v1410_v45 }
 0x8ae   :  { %2358 = vmatmul.msk.f32.vlgmr.msra.gmra.mxu2 %vm473_vm3, %v1398_v42  ;;  %v1303_v34 = vadd.f32 %v2528_v25, %v1302_v39  ;;  %vm1409_vm11 = vcmp.eq.f32.partialorder %v1408_v47, 8.507059e+37 }
 0x8b0   :  { %v2530_v36 = vpop.eup %2529  ;;  %v1307_v38 = vsel %vm1306_vm13, %v2528_v25, %v1303_v34 }
 0x8b1   :  { %v1400_v40 = vmul.f32 %v2530_v36, %v1383_v29  ;;  %v1312_v41 = vsel %vm1309_vm14, %v1311_v35, %v1307_v38  ;;  %vm1405_vm5 = vweird.f32 %v2530_v36 }
 0x8b2   :  { %v1313_v43 = vmul.f32 %v3484_v52, %v1312_v41  ;;  %vm1406_vm10 = vmor %vm1404_vm6, %vm1405_vm5  ;;  %v1466_v52 = vld [vmem:[%s3698_s11] sm:$0x3] }
 0x8b3   :  { %v1401_v44 = vsub.f32 1.0, %v1400_v40 }
 0x8b4   :  { %2357 = vmatmul.msk.f32.gmra.mxu1 %vm473_vm3, %v1313_v43 }
 0x8b5   :  { %v1402_v46 = vmul.f32 %v2530_v36, %v1401_v44 }
 0x8b7   :  { %v1403_v48 = vadd.f32 %v2530_v36, %v1402_v46 }
 0x8b9   :  { %v1407_v50 = vsel %vm1406_vm10, %v2530_v36, %v1403_v48 }
 0x8ba   :  { %v1412_v51 = vsel %vm1409_vm11, %v1411_v49, %v1407_v50 }
 0x8bb   :  { %v1413_v53 = vmul.f32 %v3488_v55, %v1412_v51 }
 0x8bc   :  { %2367 = vmatmul.msk.f32.vlgmr.msra.gmra.mxu1 %vm1516_vm15, %v3447_v59 }
 0x8bd   :  { %2359 = vmatmul.msk.f32.gmra.mxu2 %vm473_vm3, %v1413_v53 }
 0x8c4   :  { %2368 = vmatmul.msk.f32.gmra.mxu1 %vm1516_vm15, %v3451_v63 }
 0x8c5   :  { %2371 = vmatmul.msk.f32.vlgmr.msrb.gmra.mxu2 %vm1516_vm15, %v1466_v52 }
 0x923   :  { %v1337_v61 = vpop.f32.mrf.mxu1 }
 0x924   :  { %v1343_v59 = vsel %vm629_vm8, %v1337_v61, 0.0 }
 0x931   :  { %v1340_v62 = vpop.f32.mrf.mxu1  ;;  %v1437_v55 = vpop.f32.mrf.mxu2 }
 0x932   :  { %v1443_v0 = vsel %vm3355_vm9, %v1437_v55, 0.0  ;;  %v1344_v14 = vsel %vm629_vm8, %v1340_v62, 0.0 }
 0x933   :  { %v1445_v63 = vadd.f32 %v1443_v0, %v1343_v59 }
 0x935   :  { %v1447_v3 = vadd.f32 %v1445_v63, %v1188_v4 }
 0x937   :  { %v1452_v5 = vadd.f32 %v2471_v1, %v1447_v3 }
 0x939   :  { %v1456_v6 = vmul.f32 1.442695, %v1452_v5  ;;  %v1544_v8 = vpop.f32.mrf.mxu1  ;;  %vm1454_vm12 = vcmp.gt.f32.partialorder %v1452_v5, 0.0 }
 0x93a   :  { %1575 = vperm.xlu1 %2462, %v1544_v8   ;;  %1678 = vperm.xlu2 %2463, %v1544_v8  }
 0x93b   :  { %2531 = vpow2.f32 %v1456_v6 }
 0x940   :  { %v1440_v9 = vpop.f32.mrf.mxu2 }
 0x941   :  { %v2532_v12 = vpop.eup %2531  ;;  %v1444_v15 = vsel %vm3355_vm9, %v1440_v9, 0.0  ;;  %v1547_v16 = vpop.f32.mrf.mxu1 }
 0x942   :  { %v1446_v17 = vadd.f32 %v1444_v15, %v1344_v14  ;;  %2466 = vset.pattern.permute.xlu1 %v3005_v10  ;;  %1580 = vperm.xlu0 %2465, %v1547_v16   ;;  %v2360_v18 = vadd.f32 -1.0, %v2532_v12 }
 0x943   :  { %1682 = vperm.xlu1 %2466, %v1547_v16   ;;  %2467 = vset.pattern.permute.xlu2 %v3006_v11 }
 0x944   :  { %v1448_v19 = vadd.f32 %v1446_v17, %v1191_v54  ;;  %v3522_v21 = vsel %vm1454_vm12, %v1452_v5, %v2360_v18 }
 0x945   :  { %2379 = vmatmul.msk.f32.vlgmr.msrb.gmra.mxu1 %vm473_vm3, %v3522_v21 }
 0x946   :  { %v1453_v22 = vadd.f32 %v2471_v1, %v1448_v19 }
 0x948   :  { %v1458_v23 = vmul.f32 1.442695, %v1453_v22  ;;  %vm1455_vm1 = vcmp.gt.f32.partialorder %v1453_v22, 0.0  ;;  %v1570_v27 = vpop.f32.mrf.mxu2 }
 0x949   :  { %v1685_v28 = vperm.slane %v1570_v27, 1  ;;  %v1583_v39 = vperm.slane %v1570_v27, 0 }
 0x94a   :  { %2533 = vpow2.f32 %v1458_v23 }
 0x950   :  { %v2534_v25 = vpop.eup %2533 }
 0x951   :  { %v2361_v58 = vadd.f32 -1.0, %v2534_v25 }
 0x953   :  { %v3526_v26 = vsel %vm1455_vm1, %v1453_v22, %v2361_v58 }
 0x954   :  { %2380 = vmatmul.msk.f32.gmra.mxu1 %vm473_vm3, %v3526_v26 }
 0x994   :  { %v1679_v11 = vpop.permute.xlu2 %1678 }
 0x995   :  { %v1686_v29 = vadd.f32 %v1685_v28, %v1679_v11  ;;  %v1794_v11 = vld [vmem:[%s3700_s25 + $0x8] sm:$0xff] }
 0x996   :  { %1902 = vmatpush.msrb.mxu0 %v1794_v11 }
 0x997   :  { %v1690_v30 = vmul.f32 0.2, %v1686_v29  ;;  %vm1688_vm13 = vcmp.ge.f32.partialorder %v1686_v29, 0.0 }
 0x999   :  { %v1692_v32 = vsel %vm1688_vm13, %v1686_v29, %v1690_v30  ;;  %v1793_v29 = vld [vmem:[%s3700_s25] sm:$0xff] }
 0x99a   :  { %v1694_v20 = vsel %vm547_vm4, %v1692_v32, -1e+30  ;;  %1903 = vmatpush.msrb.mxu0 %v1793_v29 }
 0x99b   :  { %v1696_v31 = vsel %vm473_vm3, %v1694_v20, -inf }
 0x99c   :  { %1697 = vmax.xlane.f32.xlu1 %v1696_v31 }
 0x9ac   :  { %v1576_v42 = vpop.permute.xlu1 %1575 }
 0x9ad   :  { %v1584_v33 = vadd.f32 %v1583_v39, %v1576_v42 }
 0x9af   :  { %v1588_v34 = vmul.f32 0.2, %v1584_v33  ;;  %vm1586_vm14 = vcmp.ge.f32.partialorder %v1584_v33, 0.0 }
 0x9b1   :  { %v1590_v35 = vsel %vm1586_vm14, %v1584_v33, %v1588_v34 }
 0x9b2   :  { %v1592_v36 = vsel %vm547_vm4, %v1590_v35, -1e+30 }
 0x9b3   :  { %v1594_v38 = vsel %vm473_vm3, %v1592_v36, -inf }
 0x9b4   :  { %1595 = vmax.xlane.f32.xlu2 %v1594_v38  ;;  %v1581_v40 = vpop.permute.xlu0 %1580 }
 0x9b5   :  { %v1585_v41 = vadd.f32 %v1583_v39, %v1581_v40  ;;  %v1683_v43 = vpop.permute.xlu1 %1682 }
 0x9b6   :  { %v1687_v44 = vadd.f32 %v1685_v28, %v1683_v43 }
 0x9b7   :  { %v1589_v45 = vmul.f32 0.2, %v1585_v41  ;;  %vm1587_vm5 = vcmp.ge.f32.partialorder %v1585_v41, 0.0 }
 0x9b8   :  { %v1691_v46 = vmul.f32 0.2, %v1687_v44  ;;  %vm1689_vm6 = vcmp.ge.f32.partialorder %v1687_v44, 0.0 }
 0x9b9   :  { %v1591_v47 = vsel %vm1587_vm5, %v1585_v41, %v1589_v45 }
 0x9ba   :  { %v1593_v48 = vsel %vm548_vm7, %v1591_v47, -1e+30  ;;  %v1693_v49 = vsel %vm1689_vm6, %v1687_v44, %v1691_v46 }
 0x9bb   :  { %v1597_v50 = vsel %vm473_vm3, %v1593_v48, -inf  ;;  %v1695_v51 = vsel %vm548_vm7, %v1693_v49, -1e+30 }
 0x9bc   :  { %1598 = vmax.xlane.f32.xlu0 %v1597_v50  ;;  %v1699_v53 = vsel %vm473_vm3, %v1695_v51, -inf }
 0x9bd   :  { %1700 = vmax.xlane.f32.xlu2 %v1699_v53 }
 0xa0f   :  { %v1698_v52 = vpop.xlane.xlu1 %1697 }
 0xa10   :  { %v1702_v2 = vsub.f32 %v1694_v20, %v1698_v52 }
 0xa12   :  { %v1704_v56 = vmul.f32 1.442695, %v1702_v2 }
 0xa14   :  { %2535 = vpow2.f32 %v1704_v56 }
 0xa1a   :  { %v2536_v57 = vpop.eup %2535 }
 0xa1b   :  { %v1708_v60 = vsel %vm473_vm3, %v2536_v57, 0.0 }
 0xa1c   :  { %1709 = vadd.xlane.f32.xlu2 %v1708_v60 }
 0xa27   :  { %v1596_v61 = vpop.xlane.xlu2 %1595 }
 0xa28   :  { %v1600_v62 = vsub.f32 %v1592_v36, %v1596_v61 }
 0xa2a   :  { %v1602_v55 = vmul.f32 1.442695, %v1600_v62 }
 0xa2c   :  { %2537 = vpow2.f32 %v1602_v55 }
 0xa2f   :  { %v1599_v59 = vpop.xlane.xlu0 %1598 }
 0xa30   :  { %v1601_v0 = vsub.f32 %v1593_v48, %v1599_v59  ;;  %v1701_v4 = vpop.xlane.xlu2 %1700 }
 0xa31   :  { %v1703_v63 = vsub.f32 %v1695_v51, %v1701_v4 }
 0xa32   :  { %v2538_v1 = vpop.eup %2537  ;;  %v1604_v3 = vmul.f32 1.442695, %v1601_v0 }
 0xa33   :  { %v1706_v5 = vmul.f32 1.442695, %v1703_v63  ;;  %v1606_v6 = vsel %vm473_vm3, %v2538_v1, 0.0 }
 0xa34   :  { %2539 = vpow2.f32 %v1604_v3  ;;  %1607 = vadd.xlane.f32.xlu1 %v1606_v6  ;;  %v1510_v3 = vpop.f32.mrf.mxu0  ;;  %v1796_v6 = vld [vmem:[%s3702_s16 + $0x8] sm:$0xf] }
 0xa35   :  { %2541 = vpow2.f32 %v1706_v5  ;;  %v1792_v5 = vld [vmem:[%s3701_s20 + $0x8] sm:$0xf]  ;;  %2381 = vmatpush.msk.msrb.mxu3 %vm1523_vm0, %v1796_v6 }
 0xa36   :  { %2376 = vmatpush.msk.msra.mxu2 %vm1523_vm0, %v1792_v5 }
 0xa3a   :  { %v3544_v8 = vpop.eup %2539 }
 0xa3b   :  { %v3546_v9 = vpop.eup %2541  ;;  %v1609_v12 = vsel %vm473_vm3, %v3544_v8, 0.0 }
 0xa3c   :  { %1610 = vadd.xlane.f32.xlu1 %v1609_v12  ;;  %v1711_v14 = vsel %vm473_vm3, %v3546_v9, 0.0  ;;  %v1513_v12 = vpop.f32.mrf.mxu0 }
 0xa3d   :  { %1712 = vadd.xlane.f32.xlu2 %v1711_v14  ;;  %v1799_v14 = vld [vmem:[%s3703_s4 + $0x8] sm:$0xff] }
 0xa8f   :  { %v1710_v15 = vpop.xlane.xlu2 %1709 }
 0xa90   :  { %2543 = vrcp.f32 %v1710_v15  ;;  %v1725_v18 = vand.u32 2147483648, %v1710_v15  ;;  %v1723_v22 = vand.u32 2147483647, %v1710_v15  ;;  %vm1719_vm11 = vweird.f32 %v1710_v15 }
 0xa92   :  { %v1726_v25 = vor.u32 1.1754944e-38, %v1725_v18  ;;  %vm1724_vm1 = vcmp.eq.f32.partialorder %v1723_v22, 8.507059e+37  ;;  %v2472_v18 = vld [vmem:[%s3704_s29] ss:$0 sm:$0xff] }
 0xa96   :  { %v2544_v16 = vpop.eup %2543 }
 0xa97   :  { %v1715_v54 = vmul.f32 %v2544_v16, %v1710_v15  ;;  %vm1720_vm10 = vweird.f32 %v2544_v16  ;;  %v1798_v15 = vld [vmem:[%s3703_s4] sm:$0xff] }
 0xa98   :  { %vm1721_vm12 = vmor %vm1719_vm11, %vm1720_vm10 }
 0xa99   :  { %v1716_v17 = vsub.f32 1.0, %v1715_v54 }
 0xa9b   :  { %v1717_v19 = vmul.f32 %v2544_v16, %v1716_v17 }
 0xa9d   :  { %v1718_v23 = vadd.f32 %v2544_v16, %v1717_v19 }
 0xa9f   :  { %v1722_v58 = vsel %vm1721_vm12, %v2544_v16, %v1718_v23 }
 0xaa0   :  { %v1727_v27 = vsel %vm1724_vm1, %v1726_v25, %v1722_v58 }
 0xaa1   :  { %v1728_v28 = vmul.f32 %v2536_v57, %v1727_v27 }
 0xaa3   :  { %2374 = vmatmul.msk.f32.vlgmr.msra.gmra.mxu0 %vm473_vm3, %v1728_v28 }
 0xaa7   :  { %v1608_v30 = vpop.xlane.xlu1 %1607 }
 0xaa8   :  { %2545 = vrcp.f32 %v1608_v30  ;;  %v1623_v33 = vand.u32 2147483648, %v1608_v30  ;;  %v1621_v35 = vand.u32 2147483647, %v1608_v30  ;;  %vm1617_vm14 = vweird.f32 %v1608_v30 }
 0xaaa   :  { %v1624_v40 = vor.u32 1.1754944e-38, %v1623_v33  ;;  %vm1622_vm6 = vcmp.eq.f32.partialorder %v1621_v35, 8.507059e+37  ;;  %v1797_v35 = vld [vmem:[#allocation14] sm:$0x3] }
 0xaae   :  { %v2546_v32 = vpop.eup %2545 }
 0xaaf   :  { %v1613_v20 = vmul.f32 %v2546_v32, %v1608_v30  ;;  %v1611_v31 = vpop.xlane.xlu1 %1610  ;;  %vm1618_vm13 = vweird.f32 %v2546_v32 }
 0xab0   :  { %2547 = vrcp.f32 %v1611_v31  ;;  %v1713_v39 = vpop.xlane.xlu2 %1712  ;;  %vm1619_vm5 = vmor %vm1617_vm14, %vm1618_vm13  ;;  %v1638_v49 = vand.u32 2147483648, %v1611_v31  ;;  %v1636_v52 = vand.u32 2147483647, %v1611_v31  ;;  %vm1632_vm12 = vweird.f32 %v1611_v31 }
 0xab1   :  { %v1614_v42 = vsub.f32 1.0, %v1613_v20  ;;  %2549 = vrcp.f32 %v1713_v39  ;;  %v1740_v53 = vand.u32 2147483648, %v1713_v39  ;;  %v1738_v56 = vand.u32 2147483647, %v1713_v39  ;;  %v1856_v20 = vpop.f32.mrf.mxu1 }
 0xab2   :  { %v1639_v60 = vor.u32 1.1754944e-38, %v1638_v49  ;;  %vm1734_vm1 = vweird.f32 %v1713_v39  ;;  %vm1637_vm14 = vcmp.eq.f32.partialorder %v1636_v52, 8.507059e+37 }
 0xab3   :  { %v1615_v34 = vmul.f32 %v2546_v32, %v1614_v42  ;;  %v1741_v62 = vor.u32 1.1754944e-38, %v1740_v53 }
 0xab5   :  { %v1616_v36 = vadd.f32 %v2546_v32, %v1615_v34 }
 0xab6   :  { %v2548_v38 = vpop.eup %2547 }
 0xab7   :  { %v2550_v41 = vpop.eup %2549  ;;  %v1620_v43 = vsel %vm1619_vm5, %v2546_v32, %v1616_v36  ;;  %v1628_v44 = vmul.f32 %v2548_v38, %v1611_v31  ;;  %vm1633_vm10 = vweird.f32 %v2548_v38 }
 0xab8   :  { %v1625_v45 = vsel %vm1622_vm6, %v1624_v40, %v1620_v43  ;;  %v1730_v46 = vmul.f32 %v2550_v41, %v1713_v39  ;;  %vm1735_vm11 = vweird.f32 %v2550_v41  ;;  %vm1634_vm13 = vmor %vm1632_vm12, %vm1633_vm10  ;;  %vm1739_vm6 = vcmp.eq.f32.partialorder %v1738_v56, 8.507059e+37 }
 0xab9   :  { %v1629_v47 = vsub.f32 1.0, %v1628_v44  ;;  %v1626_v48 = vmul.f32 %v2538_v1, %v1625_v45  ;;  %vm1736_vm5 = vmor %vm1734_vm1, %vm1735_vm11  ;;  %vm1773_vm10 = vcmp.ge.s32.totalorder %v3350_v7, 6  ;;  %vm1774_vm11 = vcmp.lt.s32.totalorder %v3350_v7, 12  ;;  %v1859_v42 = vpop.f32.mrf.mxu1 }
 0xaba   :  { %v1731_v50 = vsub.f32 1.0, %v1730_v46  ;;  %vm1775_vm12 = vmand %vm1773_vm10, %vm1774_vm11  ;;  %vm1671_vm1 = vcmp.lt.s32.totalorder %v3350_v7, 6 }
 0xabb   :  { %v1630_v51 = vmul.f32 %v2548_v38, %v1629_v47  ;;  %2372 = vmatmul.msk.f32.vlgmr.msra.gmra.mxu3 %vm473_vm3, %v1626_v48 }
 0xabc   :  { %v1732_v2 = vmul.f32 %v2550_v41, %v1731_v50 }
 0xabd   :  { %v1631_v57 = vadd.f32 %v2548_v38, %v1630_v51 }
 0xabe   :  { %v1733_v61 = vadd.f32 %v2550_v41, %v1732_v2 }
 0xabf   :  { %v1635_v55 = vsel %vm1634_vm13, %v2548_v38, %v1631_v57 }
 0xac0   :  { %v1640_v59 = vsel %vm1637_vm14, %v1639_v60, %v1635_v55  ;;  %v1737_v0 = vsel %vm1736_vm5, %v2550_v41, %v1733_v61 }
 0xac1   :  { %v1641_v4 = vmul.f32 %v3544_v8, %v1640_v59  ;;  %v1742_v63 = vsel %vm1739_vm6, %v1741_v62, %v1737_v0  ;;  %v1791_v8 = vld [vmem:[%s3701_s20] sm:$0xff] }
 0xac2   :  { %v1743_v1 = vmul.f32 %v3546_v9, %v1742_v63  ;;  %v1795_v9 = vld [vmem:[%s3702_s16] sm:$0xff]  ;;  %1825 = vmatpush.msra.mxu2 %v1791_v8 }
 0xac3   :  { %2373 = vmatmul.msk.f32.gmra.mxu3 %vm473_vm3, %v1641_v4 }
 0xac4   :  { %2375 = vmatmul.msk.f32.gmra.mxu0 %vm473_vm3, %v1743_v1  ;;  %1880 = vmatpush.msrb.mxu3 %v1795_v9 }
 0xac5   :  { %1931 = vmatpush.msrb.mxu2 %v1799_v14 }
 0xac7   :  { %1932 = vmatpush.msrb.mxu2 %v1798_v15 }
 0xacc   :  { %2384 = vmatmul.msk.f32.vlgmr.msrb.gmra.mxu0 %vm473_vm3, %v3522_v21 }
 0xad4   :  { %2385 = vmatmul.msk.f32.gmra.mxu0 %vm473_vm3, %v3526_v26 }
 0xb20   :  { %v1767_v21 = vpop.f32.mrf.mxu0 }
 0xb21   :  { %v1776_v16 = vsel %vm1775_vm12, %v1767_v21, 0.0 }
 0xb3e   :  { %v1665_v26 = vpop.f32.mrf.mxu3 }
 0xb3f   :  { %v1673_v54 = vsel %vm1671_vm1, %v1665_v26, 0.0 }
 0xb40   :  { %v1778_v17 = vadd.f32 %v1776_v16, %v1673_v54 }
 0xb41   :  { %v1770_v23 = vpop.f32.mrf.mxu0 }
 0xb42   :  { %v1780_v19 = vadd.f32 %v1778_v17, %v1510_v3  ;;  %v1777_v58 = vsel %vm1775_vm12, %v1770_v23, 0.0 }
 0xb44   :  { %v1785_v22 = vadd.f32 %v2472_v18, %v1780_v19 }
 0xb46   :  { %2551 = vtanh.f32 %v1785_v22  ;;  %v1668_v25 = vpop.f32.mrf.mxu3 }
 0xb47   :  { %v1674_v27 = vsel %vm1671_vm1, %v1668_v25, 0.0 }
 0xb48   :  { %v1779_v28 = vadd.f32 %v1777_v58, %v1674_v27 }
 0xb4a   :  { %v1781_v11 = vadd.f32 %v1779_v28, %v1513_v12 }
 0xb4c   :  { %v2552_v29 = vpop.eup %2551  ;;  %v1786_v30 = vadd.f32 %v2472_v18, %v1781_v11 }
 0xb4d   :  { %2233 = vst.msk [vmem:[#allocation25] sm:$0xff] %vm1516_vm15, %v2552_v29  ;;  %2377 = vmatmul.msk.f32.vlgmr.msra.gmra.mxu2 %vm1516_vm15, %v2552_v29  ;;  %2382 = vmatmul.msk.f32.vlgmr.msrb.gmra.mxu3 %vm1516_vm15, %v2552_v29 }
 0xb4e   :  { %2553 = vtanh.f32 %v1786_v30 }
 0xb54   :  { %v2554_v32 = vpop.eup %2553 }
 0xb55   :  { %2234 = vst.msk [vmem:[#allocation25 + $0x8] sm:$0xff] %vm1516_vm15, %v2554_v32  ;;  %2378 = vmatmul.msk.f32.gmra.mxu2 %vm1516_vm15, %v2554_v32  ;;  %2383 = vmatmul.msk.f32.gmra.mxu3 %vm1516_vm15, %v2554_v32 }
 0xbd0   :  { %v1827_v31 = vpop.f32.mrf.mxu2 }
 0xbd1   :  { %v1857_v39 = vadd.f32 %v1856_v20, %v1827_v31 }
 0xbd3   :  { %2386 = vmatmul.msk.f32.vlgmr.msrb.gmra.mxu2 %vm473_vm3, %v1857_v39 }
 0xbd8   :  { %v1830_v33 = vpop.f32.mrf.mxu2 }
 0xbd9   :  { %v1860_v34 = vadd.f32 %v1859_v42, %v1830_v33 }
 0xbdb   :  { %2387 = vmatmul.msk.f32.gmra.mxu2 %vm473_vm3, %v1860_v34  ;;  %2388 = vmatpush.xpose.msk.msra.mxu1 %vm473_vm3, %v1860_v34 }
 0xbdc   :  { %2052 = vmatpush.msra.mxu3 %v1860_v34  ;;  %2152 = vmatpush.msra.mxu0 %v1860_v34 }
 0xbde   :  { %2053 = vmatpush.msra.mxu3 %v1857_v39  ;;  %2153 = vmatpush.msra.mxu0 %v1857_v39 }
 0xbdf   :  { %2389 = vmatpush.xpose.msk.msra.mxu1 %vm473_vm3, %v1857_v39 }
 0xbe2   :  { %2390 = vmatmul.msk.f32.vlgmr.msra.gmra.mxu1 %vm473_vm3, %v1797_v35 }
 0xc56   :  { %v1934_v36 = vpop.f32.mrf.mxu2 }
 0xc57   :  { %2066 = vperm.xlu1 %2466, %v1934_v36   ;;  %1965 = vperm.xlu0 %2465, %v1934_v36  }
 0xc5e   :  { %v1937_v38 = vpop.f32.mrf.mxu2 }
 0xc5f   :  { %2468 = vset.pattern.permute.xlu0 %v3005_v10  ;;  %1970 = vperm.xlu2 %2467, %v1937_v38   ;;  %v1960_v40 = vpop.f32.mrf.mxu1 }
 0xc60   :  { %2070 = vperm.xlu0 %2468, %v1937_v38   ;;  %v1973_v41 = vperm.slane %v1960_v40, 0  ;;  %v2073_v49 = vperm.slane %v1960_v40, 1 }
 0xcb9   :  { %v1971_v43 = vpop.permute.xlu2 %1970 }
 0xcba   :  { %v1975_v44 = vadd.f32 %v1973_v41, %v1971_v43 }
 0xcbc   :  { %v1979_v45 = vmul.f32 0.2, %v1975_v44  ;;  %vm1977_vm15 = vcmp.ge.f32.partialorder %v1975_v44, 0.0 }
 0xcbe   :  { %v1981_v46 = vsel %vm1977_vm15, %v1975_v44, %v1979_v45 }
 0xcbf   :  { %v1983_v47 = vsel %vm548_vm7, %v1981_v46, -1e+30 }
 0xcc0   :  { %v1987_v48 = vsel %vm473_vm3, %v1983_v47, -inf }
 0xcc1   :  { %1988 = vmax.xlane.f32.xlu0 %v1987_v48 }
 0xcc9   :  { %v2067_v50 = vpop.permute.xlu1 %2066  ;;  %v1966_v51 = vpop.permute.xlu0 %1965 }
 0xcca   :  { %v2074_v53 = vadd.f32 %v2073_v49, %v2067_v50  ;;  %v1974_v10 = vadd.f32 %v1973_v41, %v1966_v51 }
 0xccc   :  { %v2078_v52 = vmul.f32 0.2, %v2074_v53  ;;  %v1978_v2 = vmul.f32 0.2, %v1974_v10  ;;  %vm2076_vm0 = vcmp.ge.f32.partialorder %v2074_v53, 0.0  ;;  %vm1976_vm13 = vcmp.ge.f32.partialorder %v1974_v10, 0.0 }
 0xcce   :  { %v2080_v56 = vsel %vm2076_vm0, %v2074_v53, %v2078_v52  ;;  %v1980_v57 = vsel %vm1976_vm13, %v1974_v10, %v1978_v2 }
 0xccf   :  { %v2082_v60 = vsel %vm547_vm4, %v2080_v56, -1e+30  ;;  %v1982_v61 = vsel %vm547_vm4, %v1980_v57, -1e+30 }
 0xcd0   :  { %v2084_v62 = vsel %vm473_vm3, %v2082_v60, -inf  ;;  %v1984_v55 = vsel %vm473_vm3, %v1982_v61, -inf }
 0xcd1   :  { %2085 = vmax.xlane.f32.xlu1 %v2084_v62  ;;  %1985 = vmax.xlane.f32.xlu2 %v1984_v55 }
 0xcd2   :  { %v2071_v59 = vpop.permute.xlu0 %2070 }
 0xcd3   :  { %v2075_v0 = vadd.f32 %v2073_v49, %v2071_v59 }
 0xcd5   :  { %v2079_v4 = vmul.f32 0.2, %v2075_v0  ;;  %vm2077_vm14 = vcmp.ge.f32.partialorder %v2075_v0, 0.0 }
 0xcd7   :  { %v2081_v63 = vsel %vm2077_vm14, %v2075_v0, %v2079_v4 }
 0xcd8   :  { %v2083_v1 = vsel %vm548_vm7, %v2081_v63, -1e+30 }
 0xcd9   :  { %v2087_v3 = vsel %vm473_vm3, %v2083_v1, -inf }
 0xcda   :  { %2088 = vmax.xlane.f32.xlu2 %v2087_v3 }
 0xd34   :  { %v1989_v5 = vpop.xlane.xlu0 %1988 }
 0xd35   :  { %v1991_v24 = vsub.f32 %v1983_v47, %v1989_v5 }
 0xd37   :  { %v1994_v6 = vmul.f32 1.442695, %v1991_v24 }
 0xd39   :  { %2555 = vpow2.f32 %v1994_v6 }
 0xd3f   :  { %v3600_v8 = vpop.eup %2555 }
 0xd40   :  { %v1999_v9 = vsel %vm473_vm3, %v3600_v8, 0.0 }
 0xd41   :  { %2000 = vadd.xlane.f32.xlu0 %v1999_v9 }
 0xd44   :  { %v2086_v12 = vpop.xlane.xlu1 %2085  ;;  %v1986_v14 = vpop.xlane.xlu2 %1985 }
 0xd45   :  { %v2090_v15 = vsub.f32 %v2082_v60, %v2086_v12  ;;  %v1990_v21 = vsub.f32 %v1982_v61, %v1986_v14 }
 0xd47   :  { %v2092_v26 = vmul.f32 1.442695, %v2090_v15  ;;  %v1992_v37 = vmul.f32 1.442695, %v1990_v21  ;;  %v1905_v15 = vpop.f32.mrf.mxu0  ;;  %v1882_v21 = vpop.f32.mrf.mxu3 }
 0xd49   :  { %2557 = vpow2.f32 %v2092_v26 }
 0xd4a   :  { %2559 = vpow2.f32 %v1992_v37 }
 0xd4d   :  { %v2089_v16 = vpop.xlane.xlu2 %2088 }
 0xd4e   :  { %v2091_v54 = vsub.f32 %v2083_v1, %v2089_v16 }
 0xd4f   :  { %v2558_v17 = vpop.eup %2557  ;;  %v1908_v26 = vpop.f32.mrf.mxu0 }
 0xd50   :  { %v2560_v18 = vpop.eup %2559  ;;  %v2094_v19 = vmul.f32 1.442695, %v2091_v54  ;;  %v2096_v22 = vsel %vm473_vm3, %v2558_v17, 0.0  ;;  %v1885_v37 = vpop.f32.mrf.mxu3 }
 0xd51   :  { %2097 = vadd.xlane.f32.xlu2 %v2096_v22  ;;  %v1996_v23 = vsel %vm473_vm3, %v2560_v18, 0.0  ;;  %v2473_v22 = vld [vmem:[#allocation16] ss:$0 sm:$0xff] }
 0xd52   :  { %2561 = vpow2.f32 %v2094_v19  ;;  %1997 = vadd.xlane.f32.xlu1 %v1996_v23  ;;  %v1906_v19 = vadd.f32 %v1905_v15, %v1882_v21 }
 0xd58   :  { %v3606_v25 = vpop.eup %2561 }
 0xd59   :  { %v2099_v58 = vsel %vm473_vm3, %v3606_v25, 0.0 }
 0xd5a   :  { %2100 = vadd.xlane.f32.xlu1 %v2099_v58 }
 0xdb4   :  { %v2001_v27 = vpop.xlane.xlu0 %2000 }
 0xdb5   :  { %2563 = vrcp.f32 %v2001_v27  ;;  %v2028_v56 = vand.u32 2147483648, %v2001_v27  ;;  %vm2022_vm0 = vweird.f32 %v2001_v27  ;;  %v2026_v55 = vand.u32 2147483647, %v2001_v27 }
 0xdb7   :  { %v2029_v1 = vor.u32 1.1754944e-38, %v2028_v56 }
 0xdbb   :  { %v3610_v28 = vpop.eup %2563 }
 0xdbc   :  { %v2018_v30 = vmul.f32 %v3610_v28, %v2001_v27  ;;  %vm2023_vm11 = vweird.f32 %v3610_v28 }
 0xdbd   :  { %vm2024_vm13 = vmor %vm2022_vm0, %vm2023_vm11 }
 0xdbe   :  { %v2019_v20 = vsub.f32 1.0, %v2018_v30  ;;  %v1909_v30 = vadd.f32 %v1908_v26, %v1885_v37 }
 0xdc0   :  { %v2020_v35 = vmul.f32 %v3610_v28, %v2019_v20 }
 0xdc2   :  { %v2021_v53 = vadd.f32 %v3610_v28, %v2020_v35 }
 0xdc4   :  { %v2098_v11 = vpop.xlane.xlu2 %2097  ;;  %v2025_v63 = vsel %vm2024_vm13, %v3610_v28, %v2021_v53 }
 0xdc5   :  { %v1998_v29 = vpop.xlane.xlu1 %1997  ;;  %2565 = vrcp.f32 %v2098_v11  ;;  %v2113_v38 = vand.u32 2147483648, %v2098_v11  ;;  %v2111_v43 = vand.u32 2147483647, %v2098_v11  ;;  %vm2107_vm5 = vweird.f32 %v2098_v11 }
 0xdc6   :  { %2567 = vrcp.f32 %v1998_v29  ;;  %v2013_v40 = vand.u32 2147483648, %v1998_v29  ;;  %v2011_v45 = vand.u32 2147483647, %v1998_v29  ;;  %vm2007_vm6 = vweird.f32 %v1998_v29 }
 0xdc7   :  { %v2114_v48 = vor.u32 1.1754944e-38, %v2113_v38  ;;  %vm2112_vm1 = vcmp.eq.f32.partialorder %v2111_v43, 8.507059e+37 }
 0xdc8   :  { %v2014_v50 = vor.u32 1.1754944e-38, %v2013_v40  ;;  %vm2012_vm15 = vcmp.eq.f32.partialorder %v2011_v45, 8.507059e+37 }
 0xdcb   :  { %v2566_v32 = vpop.eup %2565 }
 0xdcc   :  { %v2568_v31 = vpop.eup %2567  ;;  %v2103_v39 = vmul.f32 %v2566_v32, %v2098_v11  ;;  %vm2108_vm4 = vweird.f32 %v2566_v32 }
 0xdcd   :  { %v2003_v42 = vmul.f32 %v2568_v31, %v1998_v29  ;;  %v2101_v33 = vpop.xlane.xlu1 %2100  ;;  %vm2008_vm7 = vweird.f32 %v2568_v31  ;;  %vm2109_vm10 = vmor %vm2107_vm5, %vm2108_vm4 }
 0xdce   :  { %v2104_v34 = vsub.f32 1.0, %v2103_v39  ;;  %2569 = vrcp.f32 %v2101_v33  ;;  %vm2009_vm12 = vmor %vm2007_vm6, %vm2008_vm7  ;;  %v2128_v59 = vand.u32 2147483648, %v2101_v33  ;;  %v2126_v4 = vand.u32 2147483647, %v2101_v33 }
 0xdcf   :  { %v2004_v36 = vsub.f32 1.0, %v2003_v42  ;;  %vm2122_vm4 = vweird.f32 %v2101_v33  ;;  %vm2027_vm7 = vcmp.eq.f32.partialorder %v2026_v55, 8.507059e+37 }
 0xdd0   :  { %v2105_v41 = vmul.f32 %v2566_v32, %v2104_v34  ;;  %v2129_v5 = vor.u32 1.1754944e-38, %v2128_v59  ;;  %v2030_v24 = vsel %vm2027_vm7, %v2029_v1, %v2025_v63  ;;  %vm2127_vm6 = vcmp.eq.f32.partialorder %v2126_v4, 8.507059e+37 }
 0xdd1   :  { %v2005_v44 = vmul.f32 %v2568_v31, %v2004_v36  ;;  %v2031_v12 = vmul.f32 %v3600_v8, %v2030_v24  ;;  %v2194_v36 = vld [vmem:[%s3705_s18] sm:$0xff] }
 0xdd2   :  { %v2106_v46 = vadd.f32 %v2566_v32, %v2105_v41  ;;  %2220 = vmatpush.msrb.mxu1 %v2194_v36 }
 0xdd3   :  { %v2006_v47 = vadd.f32 %v2568_v31, %v2005_v44 }
 0xdd4   :  { %v2570_v49 = vpop.eup %2569  ;;  %v2110_v51 = vsel %vm2109_vm10, %v2566_v32, %v2106_v46 }
 0xdd5   :  { %v2010_v10 = vsel %vm2009_vm12, %v2568_v31, %v2006_v47  ;;  %v2115_v52 = vsel %vm2112_vm1, %v2114_v48, %v2110_v51  ;;  %v2118_v2 = vmul.f32 %v2570_v49, %v2101_v33  ;;  %vm2123_vm14 = vweird.f32 %v2570_v49 }
 0xdd6   :  { %v2015_v57 = vsel %vm2012_vm15, %v2014_v50, %v2010_v10  ;;  %v2116_v60 = vmul.f32 %v2558_v17, %v2115_v52  ;;  %vm2124_vm5 = vmor %vm2122_vm4, %vm2123_vm14 }
 0xdd7   :  { %v2119_v61 = vsub.f32 1.0, %v2118_v2  ;;  %v2016_v62 = vmul.f32 %v2560_v18, %v2015_v57 }
 0xdd8   :  { %2393 = vmatmul.msk.f32.vlgmr.msra.gmra.mxu0 %vm473_vm3, %v2116_v60 }
 0xdd9   :  { %v2120_v0 = vmul.f32 %v2570_v49, %v2119_v61  ;;  %2391 = vmatmul.msk.f32.vlgmr.msra.gmra.mxu3 %vm473_vm3, %v2016_v62 }
 0xddb   :  { %v2121_v3 = vadd.f32 %v2570_v49, %v2120_v0 }
 0xddd   :  { %v2125_v6 = vsel %vm2124_vm5, %v2570_v49, %v2121_v3 }
 0xdde   :  { %v2130_v9 = vsel %vm2127_vm6, %v2129_v5, %v2125_v6 }
 0xddf   :  { %v2131_v14 = vmul.f32 %v3606_v25, %v2130_v9 }
 0xde1   :  { %2392 = vmatmul.msk.f32.gmra.mxu3 %vm473_vm3, %v2031_v12  ;;  %2394 = vmatmul.msk.f32.gmra.mxu0 %vm473_vm3, %v2131_v14 }
 0xe55   :  { %v2155_v16 = vpop.f32.mrf.mxu0 }
 0xe56   :  { %v2161_v17 = vsel %vm3355_vm9, %v2155_v16, 0.0 }
 0xe5c   :  { %v2055_v54 = vpop.f32.mrf.mxu3 }
 0xe5d   :  { %v2061_v18 = vsel %vm629_vm8, %v2055_v54, 0.0 }
 0xe5e   :  { %v2163_v8 = vadd.f32 %v2161_v17, %v2061_v18  ;;  %v2158_v58 = vpop.f32.mrf.mxu0 }
 0xe5f   :  { %v2162_v11 = vsel %vm3355_vm9, %v2158_v58, 0.0 }
 0xe60   :  { %v2165_v23 = vadd.f32 %v2163_v8, %v1906_v19 }
 0xe62   :  { %v2170_v25 = vadd.f32 %v2473_v22, %v2165_v23 }
 0xe64   :  { %v2058_v27 = vpop.f32.mrf.mxu3  ;;  %v2174_v28 = vmul.f32 1.442695, %v2170_v25  ;;  %vm2172_vm3 = vcmp.gt.f32.partialorder %v2170_v25, 0.0 }
 0xe65   :  { %v2062_v29 = vsel %vm629_vm8, %v2058_v27, 0.0 }
 0xe66   :  { %v2164_v32 = vadd.f32 %v2162_v11, %v2062_v29  ;;  %2571 = vpow2.f32 %v2174_v28 }
 0xe68   :  { %v2166_v20 = vadd.f32 %v2164_v32, %v1909_v30 }
 0xe6a   :  { %v2171_v31 = vadd.f32 %v2473_v22, %v2166_v20 }
 0xe6c   :  { %v2572_v39 = vpop.eup %2571  ;;  %v2176_v42 = vmul.f32 1.442695, %v2171_v31  ;;  %vm2173_vm9 = vcmp.gt.f32.partialorder %v2171_v31, 0.0 }
 0xe6d   :  { %v2395_v33 = vadd.f32 -1.0, %v2572_v39 }
 0xe6e   :  { %2573 = vpow2.f32 %v2176_v42 }
 0xe6f   :  { %v2180_v34 = vsel %vm2172_vm3, %v2170_v25, %v2395_v33 }
 0xe70   :  { %2184 = vrot.lane.b32.xlu2 %v2180_v34, %s3007_s22 }
 0xe74   :  { %v2574_v13 = vpop.eup %2573 }
 0xe75   :  { %v2396_v35 = vadd.f32 -1.0, %v2574_v13 }
 0xe77   :  { %v2181_v7 = vsel %vm2173_vm9, %v2171_v31, %v2396_v35 }
 0xe78   :  { %2186 = vrot.lane.b32.xlu0 %v2181_v7, %s3007_s22 }
 0xeca   :  { %v2185_v38 = vpop.permute.xlu2 %2184 }
 0xecb   :  { %v2190_v40 = vadd.f32 %v2185_v38, %v2180_v34 }
 0xecd   :  { %v2192_v41 = vmul.f32 0.5, %v2190_v40 }
 0xecf   :  { %2231 = vst.msk [vmem:[%s3204_s5] sm:$0xff] %vm394_vm2, %v2192_v41  ;;  %2397 = vmatmul.msk.f32.vlgmr.msrb.gmra.mxu1 %vm394_vm2, %v2192_v41 }
 0xeea   :  { %v2187_v43 = vpop.permute.xlu0 %2186 }
 0xeeb   :  { %v2191_v44 = vadd.f32 %v2187_v43, %v2181_v7 }
 0xeed   :  { %v2193_v45 = vmul.f32 0.5, %v2191_v44 }
 0xeef   :  { %2232 = vst.msk [vmem:[%s3204_s5 + $0x8] sm:$0xff] %vm394_vm2, %v2193_v45  ;;  %2398 = vmatmul.msk.f32.gmra.mxu1 %vm394_vm2, %v2193_v45 }
 0xef0   :  { %2934 = shalt.err (!%p2931_p4)
}
 0xef1   :  { %s3009_s8 = smov 128   ;;  %s3010_s0 = smov 8   ;;  %v2474_v46 = vld [vmem:[%s3194_s3] ss:$0 sm:$0xff]  ;;  %vm2228_vm2 = vcmask 23552  }
 0xef2   :  { %2251 = dma.vmem_to_hbm [thread:$0]  %s2244_s14, 256, %s2246_s23, [#allocation4], %s3009_s8, %s3009_s8, %s3010_s0  }
 0xf4c   :  { %v2222_v47 = vpop.f32.mrf.mxu1 }
 0xf4d   :  { %v2223_v48 = vadd.f32 %v2474_v46, %v2222_v47 }
 0xf4f   :  { %2229 = vst.msk [vmem:[%s3199_s17] sm:$0xff] %vm2228_vm2, %v2223_v48 }
 0xf6c   :  { %v2225_v49 = vpop.f32.mrf.mxu1 }
 0xf6d   :  { %v2226_v50 = vadd.f32 %v2474_v46, %v2225_v49 }
 0xf6f   :  { %2230 = vst.msk [vmem:[%s3199_s17 + $0x8] sm:$0xff] %vm2228_vm2, %v2226_v50 }
 0xf70   :  { %2951 = dma.done.wait [#allocation4], 256  }
 0xf71   :  { %2952 = vsyncadd [#allocation4], 4294967040 }
 0xf72   :  { %2260 = vsyncpa [#allocation3], 1 }
 0xf73   :  { %2261 = vsyncpa [#allocation6], 1 }
 0xf74   :  { %2262 = vsyncpa [#allocation9], 1 }
 0xf75   :  { %2263 = vsyncpa [#allocation12], 1 }
 0xf76   :  { %2264 = vsyncpa [#allocation15], 1 }
 0xf77   :  { %2265 = vsyncpa [#allocation18], 1 }
 0xf78   :  { %2266 = vsyncpa [#allocation21], 1 }
 0xf79   :  { %2267 = vsyncpa [#allocation24], 1 }
 0xf7a   :  { %2268 = vsyncpa [#allocation4], 1 }

</bundles_post_ra>
